<compile_context>
chip_gen: v7x
topology: tpu7x:2x2x1
jax: 0.10.0
libtpu: 0.0.40
codegen_flags: <defaults>
</compile_context>

<pallas_src>
import numpy as np
import jax
import jax.numpy as jnp
from jax.experimental import pallas as pl
from jax.experimental.pallas import tpu as pltpu


NEG_INF = -1e9   # large negative mask (not -inf): max stays finite, exp -> exactly 0


def _relative_position_index(Wh, Ww):
    coords_h = np.arange(Wh)
    coords_w = np.arange(Ww)
    coords = np.stack(np.meshgrid(coords_h, coords_w, indexing="ij"))   # (2, Wh, Ww)
    coords_flatten = coords.reshape(2, -1)                              # (2, N)
    rel = coords_flatten[:, :, None] - coords_flatten[:, None, :]       # (2, N, N)
    rel = rel.transpose(1, 2, 0).astype(np.int64)                       # (N, N, 2)
    rel[..., 0] += Wh - 1
    rel[..., 1] += Ww - 1
    rel[..., 0] *= 2 * Ww - 1
    return rel.sum(-1)                                                  # (N, N)


def _vmem_capacity_bytes():
    try:
        return int(pltpu.get_tpu_info().vmem_capacity_bytes)
    except Exception:
        return 64 * 2**20   # v7x per-TensorCore VMEM (smallest across generations)


def _is_v7x():
    try:
        kind = jax.devices()[0].device_kind.lower()
        return ("v7" in kind) or ("tpu7" in kind)
    except Exception:
        return False


def prepare_local_attention_params(w_qkv, b_qkv, w_out, b_out, rel_bias, *,
                                   heads, scale, num_windows_hint,
                                   target_tokens=128):
    """One-time parameter preparation (hoisted out of the per-call wrapper).

    * folds the q scale into the q columns of the QKV projection (f32, then cast),
    * casts the matmul weights to bfloat16 (MXU-native, halves weight DMA),
    * picks B_TILE so B_TILE*N ~= target_tokens tokens fill the MXU M axis,
      keeping the grid length >= 2 only on v7x (two TensorCores),
    * builds the (heads, M, M) block-diagonal relative-position-bias + cross-window
      mask constant consumed by the kernel.
    """
    dim = w_qkv.shape[0]
    heads_, N, _ = rel_bias.shape
    assert heads_ == heads and dim % heads == 0

    # Fold the q scale (one-time, parameter-sized transform, in f32 before the cast).
    w_qkv = w_qkv.at[:, :dim].multiply(scale)
    b_qkv = b_qkv.at[:dim].multiply(scale)

    b_tile = max(1, target_tokens // N)
    b_tile = min(b_tile, max(1, num_windows_hint))
    # v7x has two TensorCores per chip: keep grid length >= 2 so both get work.
    if _is_v7x() and num_windows_hint >= 2 and num_windows_hint // b_tile < 2:
        b_tile = max(1, num_windows_hint // 2)
    m = b_tile * N

    # Block-diagonal bias+mask: relative-position bias inside each fused window,
    # NEG_INF everywhere else.  Every row contains its own (unmasked) window, so
    # softmax rows can never be fully masked -> no NaN risk.
    bias_tiled = jnp.tile(rel_bias.astype(jnp.float32), (1, b_tile, b_tile))  # (h, M, M)
    win = jnp.arange(m) // N
    same_window = (win[:, None] == win[None, :])[None]                        # (1, M, M)
    bias_mask = jnp.where(same_window, bias_tiled, jnp.float32(NEG_INF))

    return dict(
        w_qkv=w_qkv.astype(jnp.bfloat16),
        b_qkv=b_qkv.reshape(1, 3 * dim).astype(jnp.float32),
        w_out=w_out.astype(jnp.bfloat16),
        b_out=b_out.reshape(1, dim).astype(jnp.float32),
        bias_mask=bias_mask,
        heads=heads, head_dim=dim // heads, dim=dim, N=N, b_tile=b_tile,
    )


def _local_attention_kernel(b_tile, N, dim, heads, head_dim):
    M = b_tile * N

    def kernel(x_ref, wqkv_ref, bqkv_ref, wout_ref, bout_ref, bias_ref, o_ref):
        # (b_tile, N, dim) -> (M, dim): merges the two major dims, no relayout.
        x = x_ref[...].reshape(M, dim)

        # Fused QKV projection for all fused windows: bf16 MXU operands, f32 acc.
        # The q scale is already folded into wqkv / bqkv.
        qkv = jnp.dot(x, wqkv_ref[...], preferred_element_type=jnp.float32)
        qkv = qkv + bqkv_ref[...]                                     # (M, 3*dim) f32

        outs = []
        for h in range(heads):            # heads is small; unrolls at trace time
            q_h = qkv[:, h * head_dim:(h + 1) * head_dim].astype(jnp.bfloat16)
            k_h = qkv[:, dim + h * head_dim:dim + (h + 1) * head_dim].astype(jnp.bfloat16)
            v_h = qkv[:, 2 * dim + h * head_dim:2 * dim + (h + 1) * head_dim].astype(jnp.bfloat16)

            # Lane-dense (M, M) logits on the MXU.  The block-diagonal bias carries
            # both the relative-position bias and the cross-window -1e9 mask, so
            # the fused windows stay independent.
            s = jnp.einsum("mc,nc->mn", q_h, k_h,
                           preferred_element_type=jnp.float32)        # (M, M) f32
            s = s + bias_ref[h]

            # Numerically stable softmax over the lane-dense last axis (f32 VPU/EUP);
            # masked (cross-window) entries underflow to exactly 0.
            s = s - jnp.max(s, axis=-1, keepdims=True)
            p = jnp.exp(s)
            p = p * pl.reciprocal(jnp.sum(p, axis=-1, keepdims=True), approx=True)

            outs.append(jnp.dot(p.astype(jnp.bfloat16), v_h,
                                preferred_element_type=jnp.float32))  # (M, head_dim)

        # Head-major re-assembly on the lane axis, then ONE K=dim output projection
        # (no per-head K=head_dim dots / accumulator adds).
        out = jnp.concatenate(outs, axis=-1)                          # (M, dim) f32
        y = jnp.dot(out.astype(jnp.bfloat16), wout_ref[...],
                    preferred_element_type=jnp.float32)
        y = y + bout_ref[...]
        o_ref[...] = y.reshape(b_tile, N, dim).astype(o_ref.dtype)

    return kernel


def local_attention(x, params):
    """x: (B, N, dim) window tokens.  Returns (B, N, dim) in x.dtype."""
    B, N, dim = x.shape
    heads, head_dim = params["heads"], params["head_dim"]
    b_tile = params["b_tile"]
    assert N == params["N"] and dim == params["dim"]
    M = b_tile * N

    # Pad the window count so every grid step runs a full lane-dense tile; padded
    # windows are self-contained (block-diagonal mask) and are sliced off below.
    B_pad = ((B + b_tile - 1) // b_tile) * b_tile
    x_in = x if B_pad == B else jnp.pad(x, ((0, B_pad - B), (0, 0), (0, 0)))
    x_in = x_in.astype(jnp.bfloat16)          # bf16 MXU operand, halves the x DMA
    grid = (B_pad // b_tile,)
    steps = grid[0]

    kernel = _local_attention_kernel(b_tile, N, dim, heads, head_dim)

    # Advisory cost estimate (block-diagonal attention does M*M*head_dim MACs/head).
    flops = int(steps * (2 * M * dim * 3 * dim
                         + heads * 2 * (2 * M * M * head_dim)
                         + 2 * M * dim * dim))
    transcendentals = int(steps * heads * M * M)
    bytes_accessed = int(steps * (2 * M * dim * 2 + 4 * M * dim)
                         + 2 * (dim * 3 * dim + dim * dim)
                         + 4 * (4 * dim + heads * M * M))

    # Rough per-step VMEM working set: double-buffered operands + f32 temporaries.
    est = (2 * (2 * M * dim                    # x tile (bf16), double-buffered
                + 4 * M * dim                  # out tile (f32), double-buffered
                + 2 * dim * 3 * dim + 2 * dim * dim + 4 * 4 * dim   # weights/biases
                + 4 * heads * M * M)           # block-diagonal bias+mask (f32)
           + 4 * (3 * M * dim + 3 * M * M + 2 * M * dim))           # temporaries
    cap = _vmem_capacity_bytes()
    # Always set the scoped limit (v5e defaults to 16 MiB) but stay well under the
    # physical per-core VMEM (v7x: 64 MiB) so compiler-internal scratch still fits.
    vmem_limit = int(min(3 * cap // 4, max(32 * 2**20, 2 * est + (4 << 20))))

    out = pl.pallas_call(
        kernel,
        out_shape=jax.ShapeDtypeStruct((B_pad, N, dim), x.dtype),
        grid_spec=pltpu.PrefetchScalarGridSpec(
            num_scalar_prefetch=0,
            grid=grid,
            in_specs=[
                pl.BlockSpec((b_tile, N, dim), lambda b: (b, 0, 0)),     # x (bf16)
                pl.BlockSpec((dim, 3 * dim), lambda b: (0, 0)),          # w_qkv (bf16, q-scaled)
                pl.BlockSpec((1, 3 * dim), lambda b: (0, 0)),            # b_qkv (f32, q-scaled)
                pl.BlockSpec((dim, dim), lambda b: (0, 0)),              # w_out (bf16)
                pl.BlockSpec((1, dim), lambda b: (0, 0)),                # b_out (f32)
                pl.BlockSpec((heads, M, M), lambda b: (0, 0, 0)),        # block-diag bias+mask
            ],
            out_specs=pl.BlockSpec((b_tile, N, dim), lambda b: (b, 0, 0)),
        ),
        compiler_params=pltpu.CompilerParams(
            dimension_semantics=("parallel",),
            vmem_limit_bytes=vmem_limit),
        cost_estimate=pl.CostEstimate(
            flops=flops,
            transcendentals=transcendentals,
            bytes_accessed=bytes_accessed),
    )(x_in, params["w_qkv"], params["b_qkv"], params["w_out"], params["b_out"],
      params["bias_mask"])

    return out if B_pad == B else out[:B]


def _reference(x, w_qkv, b_qkv, w_out, b_out, rel_bias, *, heads, scale):
    B, N, dim = x.shape
    hd = dim // heads
    qkv = x @ w_qkv + b_qkv
    q, k, v = jnp.split(qkv, 3, axis=2)
    q = q * scale

    def split_heads(t):
        return t.reshape(B, N, heads, hd).transpose(0, 2, 1, 3)

    q, k, v = map(split_heads, (q, k, v))
    attn = jnp.einsum("bhmc,bhnc->bhmn", q, k) + rel_bias[None]
    attn = jax.nn.softmax(attn, axis=-1)
    out = jnp.einsum("bhmn,bhnc->bhmc", attn, v)
    out = out.transpose(0, 2, 1, 3).reshape(B, N, dim)
    return out @ w_out + b_out


if __name__ == "__main__":
    # Config consistent with the module: dim=32, heads=4, window 4x4 -> N=16 tokens,
    # B=8 windows -> the kernel fuses them into one 128-token lane-dense tile.
    B, dim, heads = 8, 32, 4
    Wh, Ww = 4, 4
    N = Wh * Ww
    head_dim = dim // heads
    scale = head_dim ** (-0.5)

    key = jax.random.PRNGKey(0)
    k_x, k_wq, k_bq, k_wo, k_bo, k_tab = jax.random.split(key, 6)

    x = jax.random.normal(k_x, (B, N, dim), dtype=jnp.float32)

    # Deterministic parameter init (synthetic weights, not a checkpoint).
    w_qkv = jax.random.normal(k_wq, (dim, 3 * dim), dtype=jnp.float32) * 0.05
    b_qkv = jax.random.normal(k_bq, (3 * dim,), dtype=jnp.float32) * 0.01
    w_out = jax.random.normal(k_wo, (dim, dim), dtype=jnp.float32) * 0.05
    b_out = jax.random.normal(k_bo, (dim,), dtype=jnp.float32) * 0.01

    # relative_position_bias_table: ((2Wh-1)*(2Ww-1), heads), trunc_normal std=0.01
    table = (jax.random.truncated_normal(
        k_tab, -2.0, 2.0, ((2 * Wh - 1) * (2 * Ww - 1), heads)) * 0.01
    ).astype(jnp.float32)

    rpi = jnp.asarray(_relative_position_index(Wh, Ww))                 # (N, N)
    rel_bias = table[rpi.reshape(-1)].reshape(N, N, heads)              # (N, N, heads)
    rel_bias = jnp.transpose(rel_bias, (2, 0, 1))                       # (heads, N, N)

    # One-time parameter preparation (scale folding, bf16 casts, block-diag bias).
    params = prepare_local_attention_params(
        w_qkv, b_qkv, w_out, b_out, rel_bias,
        heads=heads, scale=scale, num_windows_hint=B)

    y = local_attention(x, params)
    y = jax.block_until_ready(y)

    y_ref = _reference(x, w_qkv, b_qkv, w_out, b_out, rel_bias,
                       heads=heads, scale=scale)
    # Tolerance covers bf16 MXU operands + EUP approximate-reciprocal softmax.
    assert y.shape == y_ref.shape
    assert jnp.allclose(y, y_ref, atol=2e-2, rtol=2e-2), "mismatch vs reference"

    # TODO(synk): attn_drop / proj_drop are identity (eval mode / p=0); mask=None path only.
    print("KERNEL_OK")
</pallas_src>

<mosaic_0001>
module attributes {stable_mosaic.version = 11 : i64} {
  func.func @kernel(%arg0: i32, %arg1: memref<8x16x32xbf16, #tpu.memory_space<vmem>>, %arg2: memref<32x96xbf16, #tpu.memory_space<vmem>>, %arg3: memref<1x96xf32, #tpu.memory_space<vmem>>, %arg4: memref<32x32xbf16, #tpu.memory_space<vmem>>, %arg5: memref<1x32xf32, #tpu.memory_space<vmem>>, %arg6: memref<4x128x128xf32, #tpu.memory_space<vmem>>, %arg7: memref<8x16x32xf32, #tpu.memory_space<vmem>>) attributes {dimension_semantics = [#tpu.dimension_semantics<parallel>], iteration_bounds = array<i64: 1>, scalar_prefetch = 0 : i64, scratch_operands = 0 : i64, tpu.core_type = #tpu.core_type<tc>, window_params = [{transform_indices = @transform_0, window_bounds = array<i64: 8, 16, 32>}, {pipeline_mode = #tpu.pipeline_mode<synchronous>, transform_indices = @transform_1, window_bounds = array<i64: 32, 96>}, {pipeline_mode = #tpu.pipeline_mode<synchronous>, transform_indices = @transform_2, window_bounds = array<i64: 1, 96>}, {pipeline_mode = #tpu.pipeline_mode<synchronous>, transform_indices = @transform_3, window_bounds = array<i64: 32, 32>}, {pipeline_mode = #tpu.pipeline_mode<synchronous>, transform_indices = @transform_4, window_bounds = array<i64: 1, 32>}, {pipeline_mode = #tpu.pipeline_mode<synchronous>, transform_indices = @transform_5, window_bounds = array<i64: 4, 128, 128>}, {transform_indices = @transform_6, window_bounds = array<i64: 8, 16, 32>}]} {
    %c0 = arith.constant 0 : index
    %c0_0 = arith.constant 0 : index
    %c0_1 = arith.constant 0 : index
    %0 = vector.load %arg1[%c0, %c0_0, %c0_1] : memref<8x16x32xbf16, #tpu.memory_space<vmem>>, vector<8x16x32xbf16>
    %1 = vector.shape_cast %0 : vector<8x16x32xbf16> to vector<128x32xbf16>
    %c0_2 = arith.constant 0 : index
    %c0_3 = arith.constant 0 : index
    %2 = vector.load %arg2[%c0_2, %c0_3] : memref<32x96xbf16, #tpu.memory_space<vmem>>, vector<32x96xbf16>
    %cst = arith.constant dense<0.000000e+00> : vector<128x96xf32>
    %3 = tpu.matmul %1, %2, %cst {dimension_numbers = #tpu.dot_dimension_numbers<[1], [0], [0], [1], [0, 0, 1, 1], [], []>} : vector<128x32xbf16>, vector<32x96xbf16>, vector<128x96xf32> -> vector<128x96xf32>
    %c0_4 = arith.constant 0 : index
    %c0_5 = arith.constant 0 : index
    %4 = vector.load %arg3[%c0_4, %c0_5] : memref<1x96xf32, #tpu.memory_space<vmem>>, vector<1x96xf32>
    %5 = vector.broadcast %4 : vector<1x96xf32> to vector<128x96xf32>
    %6 = arith.addf %3, %5 : vector<128x96xf32>
    %7 = vector.extract_strided_slice %6 {offsets = [0, 0], sizes = [128, 8], strides = [1, 1]} : vector<128x96xf32> to vector<128x8xf32>
    %8 = arith.truncf %7 : vector<128x8xf32> to vector<128x8xbf16>
    %9 = vector.extract_strided_slice %6 {offsets = [0, 32], sizes = [128, 8], strides = [1, 1]} : vector<128x96xf32> to vector<128x8xf32>
    %10 = arith.truncf %9 : vector<128x8xf32> to vector<128x8xbf16>
    %11 = vector.extract_strided_slice %6 {offsets = [0, 64], sizes = [128, 8], strides = [1, 1]} : vector<128x96xf32> to vector<128x8xf32>
    %12 = arith.truncf %11 : vector<128x8xf32> to vector<128x8xbf16>
    "tpu.trace_start"() <{level = 10 : i32, message = "mc,nc->mn"}> : () -> ()
    %cst_6 = arith.constant dense<0.000000e+00> : vector<128x128xf32>
    %13 = tpu.matmul %8, %10, %cst_6 {dimension_numbers = #tpu.dot_dimension_numbers<[1], [1], [0], [0], [0, 0, 1, 0], [], []>} : vector<128x8xbf16>, vector<128x8xbf16>, vector<128x128xf32> -> vector<128x128xf32>
    "tpu.trace_stop"() : () -> ()
    %c0_7 = arith.constant 0 : index
    %c0_8 = arith.constant 0 : index
    %c0_9 = arith.constant 0 : index
    %14 = vector.load %arg6[%c0_7, %c0_8, %c0_9] : memref<4x128x128xf32, #tpu.memory_space<vmem>>, vector<1x128x128xf32>
    %15 = vector.shape_cast %14 : vector<1x128x128xf32> to vector<128x128xf32>
    %16 = arith.addf %13, %15 : vector<128x128xf32>
    %cst_10 = arith.constant dense<0xFF800000> : vector<128xf32>
    %17 = vector.multi_reduction <maximumf>, %16, %cst_10 [1] : vector<128x128xf32> to vector<128xf32>
    %18 = vector.shape_cast %17 : vector<128xf32> to vector<128x1xf32>
    %19 = vector.broadcast %18 : vector<128x1xf32> to vector<128x128xf32>
    %20 = arith.subf %16, %19 : vector<128x128xf32>
    %21 = math.exp %20 : vector<128x128xf32>
    %cst_11 = arith.constant dense<0.000000e+00> : vector<128xf32>
    %22 = vector.multi_reduction <add>, %21, %cst_11 [1] : vector<128x128xf32> to vector<128xf32>
    %23 = vector.shape_cast %22 : vector<128xf32> to vector<128x1xf32>
    %24 = tpu.reciprocal %23 {approx = true} : vector<128x1xf32> -> vector<128x1xf32>
    %25 = vector.broadcast %24 : vector<128x1xf32> to vector<128x128xf32>
    %26 = arith.mulf %21, %25 : vector<128x128xf32>
    %27 = arith.truncf %26 : vector<128x128xf32> to vector<128x128xbf16>
    %cst_12 = arith.constant dense<0.000000e+00> : vector<128x8xf32>
    %28 = tpu.matmul %27, %12, %cst_12 {dimension_numbers = #tpu.dot_dimension_numbers<[1], [0], [0], [1], [0, 0, 1, 1], [], []>} : vector<128x128xbf16>, vector<128x8xbf16>, vector<128x8xf32> -> vector<128x8xf32>
    %29 = vector.extract_strided_slice %6 {offsets = [0, 8], sizes = [128, 8], strides = [1, 1]} : vector<128x96xf32> to vector<128x8xf32>
    %30 = arith.truncf %29 : vector<128x8xf32> to vector<128x8xbf16>
    %31 = vector.extract_strided_slice %6 {offsets = [0, 40], sizes = [128, 8], strides = [1, 1]} : vector<128x96xf32> to vector<128x8xf32>
    %32 = arith.truncf %31 : vector<128x8xf32> to vector<128x8xbf16>
    %33 = vector.extract_strided_slice %6 {offsets = [0, 72], sizes = [128, 8], strides = [1, 1]} : vector<128x96xf32> to vector<128x8xf32>
    %34 = arith.truncf %33 : vector<128x8xf32> to vector<128x8xbf16>
    "tpu.trace_start"() <{level = 10 : i32, message = "mc,nc->mn"}> : () -> ()
    %cst_13 = arith.constant dense<0.000000e+00> : vector<128x128xf32>
    %35 = tpu.matmul %30, %32, %cst_13 {dimension_numbers = #tpu.dot_dimension_numbers<[1], [1], [0], [0], [0, 0, 1, 0], [], []>} : vector<128x8xbf16>, vector<128x8xbf16>, vector<128x128xf32> -> vector<128x128xf32>
    "tpu.trace_stop"() : () -> ()
    %c1 = arith.constant 1 : index
    %c0_14 = arith.constant 0 : index
    %c0_15 = arith.constant 0 : index
    %36 = vector.load %arg6[%c1, %c0_14, %c0_15] : memref<4x128x128xf32, #tpu.memory_space<vmem>>, vector<1x128x128xf32>
    %37 = vector.shape_cast %36 : vector<1x128x128xf32> to vector<128x128xf32>
    %38 = arith.addf %35, %37 : vector<128x128xf32>
    %cst_16 = arith.constant dense<0xFF800000> : vector<128xf32>
    %39 = vector.multi_reduction <maximumf>, %38, %cst_16 [1] : vector<128x128xf32> to vector<128xf32>
    %40 = vector.shape_cast %39 : vector<128xf32> to vector<128x1xf32>
    %41 = vector.broadcast %40 : vector<128x1xf32> to vector<128x128xf32>
    %42 = arith.subf %38, %41 : vector<128x128xf32>
    %43 = math.exp %42 : vector<128x128xf32>
    %cst_17 = arith.constant dense<0.000000e+00> : vector<128xf32>
    %44 = vector.multi_reduction <add>, %43, %cst_17 [1] : vector<128x128xf32> to vector<128xf32>
    %45 = vector.shape_cast %44 : vector<128xf32> to vector<128x1xf32>
    %46 = tpu.reciprocal %45 {approx = true} : vector<128x1xf32> -> vector<128x1xf32>
    %47 = vector.broadcast %46 : vector<128x1xf32> to vector<128x128xf32>
    %48 = arith.mulf %43, %47 : vector<128x128xf32>
    %49 = arith.truncf %48 : vector<128x128xf32> to vector<128x128xbf16>
    %cst_18 = arith.constant dense<0.000000e+00> : vector<128x8xf32>
    %50 = tpu.matmul %49, %34, %cst_18 {dimension_numbers = #tpu.dot_dimension_numbers<[1], [0], [0], [1], [0, 0, 1, 1], [], []>} : vector<128x128xbf16>, vector<128x8xbf16>, vector<128x8xf32> -> vector<128x8xf32>
    %51 = vector.extract_strided_slice %6 {offsets = [0, 16], sizes = [128, 8], strides = [1, 1]} : vector<128x96xf32> to vector<128x8xf32>
    %52 = arith.truncf %51 : vector<128x8xf32> to vector<128x8xbf16>
    %53 = vector.extract_strided_slice %6 {offsets = [0, 48], sizes = [128, 8], strides = [1, 1]} : vector<128x96xf32> to vector<128x8xf32>
    %54 = arith.truncf %53 : vector<128x8xf32> to vector<128x8xbf16>
    %55 = vector.extract_strided_slice %6 {offsets = [0, 80], sizes = [128, 8], strides = [1, 1]} : vector<128x96xf32> to vector<128x8xf32>
    %56 = arith.truncf %55 : vector<128x8xf32> to vector<128x8xbf16>
    "tpu.trace_start"() <{level = 10 : i32, message = "mc,nc->mn"}> : () -> ()
    %cst_19 = arith.constant dense<0.000000e+00> : vector<128x128xf32>
    %57 = tpu.matmul %52, %54, %cst_19 {dimension_numbers = #tpu.dot_dimension_numbers<[1], [1], [0], [0], [0, 0, 1, 0], [], []>} : vector<128x8xbf16>, vector<128x8xbf16>, vector<128x128xf32> -> vector<128x128xf32>
    "tpu.trace_stop"() : () -> ()
    %c2 = arith.constant 2 : index
    %c0_20 = arith.constant 0 : index
    %c0_21 = arith.constant 0 : index
    %58 = vector.load %arg6[%c2, %c0_20, %c0_21] : memref<4x128x128xf32, #tpu.memory_space<vmem>>, vector<1x128x128xf32>
    %59 = vector.shape_cast %58 : vector<1x128x128xf32> to vector<128x128xf32>
    %60 = arith.addf %57, %59 : vector<128x128xf32>
    %cst_22 = arith.constant dense<0xFF800000> : vector<128xf32>
    %61 = vector.multi_reduction <maximumf>, %60, %cst_22 [1] : vector<128x128xf32> to vector<128xf32>
    %62 = vector.shape_cast %61 : vector<128xf32> to vector<128x1xf32>
    %63 = vector.broadcast %62 : vector<128x1xf32> to vector<128x128xf32>
    %64 = arith.subf %60, %63 : vector<128x128xf32>
    %65 = math.exp %64 : vector<128x128xf32>
    %cst_23 = arith.constant dense<0.000000e+00> : vector<128xf32>
    %66 = vector.multi_reduction <add>, %65, %cst_23 [1] : vector<128x128xf32> to vector<128xf32>
    %67 = vector.shape_cast %66 : vector<128xf32> to vector<128x1xf32>
    %68 = tpu.reciprocal %67 {approx = true} : vector<128x1xf32> -> vector<128x1xf32>
    %69 = vector.broadcast %68 : vector<128x1xf32> to vector<128x128xf32>
    %70 = arith.mulf %65, %69 : vector<128x128xf32>
    %71 = arith.truncf %70 : vector<128x128xf32> to vector<128x128xbf16>
    %cst_24 = arith.constant dense<0.000000e+00> : vector<128x8xf32>
    %72 = tpu.matmul %71, %56, %cst_24 {dimension_numbers = #tpu.dot_dimension_numbers<[1], [0], [0], [1], [0, 0, 1, 1], [], []>} : vector<128x128xbf16>, vector<128x8xbf16>, vector<128x8xf32> -> vector<128x8xf32>
    %73 = vector.extract_strided_slice %6 {offsets = [0, 24], sizes = [128, 8], strides = [1, 1]} : vector<128x96xf32> to vector<128x8xf32>
    %74 = arith.truncf %73 : vector<128x8xf32> to vector<128x8xbf16>
    %75 = vector.extract_strided_slice %6 {offsets = [0, 56], sizes = [128, 8], strides = [1, 1]} : vector<128x96xf32> to vector<128x8xf32>
    %76 = arith.truncf %75 : vector<128x8xf32> to vector<128x8xbf16>
    %77 = vector.extract_strided_slice %6 {offsets = [0, 88], sizes = [128, 8], strides = [1, 1]} : vector<128x96xf32> to vector<128x8xf32>
    %78 = arith.truncf %77 : vector<128x8xf32> to vector<128x8xbf16>
    "tpu.trace_start"() <{level = 10 : i32, message = "mc,nc->mn"}> : () -> ()
    %cst_25 = arith.constant dense<0.000000e+00> : vector<128x128xf32>
    %79 = tpu.matmul %74, %76, %cst_25 {dimension_numbers = #tpu.dot_dimension_numbers<[1], [1], [0], [0], [0, 0, 1, 0], [], []>} : vector<128x8xbf16>, vector<128x8xbf16>, vector<128x128xf32> -> vector<128x128xf32>
    "tpu.trace_stop"() : () -> ()
    %c3 = arith.constant 3 : index
    %c0_26 = arith.constant 0 : index
    %c0_27 = arith.constant 0 : index
    %80 = vector.load %arg6[%c3, %c0_26, %c0_27] : memref<4x128x128xf32, #tpu.memory_space<vmem>>, vector<1x128x128xf32>
    %81 = vector.shape_cast %80 : vector<1x128x128xf32> to vector<128x128xf32>
    %82 = arith.addf %79, %81 : vector<128x128xf32>
    %cst_28 = arith.constant dense<0xFF800000> : vector<128xf32>
    %83 = vector.multi_reduction <maximumf>, %82, %cst_28 [1] : vector<128x128xf32> to vector<128xf32>
    %84 = vector.shape_cast %83 : vector<128xf32> to vector<128x1xf32>
    %85 = vector.broadcast %84 : vector<128x1xf32> to vector<128x128xf32>
    %86 = arith.subf %82, %85 : vector<128x128xf32>
    %87 = math.exp %86 : vector<128x128xf32>
    %cst_29 = arith.constant dense<0.000000e+00> : vector<128xf32>
    %88 = vector.multi_reduction <add>, %87, %cst_29 [1] : vector<128x128xf32> to vector<128xf32>
    %89 = vector.shape_cast %88 : vector<128xf32> to vector<128x1xf32>
    %90 = tpu.reciprocal %89 {approx = true} : vector<128x1xf32> -> vector<128x1xf32>
    %91 = vector.broadcast %90 : vector<128x1xf32> to vector<128x128xf32>
    %92 = arith.mulf %87, %91 : vector<128x128xf32>
    %93 = arith.truncf %92 : vector<128x128xf32> to vector<128x128xbf16>
    %cst_30 = arith.constant dense<0.000000e+00> : vector<128x8xf32>
    %94 = tpu.matmul %93, %78, %cst_30 {dimension_numbers = #tpu.dot_dimension_numbers<[1], [0], [0], [1], [0, 0, 1, 1], [], []>} : vector<128x128xbf16>, vector<128x8xbf16>, vector<128x8xf32> -> vector<128x8xf32>
    %95 = tpu.concatenate %28, %50, %72, %94 in 1 : vector<128x8xf32>, vector<128x8xf32>, vector<128x8xf32>, vector<128x8xf32> -> vector<128x32xf32>
    %96 = arith.truncf %95 : vector<128x32xf32> to vector<128x32xbf16>
    %c0_31 = arith.constant 0 : index
    %c0_32 = arith.constant 0 : index
    %97 = vector.load %arg4[%c0_31, %c0_32] : memref<32x32xbf16, #tpu.memory_space<vmem>>, vector<32x32xbf16>
    %cst_33 = arith.constant dense<0.000000e+00> : vector<128x32xf32>
    %98 = tpu.matmul %96, %97, %cst_33 {dimension_numbers = #tpu.dot_dimension_numbers<[1], [0], [0], [1], [0, 0, 1, 1], [], []>} : vector<128x32xbf16>, vector<32x32xbf16>, vector<128x32xf32> -> vector<128x32xf32>
    %c0_34 = arith.constant 0 : index
    %c0_35 = arith.constant 0 : index
    %99 = vector.load %arg5[%c0_34, %c0_35] : memref<1x32xf32, #tpu.memory_space<vmem>>, vector<1x32xf32>
    %100 = vector.broadcast %99 : vector<1x32xf32> to vector<128x32xf32>
    %101 = arith.addf %98, %100 : vector<128x32xf32>
    %102 = vector.shape_cast %101 : vector<128x32xf32> to vector<8x16x32xf32>
    %c0_36 = arith.constant 0 : index
    %c0_37 = arith.constant 0 : index
    %c0_38 = arith.constant 0 : index
    %103 = vector.load %arg7[%c0_36, %c0_37, %c0_38] : memref<8x16x32xf32, #tpu.memory_space<vmem>>, vector<8x16x32xf32>
    tpu.vector_store %arg7[%c0_36, %c0_37, %c0_38], %102 {strides = array<i32>} : memref<8x16x32xf32, #tpu.memory_space<vmem>>, vector<8x16x32xf32>,
    return
  }
  func.func @transform_0(%arg0: i32) -> (i32, i32, i32) {
    %c0_i32 = arith.constant 0 : i32
    %c0_i32_0 = arith.constant 0 : i32
    %c0_i32_1 = arith.constant 0 : i32
    return %arg0, %c0_i32, %c0_i32_0 : i32, i32, i32
  }
  func.func @transform_1(%arg0: i32) -> (i32, i32) {
    %c0_i32 = arith.constant 0 : i32
    %c0_i32_0 = arith.constant 0 : i32
    %c0_i32_1 = arith.constant 0 : i32
    return %c0_i32, %c0_i32_0 : i32, i32
  }
  func.func @transform_2(%arg0: i32) -> (i32, i32) {
    %c0_i32 = arith.constant 0 : i32
    %c0_i32_0 = arith.constant 0 : i32
    %c0_i32_1 = arith.constant 0 : i32
    return %c0_i32, %c0_i32_0 : i32, i32
  }
  func.func @transform_3(%arg0: i32) -> (i32, i32) {
    %c0_i32 = arith.constant 0 : i32
    %c0_i32_0 = arith.constant 0 : i32
    %c0_i32_1 = arith.constant 0 : i32
    return %c0_i32, %c0_i32_0 : i32, i32
  }
  func.func @transform_4(%arg0: i32) -> (i32, i32) {
    %c0_i32 = arith.constant 0 : i32
    %c0_i32_0 = arith.constant 0 : i32
    %c0_i32_1 = arith.constant 0 : i32
    return %c0_i32, %c0_i32_0 : i32, i32
  }
  func.func @transform_5(%arg0: i32) -> (i32, i32, i32) {
    %c0_i32 = arith.constant 0 : i32
    %c0_i32_0 = arith.constant 0 : i32
    %c0_i32_1 = arith.constant 0 : i32
    %c0_i32_2 = arith.constant 0 : i32
    return %c0_i32, %c0_i32_0, %c0_i32_1 : i32, i32, i32
  }
  func.func @transform_6(%arg0: i32) -> (i32, i32, i32) {
    %c0_i32 = arith.constant 0 : i32
    %c0_i32_0 = arith.constant 0 : i32
    %c0_i32_1 = arith.constant 0 : i32
    return %arg0, %c0_i32, %c0_i32_0 : i32, i32, i32
  }
}

</mosaic_0001>

<bundles_post_ra>
// kernel: tpu_custom_call.1
= control target key start
LH: loop header
LB: loop body
LE: loop exit
PB: predicated region body
PF: predicated region fallthrough
CT: control target
= control target key end

     0   :  { %11 = vsyncpa [#allocation3], 0  ;;  %s4906_s0 = inlined_call_operand.hbm [shape: bf16[8,16,32], index: 0, kind: input, shape index: {}]   ;;  %s4907_s1 = inlined_call_operand.hbm [shape: bf16[32,96], index: 1, kind: input, shape index: {}]   ;;  %s4908_s2 = inlined_call_operand.vmem [shape: f32[1,96], index: 2, kind: input, shape index: {}]   ;;  %s4909_s3 = inlined_call_operand.hbm [shape: bf16[32,32], index: 3, kind: input, shape index: {}]   ;;  %s4910_s4 = inlined_call_operand.vmem [shape: f32[1,32], index: 4, kind: input, shape index: {}]   ;;  %s4911_s5 = inlined_call_operand.hbm [shape: f32[4,128,128], index: 5, kind: input, shape index: {}]   ;;  %s4912_s6 = inlined_call_operand.hbm [shape: f32[8,16,32], index: 6, kind: output, shape index: {}]  }
   0x1   :  { %12 = vsyncpa [#allocation6], 0 }
   0x2   :  { %13 = vsyncpa [#allocation9], 0 }
   0x3   :  { %14 = vsyncpa [#allocation4], 0  ;;  %s3659_s21 = smov [#allocation5]   ;;  %s3660_s23 = smov [#allocation2]  }
   0x4   :  { %s32_s22 = sshll.u32 %s3659_s21, 4  ;;  %s20_s24 = sshll.u32 %s3660_s23, 4  ;;  %s33_s22 = int_to_ptr.vmem [resolvable:$true] %s32_s22  ;;  %s3715_s24 = int_to_ptr.vmem [resolvable:$true] %s20_s24 }
   0x5   :  { %s3541_s27 = scalar_lea.hbm %s4907_s1, 256 }
   0x6   :  { %p3542_p0 = scmp.ne.s32.totalorder %s4907_s1, %s3541_s27  ;;  %p3545_p1 = scmp.lt.u32.totalorder %s3541_s27, %s4907_s1 }
   0x8   :  { %p3547_p2 = pnand %p3545_p1, %p3542_p0 }
   0xa   :  { %3550 = shalt.err (!%p3547_p2)
}
   0xb   :  { %s3551_s8 = scalar_lea.vmem %s33_s22, 256  ;;  %p3556_p4 = scmp.lt.s32.totalorder %s33_s22, %s33_s22 }
   0xc   :  { %p3552_p3 = scmp.ne.s32.totalorder %s33_s22, %s3551_s8  ;;  %p3557_p5 = scmp.lt.s32.totalorder %s3551_s8, %s3551_s8 }
   0xe   :  { %p3558_p6 = por %p3557_p5, %p3556_p4 }
  0x10   :  { %p3559_p7 = pnand %p3558_p6, %p3552_p3 }
  0x12   :  { %3562 = shalt.err (!%p3559_p7)
}
  0x13   :  { %s3661_s9 = smov 64   ;;  %s3662_s10 = smov 4  }
  0x14   :  { %38 = dma.hbm_to_vmem [thread:$0]  %s4907_s1, 256, %s33_s22, [#allocation6], %s3661_s9, %s3661_s9, %s3662_s10  }
  0x15   :  { %s3563_s15 = scalar_lea.hbm %s4906_s0, 1024 }
  0x16   :  { %p3564_p8 = scmp.ne.s32.totalorder %s4906_s0, %s3563_s15  ;;  %p3567_p9 = scmp.lt.u32.totalorder %s3563_s15, %s4906_s0 }
  0x18   :  { %p3569_p10 = pnand %p3567_p9, %p3564_p8 }
  0x1a   :  { %3572 = shalt.err (!%p3569_p10)
}
  0x1b   :  { %s3573_s20 = scalar_lea.vmem %s3715_s24, 1024  ;;  %p3578_p12 = scmp.lt.s32.totalorder %s3715_s24, %s3715_s24 }
  0x1c   :  { %p3574_p11 = scmp.ne.s32.totalorder %s3715_s24, %s3573_s20  ;;  %p3579_p13 = scmp.lt.s32.totalorder %s3573_s20, %s3573_s20 }
  0x1e   :  { %p3580_p0 = por %p3579_p13, %p3578_p12 }
  0x20   :  { %p3581_p1 = pnand %p3580_p0, %p3574_p11 }
  0x22   :  { %3584 = shalt.err (!%p3581_p1)
}
  0x23   :  { %26 = dma.hbm_to_vmem [thread:$0]  %s4906_s0, 1024, %s3715_s24, [#allocation3], %s3661_s9, %s3661_s9, %s3662_s10  }
  0x24   :  { %s3663_s22 = smov [#allocation7]   ;;  %s3664_s25 = smov [#allocation8]  }
  0x25   :  { %s46_s23 = sshll.u32 %s3663_s22, 4  ;;  %s60_s26 = sshll.u32 %s3664_s25, 4  ;;  %s47_s23 = int_to_ptr.vmem [resolvable:$true] %s46_s23  ;;  %s3752_s26 = int_to_ptr.vmem [resolvable:$true] %s60_s26 }
  0x26   :  { %s3585_s29 = scalar_lea.hbm %s4909_s3, 256 }
  0x27   :  { %p3586_p2 = scmp.ne.s32.totalorder %s4909_s3, %s3585_s29  ;;  %p3589_p3 = scmp.lt.u32.totalorder %s3585_s29, %s4909_s3 }
  0x29   :  { %p3591_p4 = pnand %p3589_p3, %p3586_p2 }
  0x2b   :  { %3594 = shalt.err (!%p3591_p4)
}
  0x2c   :  { %s3595_s0 = scalar_lea.vmem %s47_s23, 256  ;;  %p3600_p6 = scmp.lt.s32.totalorder %s47_s23, %s47_s23 }
  0x2d   :  { %p3596_p5 = scmp.ne.s32.totalorder %s47_s23, %s3595_s0  ;;  %p3601_p7 = scmp.lt.s32.totalorder %s3595_s0, %s3595_s0 }
  0x2f   :  { %p3602_p8 = por %p3601_p7, %p3600_p6 }
  0x31   :  { %p3603_p9 = pnand %p3602_p8, %p3596_p5 }
  0x33   :  { %3606 = shalt.err (!%p3603_p9)
}
  0x34   :  { %52 = dma.hbm_to_vmem [thread:$0]  %s4909_s3, 256, %s47_s23, [#allocation6], %s3661_s9, %s3661_s9, %s3662_s10  }
  0x35   :  { %s3607_s15 = scalar_lea.hbm %s4911_s5, 8192 }
  0x36   :  { %p3608_p10 = scmp.ne.s32.totalorder %s4911_s5, %s3607_s15  ;;  %p3611_p11 = scmp.lt.u32.totalorder %s3607_s15, %s4911_s5 }
  0x38   :  { %p3613_p12 = pnand %p3611_p11, %p3608_p10 }
  0x3a   :  { %3616 = shalt.err (!%p3613_p12)
}
  0x3b   :  { %s3617_s20 = scalar_lea.vmem %s3752_s26, 8192  ;;  %p3622_p0 = scmp.lt.s32.totalorder %s3752_s26, %s3752_s26 }
  0x3c   :  { %p3618_p13 = scmp.ne.s32.totalorder %s3752_s26, %s3617_s20  ;;  %p3623_p1 = scmp.lt.s32.totalorder %s3617_s20, %s3617_s20 }
  0x3e   :  { %p3624_p2 = por %p3623_p1, %p3622_p0 }
  0x40   :  { %p3625_p3 = pnand %p3624_p2, %p3618_p13 }
  0x42   :  { %3628 = shalt.err (!%p3625_p3)
}
  0x43   :  { %s3665_s3 = smov 128   ;;  %s3666_s10 = smov 8  }
  0x44   :  { %66 = dma.hbm_to_vmem [thread:$0]  %s4911_s5, 8192, %s3752_s26, [#allocation9], %s3665_s3, %s3665_s3, %s3666_s10  }
  0x45   :  { %3651 = dma.done.wait [#allocation3], 1024  }
  0x46   :  { %3652 = vsyncadd [#allocation3], 4294966272 }
  0x47   :  { %3653 = dma.done.wait [#allocation6], 512  }
  0x48   :  { %3654 = vsyncadd [#allocation6], 4294966784 }
  0x49   :  { %3655 = dma.done.wait [#allocation9], 8192  }
  0x4a   :  { %3656 = vsyncadd [#allocation9], 4294959104  ;;  %v3273_v0 = vld [vmem:[#allocation5] sm:$0xff]   ;;  %v3274_v1 = vld [vmem:[#allocation5 + $0x8] sm:$0xff]   ;;  %vm159_vm0 = vcmask 261120   ;;  %vm329_vm1 = vcmask 64512  }
  0x4b   :  { %2788 = vmatprep.subr.bf16.mxu0 %v3273_v0  ;;  %v3275_v2 = vld [vmem:[#allocation2] sm:$0xff]   ;;  %v3276_v3 = vld [vmem:[#allocation2 + $0x8] sm:$0xff]   ;;  %v3277_v4 = vld [vmem:[#allocation2 + $0x10] sm:$0xff]   ;;  %s3667_s23 = smov 96   ;;  %s3670_s25 = smov 56   ;;  %vm2357_vm2 = vcmask 130048  }
  0x4c   :  { %2789 = vmatpush3.bf16.msra.mxu0 %v3273_v0  ;;  %2792 = vmatprep.mubr.msk.bf16.mxu0 %vm159_vm0, %v3275_v2  ;;  %v3278_v5 = vld [vmem:[#allocation2 + $0x18] sm:$0xff]   ;;  %v3279_v6 = vld [vmem:[#allocation2 + $0x20] sm:$0xff]   ;;  %v3280_v7 = vld [vmem:[#allocation2 + $0x28] sm:$0xff]   ;;  %s3671_s26 = smov 80   ;;  %s3672_s27 = smov 112   ;;  %vm2374_vm3 = vcmask 195584  }
  0x4d   :  { %2790 = vmatprep.subr.bf16.mxu0 %v3274_v1  ;;  %v3281_v8 = vld [vmem:[#allocation2 + $0x30] sm:$0xff]   ;;  %v3282_v9 = vld [vmem:[#allocation2 + $0x38] sm:$0xff]   ;;  %v2578_v11 = vld [vmem:[%s4908_s2] ss:$0 sm:$0xff]  ;;  %s3668_s2 = smov 88   ;;  %s3673_s28 = smov 48  }
  0x4e   :  { %s3674_s29 = smov 72   ;;  %s3675_s30 = smov 104  }
  0x4f   :  { %s3676_s7 = smov 40   ;;  %s3677_s8 = smov 16  }
  0x50   :  { %2791 = vmatpush3.bf16.msra.mxu0 %v3274_v1  ;;  %s3678_s11 = smov 24  }
  0x53   :  { %2793 = vmatmul.mubr.msk.bf16.vlgmr.msra.gmra.mrb[0].mxu0 %vm159_vm0, %v3276_v3 }
  0x54   :  { %2796 = vmatprep.mubr.msk.bf16.mxu0 %vm159_vm0, %v3277_v4 }
  0x5b   :  { %2797 = vmatmul.mubr.msk.bf16.gmra.mrb[4].mxu0 %vm159_vm0, %v3278_v5 }
  0x5c   :  { %2800 = vmatprep.mubr.msk.bf16.mxu0 %vm159_vm0, %v3279_v6 }
  0x63   :  { %2801 = vmatmul.mubr.msk.bf16.gmra.mrb[8].mxu0 %vm159_vm0, %v3280_v7 }
  0x64   :  { %2804 = vmatprep.mubr.msk.bf16.mxu0 %vm159_vm0, %v3281_v8 }
  0x6b   :  { %2805 = vmatmul.mubr.msk.bf16.gmra.mrb[12].mxu0 %vm159_vm0, %v3282_v9 }
 0x126   :  { %v2794_v10 = vpop.f32.mrb[0].mxu0 }
 0x127   :  { %v218_v12 = vpop.f32.mrb[1].mxu0  ;;  %v227_v14 = vadd.f32 %v2794_v10, %v2578_v11 }
 0x128   :  { %v2795_v13 = vpop.f32.mrb[2].mxu0  ;;  %v219_v17 = vadd.f32 %v2578_v11, %v218_v12 }
 0x129   :  { %v230_v15 = vadd.f32 %v2795_v13, %v2578_v11  ;;  %v221_v16 = vpop.f32.mrb[3].mxu0 }
 0x12a   :  { %v222_v18 = vadd.f32 %v2578_v11, %v221_v16  ;;  %v289_v16 = vld [vmem:[#allocation8] sm:$0xff] }
 0x12b   :  { %v3800_v19 = vpack.c.bf16 %v230_v15, %v227_v14  ;;  %v290_v15 = vld [vmem:[#allocation8 + $0x8] sm:$0xff] }
 0x12c   :  { %v3802_v20 = vpack.c.bf16 %v222_v18, %v219_v17 }
 0x12e   :  { %313 = vrot.lane.b32.xlu0 %v3802_v20, %s3667_s23  ;;  %2824 = vmatprep.mubr.msk.bf16.mxu1 %vm329_vm1, %v3802_v20  ;;  %v2798_v21 = vpop.f32.mrb[4].mxu0 }
 0x12f   :  { %v243_v22 = vadd.f32 %v2798_v21, %v2578_v11  ;;  %v234_v23 = vpop.f32.mrb[5].mxu0 }
 0x130   :  { %v235_v24 = vadd.f32 %v2578_v11, %v234_v23  ;;  %v2799_v25 = vpop.f32.mrb[6].mxu0  ;;  %v292_v23 = vld [vmem:[#allocation8 + $0x18] sm:$0xff] }
 0x131   :  { %v246_v26 = vadd.f32 %v2799_v25, %v2578_v11  ;;  %v237_v27 = vpop.f32.mrb[7].mxu0 }
 0x132   :  { %v238_v28 = vadd.f32 %v2578_v11, %v237_v27  ;;  %315 = vrot.lane.b32.xlu0 %v3800_v19, %s3667_s23 }
 0x133   :  { %v3810_v29 = vpack.c.bf16 %v246_v26, %v243_v22 }
 0x134   :  { %v3812_v30 = vpack.c.bf16 %v238_v28, %v235_v24 }
 0x136   :  { %317 = vrot.lane.b32.xlu1 %v3812_v30, %s3667_s23  ;;  %v2802_v31 = vpop.f32.mrb[8].mxu0 }
 0x137   :  { %v259_v32 = vadd.f32 %v2802_v31, %v2578_v11  ;;  %v250_v33 = vpop.f32.mrb[9].mxu0 }
 0x138   :  { %v251_v34 = vadd.f32 %v2578_v11, %v250_v33  ;;  %v2803_v35 = vpop.f32.mrb[10].mxu0 }
 0x139   :  { %v262_v36 = vadd.f32 %v2803_v35, %v2578_v11  ;;  %v253_v37 = vpop.f32.mrb[11].mxu0 }
 0x13a   :  { %319 = vrot.lane.b32.xlu1 %v3810_v29, %s3667_s23  ;;  %v254_v38 = vadd.f32 %v2578_v11, %v253_v37 }
 0x13b   :  { %v3818_v39 = vpack.c.bf16 %v262_v36, %v259_v32 }
 0x13c   :  { %v3820_v40 = vpack.c.bf16 %v254_v38, %v251_v34 }
 0x13e   :  { %v2806_v41 = vpop.f32.mrb[12].mxu0  ;;  %323 = vrot.lane.b32.xlu1 %v3818_v39, %s3667_s23  ;;  %321 = vrot.lane.b32.xlu0 %v3820_v40, %s3667_s23 }
 0x13f   :  { %v275_v42 = vadd.f32 %v2806_v41, %v2578_v11  ;;  %v266_v43 = vpop.f32.mrb[13].mxu0  ;;  %v295_v41 = vld [vmem:[#allocation8 + $0x30] sm:$0xff] }
 0x140   :  { %v267_v44 = vadd.f32 %v2578_v11, %v266_v43  ;;  %v2807_v45 = vpop.f32.mrb[14].mxu0  ;;  %v293_v43 = vld [vmem:[#allocation8 + $0x20] sm:$0xff] }
 0x141   :  { %v278_v46 = vadd.f32 %v2807_v45, %v2578_v11  ;;  %v269_v47 = vpop.f32.mrb[15].mxu0 }
 0x142   :  { %v270_v48 = vadd.f32 %v2578_v11, %v269_v47  ;;  %v291_v11 = vld [vmem:[#allocation8 + $0x10] sm:$0xff] }
 0x143   :  { %v3826_v49 = vpack.c.bf16 %v278_v46, %v275_v42  ;;  %v299_v47 = vld [vmem:[#allocation8 + $0x50] sm:$0xff] }
 0x144   :  { %v3828_v50 = vpack.c.bf16 %v270_v48, %v267_v44  ;;  %v296_v44 = vld [vmem:[#allocation8 + $0x38] sm:$0xff]  ;;  %v294_v48 = vld [vmem:[#allocation8 + $0x28] sm:$0xff] }
 0x145   :  { %327 = vrot.lane.b32.xlu1 %v3826_v49, %s3667_s23 }
 0x146   :  { %325 = vrot.lane.b32.xlu0 %v3828_v50, %s3667_s23 }
 0x149   :  { %627 = vrot.lane.b32.xlu1 %v3802_v20, %s3661_s9 }
 0x14a   :  { %629 = vrot.lane.b32.xlu0 %v3800_v19, %s3661_s9 }
 0x14d   :  { %631 = vrot.lane.b32.xlu1 %v3812_v30, %s3661_s9 }
 0x14e   :  { %633 = vrot.lane.b32.xlu0 %v3810_v29, %s3661_s9 }
 0x151   :  { %635 = vrot.lane.b32.xlu1 %v3820_v40, %s3661_s9 }
 0x155   :  { %637 = vrot.lane.b32.xlu1 %v3818_v39, %s3661_s9 }
 0x159   :  { %641 = vrot.lane.b32.xlu1 %v3826_v49, %s3661_s9 }
 0x15d   :  { %639 = vrot.lane.b32.xlu1 %v3828_v50, %s3661_s9  ;;  %s3669_s9 = smov 120  }
 0x1a0   :  { %v314_v51 = vpop.permute.xlu0 %313 }
 0x1a1   :  { %3100 = vmatprep.subr.msk.bf16.mxu1 %vm329_vm1, %v314_v51  ;;  %v355_v52 = vsel %vm329_vm1, %v314_v51, 0 }
 0x1a2   :  { %2809 = vmatpush3.bf16.xpose.msra.mxu1 %v355_v52 }
 0x1a4   :  { %v316_v53 = vpop.permute.xlu0 %315 }
 0x1a5   :  { %3101 = vmatprep.subr.msk.bf16.mxu1 %vm329_vm1, %v316_v53  ;;  %v358_v55 = vsel %vm329_vm1, %v316_v53, 0  ;;  %v297_v53 = vld [vmem:[#allocation8 + $0x40] sm:$0xff] }
 0x1a8   :  { %v318_v54 = vpop.permute.xlu1 %317 }
 0x1a9   :  { %v361_v57 = vsel %vm329_vm1, %v318_v54, 0 }
 0x1aa   :  { %2811 = vmatpush3.bf16.xpose.msra.mxu1 %v358_v55 }
 0x1ab   :  { %3102 = vmatprep.subr.msk.bf16.mxu1 %vm329_vm1, %v318_v54  ;;  %v300_v54 = vld [vmem:[#allocation8 + $0x58] sm:$0xff] }
 0x1ac   :  { %v320_v56 = vpop.permute.xlu1 %319 }
 0x1ad   :  { %v364_v62 = vsel %vm329_vm1, %v320_v56, 0 }
 0x1b0   :  { %v324_v58 = vpop.permute.xlu1 %323  ;;  %v322_v59 = vpop.permute.xlu0 %321 }
 0x1b1   :  { %v367_v2 = vsel %vm329_vm1, %v322_v59, 0  ;;  %v370_v6 = vsel %vm329_vm1, %v324_v58, 0 }
 0x1b2   :  { %2813 = vmatpush3.bf16.xpose.msra.mxu1 %v361_v57  ;;  %v303_v57 = vld [vmem:[#allocation8 + $0x70] sm:$0xff] }
 0x1b3   :  { %3103 = vmatprep.subr.msk.bf16.mxu1 %vm329_vm1, %v320_v56 }
 0x1b7   :  { %v328_v60 = vpop.permute.xlu1 %327 }
 0x1b8   :  { %v326_v61 = vpop.permute.xlu0 %325  ;;  %v376_v10 = vsel %vm329_vm1, %v328_v60, 0 }
 0x1b9   :  { %v373_v9 = vsel %vm329_vm1, %v326_v61, 0 }
 0x1ba   :  { %2815 = vmatpush3.bf16.xpose.msra.mxu1 %v364_v62  ;;  %v304_v62 = vld [vmem:[#allocation8 + $0x78] sm:$0xff] }
 0x1bb   :  { %v628_v63 = vpop.permute.xlu1 %627  ;;  %3104 = vmatprep.subr.msk.bf16.mxu1 %vm329_vm1, %v322_v59 }
 0x1bc   :  { %2840 = vmatprep.subr.bf16.mxu0 %v628_v63  ;;  %v630_v0 = vpop.permute.xlu0 %629 }
 0x1bd   :  { %2841 = vmatpush3.bf16.msra.mxu0 %v628_v63 }
 0x1be   :  { %2842 = vmatprep.subr.bf16.mxu0 %v630_v0 }
 0x1bf   :  { %v632_v1 = vpop.permute.xlu1 %631 }
 0x1c0   :  { %v634_v4 = vpop.permute.xlu0 %633 }
 0x1c1   :  { %2843 = vmatpush3.bf16.msra.mxu0 %v630_v0 }
 0x1c2   :  { %2817 = vmatpush3.bf16.xpose.msra.mxu1 %v367_v2  ;;  %2844 = vmatprep.subr.bf16.mxu0 %v632_v1 }
 0x1c3   :  { %v636_v3 = vpop.permute.xlu1 %635  ;;  %3105 = vmatprep.subr.msk.bf16.mxu1 %vm329_vm1, %v324_v58  ;;  %v298_v58 = vld [vmem:[#allocation8 + $0x48] sm:$0xff] }
 0x1c5   :  { %2845 = vmatpush3.bf16.msra.mxu0 %v632_v1  ;;  %v302_v1 = vld [vmem:[#allocation8 + $0x68] sm:$0xff] }
 0x1c6   :  { %2846 = vmatprep.subr.bf16.mxu0 %v634_v4 }
 0x1c7   :  { %v638_v5 = vpop.permute.xlu1 %637 }
 0x1c9   :  { %2847 = vmatpush3.bf16.msra.mxu0 %v634_v4 }
 0x1ca   :  { %2819 = vmatpush3.bf16.xpose.msra.mxu1 %v370_v6  ;;  %2848 = vmatprep.subr.bf16.mxu0 %v636_v3 }
 0x1cb   :  { %v642_v7 = vpop.permute.xlu1 %641  ;;  %3106 = vmatprep.subr.msk.bf16.mxu1 %vm329_vm1, %v326_v61  ;;  %v301_v61 = vld [vmem:[#allocation8 + $0x60] sm:$0xff] }
 0x1cd   :  { %2849 = vmatpush3.bf16.msra.mxu0 %v636_v3 }
 0x1ce   :  { %2850 = vmatprep.subr.bf16.mxu0 %v638_v5 }
 0x1cf   :  { %v640_v8 = vpop.permute.xlu1 %639 }
 0x1d1   :  { %2851 = vmatpush3.bf16.msra.mxu0 %v638_v5 }
 0x1d2   :  { %2821 = vmatpush3.bf16.xpose.msra.mxu1 %v373_v9  ;;  %2852 = vmatprep.subr.bf16.mxu0 %v640_v8 }
 0x1d3   :  { %3107 = vmatprep.subr.msk.bf16.mxu1 %vm329_vm1, %v328_v60 }
 0x1d5   :  { %2853 = vmatpush3.bf16.msra.mxu0 %v640_v8 }
 0x1d6   :  { %2854 = vmatprep.subr.bf16.mxu0 %v642_v7 }
 0x1d9   :  { %2855 = vmatpush3.bf16.msra.mxu0 %v642_v7 }
 0x1da   :  { %2823 = vmatpush3.bf16.xpose.msra.mxu1 %v376_v10 }
 0x1e1   :  { %2825 = vmatmul.mubr.msk.bf16.vlgmr.msra.gmra.mrb[0].mxu1 %vm329_vm1, %v3800_v19 }
 0x1e2   :  { %2828 = vmatprep.mubr.msk.bf16.mxu1 %vm329_vm1, %v3812_v30 }
 0x1e9   :  { %2829 = vmatmul.mubr.msk.bf16.gmra.mrb[4].mxu1 %vm329_vm1, %v3810_v29 }
 0x1ea   :  { %2832 = vmatprep.mubr.msk.bf16.mxu1 %vm329_vm1, %v3820_v40 }
 0x1f1   :  { %2833 = vmatmul.mubr.msk.bf16.gmra.mrb[8].mxu1 %vm329_vm1, %v3818_v39 }
 0x1f2   :  { %2836 = vmatprep.mubr.msk.bf16.mxu1 %vm329_vm1, %v3828_v50 }
 0x1f9   :  { %2837 = vmatmul.mubr.msk.bf16.gmra.mrb[12].mxu1 %vm329_vm1, %v3826_v49 }
 0x2b4   :  { %v2826_v12 = vpop.f32.mrb[0].mxu1 }
 0x2b5   :  { %v3880_v13 = vadd.f32 %v2826_v12, %v291_v11  ;;  %v412_v14 = vpop.f32.mrb[1].mxu1 }
 0x2b6   :  { %v2827_v17 = vpop.f32.mrb[2].mxu1  ;;  %v3885_v22 = vadd.f32 %v412_v14, %v289_v16 }
 0x2b7   :  { %479 = vmax.xlane.f32.xlu0 %v3880_v13  ;;  %v415_v18 = vpop.f32.mrb[3].mxu1  ;;  %v3889_v25 = vadd.f32 %v2827_v17, %v292_v23 }
 0x2b8   :  { %v3883_v21 = vadd.f32 %v415_v18, %v290_v15 }
 0x2ba   :  { %477 = vmax.xlane.f32.xlu1 %v3883_v21 }
 0x2bb   :  { %475 = vmax.xlane.f32.xlu0 %v3885_v22 }
 0x2bc   :  { %v2830_v24 = vpop.f32.mrb[4].mxu1 }
 0x2bd   :  { %v428_v26 = vpop.f32.mrb[5].mxu1  ;;  %v3896_v42 = vadd.f32 %v2830_v24, %v295_v41 }
 0x2be   :  { %v2831_v27 = vpop.f32.mrb[6].mxu1  ;;  %v3899_v45 = vadd.f32 %v428_v26, %v293_v43 }
 0x2bf   :  { %v431_v28 = vpop.f32.mrb[7].mxu1  ;;  %481 = vmax.xlane.f32.xlu0 %v3889_v25  ;;  %v3901_v46 = vadd.f32 %v2831_v27, %v296_v44 }
 0x2c0   :  { %v3907_v52 = vadd.f32 %v431_v28, %v294_v48 }
 0x2c4   :  { %v2834_v31 = vpop.f32.mrb[8].mxu1 }
 0x2c5   :  { %v444_v32 = vpop.f32.mrb[9].mxu1  ;;  %v3905_v51 = vadd.f32 %v2834_v31, %v299_v47 }
 0x2c6   :  { %v2835_v33 = vpop.f32.mrb[10].mxu1  ;;  %v3911_v55 = vadd.f32 %v444_v32, %v297_v53 }
 0x2c7   :  { %v447_v34 = vpop.f32.mrb[11].mxu1  ;;  %v3913_v56 = vadd.f32 %v2835_v33, %v300_v54 }
 0x2c8   :  { %v3919_v60 = vadd.f32 %v447_v34, %v298_v58 }
 0x2cb   :  { %783 = vrot.lane.b32.xlu1 %v3800_v19, %s3668_s2 }
 0x2cc   :  { %v2838_v35 = vpop.f32.mrb[12].mxu1 }
 0x2cd   :  { %v460_v36 = vpop.f32.mrb[13].mxu1  ;;  %v3917_v59 = vadd.f32 %v2838_v35, %v303_v57 }
 0x2ce   :  { %v2839_v37 = vpop.f32.mrb[14].mxu1  ;;  %v3923_v63 = vadd.f32 %v460_v36, %v301_v61 }
 0x2cf   :  { %v463_v38 = vpop.f32.mrb[15].mxu1  ;;  %v3925_v0 = vadd.f32 %v2839_v37, %v304_v62 }
 0x2d0   :  { %v3929_v2 = vadd.f32 %v463_v38, %v302_v1 }
 0x2d5   :  { %781 = vrot.lane.b32.xlu0 %v3802_v20, %s3668_s2 }
 0x2ef   :  { %487 = vmax.xlane.f32.xlu1 %v3896_v42 }
 0x2f3   :  { %483 = vmax.xlane.f32.xlu1 %v3899_v45 }
 0x2f4   :  { %489 = vmax.xlane.f32.xlu0 %v3901_v46 }
 0x2f7   :  { %495 = vmax.xlane.f32.xlu1 %v3905_v51 }
 0x2f8   :  { %485 = vmax.xlane.f32.xlu0 %v3907_v52 }
 0x2fb   :  { %491 = vmax.xlane.f32.xlu1 %v3911_v55 }
 0x2fc   :  { %497 = vmax.xlane.f32.xlu0 %v3913_v56 }
 0x2ff   :  { %503 = vmax.xlane.f32.xlu1 %v3917_v59 }
 0x300   :  { %493 = vmax.xlane.f32.xlu0 %v3919_v60 }
 0x303   :  { %499 = vmax.xlane.f32.xlu1 %v3923_v63 }
 0x304   :  { %505 = vmax.xlane.f32.xlu0 %v3925_v0 }
 0x308   :  { %501 = vmax.xlane.f32.xlu0 %v3929_v2 }
 0x314   :  { %785 = vrot.lane.b32.xlu1 %v3812_v30, %s3668_s2 }
 0x344   :  { %v480_v3 = vpop.xlane.xlu0 %479 }
 0x345   :  { %v509_v4 = vsub.f32 %v3880_v13, %v480_v3 }
 0x347   :  { %v527_v5 = vmul.f32 1.442695, %v509_v4  ;;  %v478_v8 = vpop.xlane.xlu1 %477 }
 0x348   :  { %v476_v6 = vpop.xlane.xlu0 %475  ;;  %v508_v11 = vsub.f32 %v3883_v21, %v478_v8 }
 0x349   :  { %3285 = vpow2.f32 %v527_v5  ;;  %v507_v7 = vsub.f32 %v3885_v22, %v476_v6 }
 0x34a   :  { %v525_v16 = vmul.f32 1.442695, %v508_v11 }
 0x34b   :  { %v523_v9 = vmul.f32 1.442695, %v507_v7  ;;  %v3954_v22 = vpop.permute.xlu1 %783 }
 0x34c   :  { %v482_v10 = vpop.xlane.xlu0 %481 }
 0x34d   :  { %3287 = vpow2.f32 %v523_v9  ;;  %v510_v12 = vsub.f32 %v3889_v25, %v482_v10 }
 0x34f   :  { %v529_v14 = vmul.f32 1.442695, %v510_v12 }
 0x350   :  { %v3938_v15 = vpop.permute.xlu0 %781 }
 0x351   :  { %3289 = vpow2.f32 %v529_v14  ;;  %3108 = vmatprep.subr.msk.bf16.mxu0 %vm329_vm1, %v3938_v15 }
 0x352   :  { %3291 = vpow2.f32 %v525_v16 }
 0x353   :  { %v3942_v13 = vpop.eup %3285 }
 0x354   :  { %559 = vadd.xlane.f32.xlu0 %v3942_v13 }
 0x357   :  { %v3945_v17 = vpop.eup %3287 }
 0x358   :  { %555 = vadd.xlane.f32.xlu1 %v3945_v17 }
 0x35b   :  { %v3948_v18 = vpop.eup %3289 }
 0x35c   :  { %561 = vadd.xlane.f32.xlu0 %v3948_v18  ;;  %v3951_v21 = vpop.eup %3291 }
 0x360   :  { %557 = vadd.xlane.f32.xlu0 %v3951_v21 }
 0x37c   :  { %v488_v23 = vpop.xlane.xlu1 %487 }
 0x37d   :  { %v513_v24 = vsub.f32 %v3896_v42, %v488_v23 }
 0x37f   :  { %v535_v25 = vmul.f32 1.442695, %v513_v24 }
 0x380   :  { %v484_v26 = vpop.xlane.xlu1 %483 }
 0x381   :  { %3293 = vpow2.f32 %v535_v25  ;;  %v511_v27 = vsub.f32 %v3899_v45, %v484_v26  ;;  %v490_v28 = vpop.xlane.xlu0 %489 }
 0x382   :  { %v514_v31 = vsub.f32 %v3901_v46, %v490_v28 }
 0x383   :  { %v531_v32 = vmul.f32 1.442695, %v511_v27 }
 0x384   :  { %v537_v33 = vmul.f32 1.442695, %v514_v31  ;;  %v496_v47 = vpop.xlane.xlu1 %495 }
 0x385   :  { %3295 = vpow2.f32 %v531_v32  ;;  %v486_v34 = vpop.xlane.xlu0 %485 }
 0x386   :  { %v512_v35 = vsub.f32 %v3907_v52, %v486_v34  ;;  %3297 = vpow2.f32 %v537_v33  ;;  %v517_v52 = vsub.f32 %v3905_v51, %v496_v47 }
 0x388   :  { %v533_v36 = vmul.f32 1.442695, %v512_v35  ;;  %v492_v53 = vpop.xlane.xlu1 %491  ;;  %v543_v57 = vmul.f32 1.442695, %v517_v52 }
 0x389   :  { %v498_v43 = vpop.xlane.xlu0 %497  ;;  %v515_v58 = vsub.f32 %v3911_v55, %v492_v53 }
 0x38a   :  { %3299 = vpow2.f32 %v533_v36  ;;  %v518_v62 = vsub.f32 %v3913_v56, %v498_v43 }
 0x38b   :  { %v3960_v37 = vpop.eup %3293  ;;  %v539_v61 = vmul.f32 1.442695, %v515_v58 }
 0x38c   :  { %567 = vadd.xlane.f32.xlu0 %v3960_v37  ;;  %v504_v1 = vpop.xlane.xlu1 %503  ;;  %v545_v3 = vmul.f32 1.442695, %v518_v62 }
 0x38d   :  { %v494_v44 = vpop.xlane.xlu0 %493  ;;  %v521_v51 = vsub.f32 %v3917_v59, %v504_v1 }
 0x38e   :  { %v516_v4 = vsub.f32 %v3919_v60, %v494_v44  ;;  %v822_v44 = vsel %vm329_vm1, %v3938_v15, 0 }
 0x38f   :  { %v3963_v38 = vpop.eup %3295  ;;  %v551_v7 = vmul.f32 1.442695, %v521_v51 }
 0x390   :  { %563 = vadd.xlane.f32.xlu0 %v3963_v38  ;;  %v3966_v41 = vpop.eup %3297  ;;  %v500_v6 = vpop.xlane.xlu1 %499 }
 0x391   :  { %v506_v45 = vpop.xlane.xlu0 %505  ;;  %v519_v56 = vsub.f32 %v3923_v63, %v500_v6 }
 0x392   :  { %v522_v59 = vsub.f32 %v3925_v0, %v506_v45 }
 0x393   :  { %v547_v60 = vmul.f32 1.442695, %v519_v56 }
 0x394   :  { %v3968_v42 = vpop.eup %3299  ;;  %569 = vadd.xlane.f32.xlu0 %v3966_v41  ;;  %v553_v10 = vmul.f32 1.442695, %v522_v59  ;;  %v786_v14 = vpop.permute.xlu1 %785 }
 0x395   :  { %565 = vadd.xlane.f32.xlu1 %v3968_v42  ;;  %v502_v46 = vpop.xlane.xlu0 %501  ;;  %v828_v15 = vsel %vm329_vm1, %v786_v14, 0 }
 0x396   :  { %v520_v48 = vsub.f32 %v3929_v2, %v502_v46  ;;  %v541_v2 = vmul.f32 1.442695, %v516_v4 }
 0x398   :  { %v549_v54 = vmul.f32 1.442695, %v520_v48 }
 0x39a   :  { %3301 = vpow2.f32 %v549_v54 }
 0x39b   :  { %3303 = vpow2.f32 %v543_v57 }
 0x39c   :  { %3305 = vpow2.f32 %v539_v61 }
 0x39d   :  { %3307 = vpow2.f32 %v545_v3 }
 0x39e   :  { %3309 = vpow2.f32 %v541_v2 }
 0x39f   :  { %3311 = vpow2.f32 %v551_v7 }
 0x3a0   :  { %3313 = vpow2.f32 %v547_v60 }
 0x3a1   :  { %3315 = vpow2.f32 %v553_v10 }
 0x3a4   :  { %v3983_v5 = vpop.eup %3301 }
 0x3a5   :  { %v3987_v55 = vpop.eup %3303 }
 0x3a6   :  { %787 = vrot.lane.b32.xlu1 %v3810_v29, %s3668_s2  ;;  %v3991_v8 = vpop.eup %3305 }
 0x3a7   :  { %v3995_v9 = vpop.eup %3307 }
 0x3a8   :  { %v3998_v11 = vpop.eup %3309 }
 0x3a9   :  { %v4003_v63 = vpop.eup %3311 }
 0x3aa   :  { %789 = vrot.lane.b32.xlu0 %v3820_v40, %s3668_s2  ;;  %v4008_v0 = vpop.eup %3313 }
 0x3ab   :  { %v4013_v12 = vpop.eup %3315 }
 0x3ae   :  { %791 = vrot.lane.b32.xlu0 %v3818_v39, %s3668_s2 }
 0x3ca   :  { %581 = vadd.xlane.f32.xlu1 %v3983_v5 }
 0x3cd   :  { %575 = vadd.xlane.f32.xlu0 %v3987_v55 }
 0x3d1   :  { %571 = vadd.xlane.f32.xlu0 %v3991_v8 }
 0x3d5   :  { %577 = vadd.xlane.f32.xlu0 %v3995_v9 }
 0x3d9   :  { %573 = vadd.xlane.f32.xlu0 %v3998_v11 }
 0x3db   :  { %795 = vrot.lane.b32.xlu1 %v3826_v49, %s3668_s2 }
 0x3dd   :  { %583 = vadd.xlane.f32.xlu0 %v4003_v63 }
 0x3df   :  { %773 = vrot.lane.b32.xlu1 %v3820_v40, %s3669_s9 }
 0x3e1   :  { %579 = vadd.xlane.f32.xlu0 %v4008_v0  ;;  %v560_v16 = vpop.xlane.xlu0 %559 }
 0x3e3   :  { %777 = vrot.lane.b32.xlu1 %v3828_v50, %s3669_s9 }
 0x3e5   :  { %585 = vadd.xlane.f32.xlu0 %v4013_v12  ;;  %v556_v23 = vpop.xlane.xlu1 %555 }
 0x3e7   :  { %1096 = vrot.lane.b32.xlu1 %v3800_v19, %s3670_s25 }
 0x3e9   :  { %v562_v24 = vpop.xlane.xlu0 %561 }
 0x3ea   :  { %3317 = vrcp.f32 %v562_v24 }
 0x3eb   :  { %1100 = vrot.lane.b32.xlu1 %v3810_v29, %s3670_s25  ;;  %3319 = vrcp.f32 %v556_v23 }
 0x3ec   :  { %3321 = vrcp.f32 %v560_v16 }
 0x3ed   :  { %v558_v25 = vpop.xlane.xlu0 %557 }
 0x3ee   :  { %3323 = vrcp.f32 %v558_v25 }
 0x3ef   :  { %1106 = vrot.lane.b32.xlu1 %v3828_v50, %s3670_s25 }
 0x3f4   :  { %v3318_v26 = vpop.eup %3317 }
 0x3f5   :  { %v3320_v27 = vpop.eup %3319  ;;  %v606_v32 = vmul.f32 %v3318_v26, %v3948_v18 }
 0x3f6   :  { %v3322_v28 = vpop.eup %3321  ;;  %v603_v33 = vmul.f32 %v3320_v27, %v3945_v17 }
 0x3f7   :  { %v605_v35 = vmul.f32 %v3322_v28, %v3942_v13  ;;  %v825_v13 = vsel %vm329_vm1, %v3954_v22, 0 }
 0x3f8   :  { %v3324_v31 = vpop.eup %3323 }
 0x3f9   :  { %v604_v34 = vmul.f32 %v3324_v31, %v3951_v21  ;;  %v620_v43 = vpack.c.bf16 %v606_v32, %v605_v35 }
 0x3fb   :  { %793 = vrot.lane.b32.xlu0 %v3828_v50, %s3668_s2  ;;  %v619_v36 = vpack.c.bf16 %v604_v34, %v603_v33 }
 0x3fd   :  { %2856 = vmatprep.mubr.bf16.mxu0 %v619_v36 }
 0x3fe   :  { %2857 = vmatmul.mubr.bf16.vlgmr.msra.gmra.mrb[16].mxu0 %v620_v43 }
 0x3ff   :  { %2873 = vmatpush3.bf16.xpose.msra.mxu0 %v822_v44  ;;  %765 = vrot.lane.b32.xlu0 %v3802_v20, %s3669_s9 }
 0x400   :  { %3109 = vmatprep.subr.msk.bf16.mxu0 %vm329_vm1, %v3954_v22 }
 0x403   :  { %767 = vrot.lane.b32.xlu0 %v3800_v19, %s3669_s9 }
 0x407   :  { %2875 = vmatpush3.bf16.xpose.msra.mxu0 %v825_v13  ;;  %769 = vrot.lane.b32.xlu0 %v3812_v30, %s3669_s9 }
 0x408   :  { %3110 = vmatprep.subr.msk.bf16.mxu0 %vm329_vm1, %v786_v14 }
 0x40b   :  { %771 = vrot.lane.b32.xlu0 %v3810_v29, %s3669_s9 }
 0x40f   :  { %2877 = vmatpush3.bf16.xpose.msra.mxu0 %v828_v15  ;;  %775 = vrot.lane.b32.xlu0 %v3818_v39, %s3669_s9 }
 0x413   :  { %779 = vrot.lane.b32.xlu0 %v3826_v49, %s3669_s9 }
 0x417   :  { %1094 = vrot.lane.b32.xlu0 %v3802_v20, %s3670_s25 }
 0x419   :  { %v568_v17 = vpop.xlane.xlu0 %567 }
 0x41a   :  { %3325 = vrcp.f32 %v568_v17 }
 0x41b   :  { %1098 = vrot.lane.b32.xlu0 %v3812_v30, %s3670_s25 }
 0x41d   :  { %v564_v18 = vpop.xlane.xlu0 %563 }
 0x41e   :  { %3327 = vrcp.f32 %v564_v18 }
 0x41f   :  { %1102 = vrot.lane.b32.xlu0 %v3820_v40, %s3670_s25 }
 0x421   :  { %v570_v21 = vpop.xlane.xlu0 %569 }
 0x422   :  { %3329 = vrcp.f32 %v570_v21  ;;  %v566_v22 = vpop.xlane.xlu1 %565 }
 0x423   :  { %3331 = vrcp.f32 %v566_v22  ;;  %1104 = vrot.lane.b32.xlu0 %v3818_v39, %s3670_s25 }
 0x424   :  { %v3326_v48 = vpop.eup %3325 }
 0x425   :  { %v790_v47 = vpop.permute.xlu0 %789  ;;  %v609_v1 = vmul.f32 %v3326_v48, %v3960_v37 }
 0x426   :  { %v788_v45 = vpop.permute.xlu1 %787  ;;  %v834_v62 = vsel %vm329_vm1, %v790_v47, 0 }
 0x427   :  { %1108 = vrot.lane.b32.xlu0 %v3826_v49, %s3670_s25  ;;  %3111 = vmatprep.subr.msk.bf16.mxu0 %vm329_vm1, %v788_v45  ;;  %v831_v46 = vsel %vm329_vm1, %v788_v45, 0 }
 0x428   :  { %2879 = vmatpush3.bf16.xpose.msra.mxu0 %v831_v46  ;;  %v3328_v52 = vpop.eup %3327 }
 0x429   :  { %3112 = vmatprep.subr.msk.bf16.mxu0 %vm329_vm1, %v790_v47  ;;  %v607_v58 = vmul.f32 %v3328_v52, %v3963_v38  ;;  %v792_v3 = vpop.permute.xlu0 %791 }
 0x42a   :  { %v837_v2 = vsel %vm329_vm1, %v792_v3, 0 }
 0x42c   :  { %v3330_v53 = vpop.eup %3329 }
 0x42d   :  { %v3332_v54 = vpop.eup %3331  ;;  %v610_v57 = vmul.f32 %v3330_v53, %v3966_v41 }
 0x42e   :  { %v608_v61 = vmul.f32 %v3332_v54, %v3968_v42 }
 0x42f   :  { %v622_v51 = vpack.c.bf16 %v610_v57, %v609_v1 }
 0x430   :  { %2881 = vmatpush3.bf16.xpose.msra.mxu0 %v834_v62  ;;  %v621_v4 = vpack.c.bf16 %v608_v61, %v607_v58 }
 0x431   :  { %3113 = vmatprep.subr.msk.bf16.mxu0 %vm329_vm1, %v792_v3 }
 0x432   :  { %2860 = vmatprep.mubr.bf16.mxu0 %v621_v4 }
 0x433   :  { %2861 = vmatmul.mubr.bf16.gmra.mrb[20].mxu0 %v622_v51 }
 0x438   :  { %2883 = vmatpush3.bf16.xpose.msra.mxu0 %v837_v2 }
 0x457   :  { %v582_v37 = vpop.xlane.xlu1 %581 }
 0x45a   :  { %v576_v41 = vpop.xlane.xlu0 %575 }
 0x45b   :  { %v796_v34 = vpop.permute.xlu1 %795 }
 0x45c   :  { %v843_v17 = vsel %vm329_vm1, %v796_v34, 0 }
 0x45e   :  { %v572_v6 = vpop.xlane.xlu0 %571 }
 0x45f   :  { %v774_v22 = vpop.permute.xlu1 %773 }
 0x462   :  { %v578_v38 = vpop.xlane.xlu0 %577 }
 0x463   :  { %3333 = vrcp.f32 %v578_v38  ;;  %v778_v45 = vpop.permute.xlu1 %777 }
 0x464   :  { %3335 = vrcp.f32 %v572_v6 }
 0x465   :  { %3337 = vrcp.f32 %v576_v41 }
 0x466   :  { %v574_v42 = vpop.xlane.xlu0 %573 }
 0x467   :  { %3339 = vrcp.f32 %v574_v42 }
 0x468   :  { %3341 = vrcp.f32 %v582_v37 }
 0x46a   :  { %v584_v7 = vpop.xlane.xlu0 %583 }
 0x46d   :  { %v3334_v56 = vpop.eup %3333 }
 0x46e   :  { %v580_v60 = vpop.xlane.xlu0 %579  ;;  %v3336_v59 = vpop.eup %3335  ;;  %v614_v16 = vmul.f32 %v3334_v56, %v3995_v9 }
 0x46f   :  { %3343 = vrcp.f32 %v580_v60  ;;  %v3338_v10 = vpop.eup %3337  ;;  %v611_v24 = vmul.f32 %v3336_v59, %v3991_v8  ;;  %v751_v59 = vld [vmem:[#allocation8 + $0x90] sm:$0xff] }
 0x470   :  { %3345 = vrcp.f32 %v584_v7  ;;  %v613_v26 = vmul.f32 %v3338_v10, %v3987_v55  ;;  %v749_v10 = vld [vmem:[#allocation8 + $0x80] sm:$0xff] }
 0x471   :  { %v3340_v14 = vpop.eup %3339 }
 0x472   :  { %v586_v23 = vpop.xlane.xlu0 %585  ;;  %v612_v25 = vmul.f32 %v3340_v14, %v3998_v11  ;;  %v624_v28 = vpack.c.bf16 %v614_v16, %v613_v26  ;;  %v3342_v32 = vpop.eup %3341  ;;  %v752_v26 = vld [vmem:[#allocation8 + $0x98] sm:$0xff] }
 0x473   :  { %3347 = vrcp.f32 %v586_v23  ;;  %v616_v55 = vmul.f32 %v3342_v32, %v3983_v5 }
 0x474   :  { %v623_v27 = vpack.c.bf16 %v612_v25, %v611_v24 }
 0x476   :  { %2864 = vmatprep.mubr.bf16.mxu0 %v623_v27  ;;  %v794_v31 = vpop.permute.xlu0 %793 }
 0x477   :  { %2865 = vmatmul.mubr.bf16.gmra.mrb[24].mxu0 %v624_v28  ;;  %3114 = vmatprep.subr.msk.bf16.mxu0 %vm329_vm1, %v794_v31  ;;  %v840_v33 = vsel %vm329_vm1, %v794_v31, 0 }
 0x478   :  { %2885 = vmatpush3.bf16.xpose.msra.mxu0 %v840_v33 }
 0x479   :  { %v3344_v9 = vpop.eup %3343  ;;  %3115 = vmatprep.subr.msk.bf16.mxu0 %vm329_vm1, %v796_v34 }
 0x47a   :  { %v766_v8 = vpop.permute.xlu0 %765  ;;  %v615_v11 = vmul.f32 %v3344_v9, %v4008_v0  ;;  %v3346_v35 = vpop.eup %3345 }
 0x47b   :  { %v617_v13 = vmul.f32 %v3346_v35, %v4003_v63 }
 0x47c   :  { %v625_v36 = vpack.c.bf16 %v616_v55, %v615_v11 }
 0x47d   :  { %v3348_v43 = vpop.eup %3347 }
 0x47e   :  { %2868 = vmatprep.mubr.bf16.mxu0 %v625_v36  ;;  %v768_v44 = vpop.permute.xlu0 %767  ;;  %v618_v15 = vmul.f32 %v3348_v43, %v4013_v12  ;;  %v1097_v12 = vpop.permute.xlu1 %1096 }
 0x480   :  { %2887 = vmatpush3.bf16.xpose.msra.mxu0 %v843_v17  ;;  %v626_v18 = vpack.c.bf16 %v618_v15, %v617_v13  ;;  %v750_v13 = vld [vmem:[#allocation8 + $0x88] sm:$0xff]  ;;  %v755_v17 = vld [vmem:[#allocation8 + $0xb0] sm:$0xff] }
 0x482   :  { %2869 = vmatmul.mubr.bf16.gmra.mrb[28].mxu0 %v626_v18  ;;  %v770_v21 = vpop.permute.xlu0 %769  ;;  %v1101_v48 = vpop.permute.xlu1 %1100  ;;  %v756_v18 = vld [vmem:[#allocation8 + $0xb8] sm:$0xff] }
 0x483   :  { %2888 = vmatprep.mubr.msk.bf16.mxu0 %vm329_vm1, %v766_v8 }
 0x486   :  { %v772_v0 = vpop.permute.xlu0 %771  ;;  %v1107_v54 = vpop.permute.xlu1 %1106 }
 0x48a   :  { %2889 = vmatmul.mubr.msk.bf16.vlgmr.msra.gmra.mrb[32].mxu0 %vm329_vm1, %v768_v44  ;;  %v776_v5 = vpop.permute.xlu0 %775 }
 0x48b   :  { %2892 = vmatprep.mubr.msk.bf16.mxu0 %vm329_vm1, %v770_v21 }
 0x48e   :  { %v780_v46 = vpop.permute.xlu0 %779 }
 0x492   :  { %2893 = vmatmul.mubr.msk.bf16.gmra.mrb[36].mxu0 %vm329_vm1, %v772_v0  ;;  %v1095_v63 = vpop.permute.xlu0 %1094  ;;  %v753_v0 = vld [vmem:[#allocation8 + $0xa0] sm:$0xff] }
 0x493   :  { %2896 = vmatprep.mubr.msk.bf16.mxu0 %vm329_vm1, %v774_v22  ;;  %2904 = vmatprep.subr.bf16.mxu1 %v1095_v63 }
 0x494   :  { %2905 = vmatpush3.bf16.msra.mxu1 %v1095_v63  ;;  %v759_v63 = vld [vmem:[#allocation8 + $0xd0] sm:$0xff] }
 0x495   :  { %2906 = vmatprep.subr.bf16.mxu1 %v1097_v12 }
 0x496   :  { %v1099_v47 = vpop.permute.xlu0 %1098 }
 0x498   :  { %2907 = vmatpush3.bf16.msra.mxu1 %v1097_v12  ;;  %v760_v12 = vld [vmem:[#allocation8 + $0xd8] sm:$0xff] }
 0x499   :  { %2908 = vmatprep.subr.bf16.mxu1 %v1099_v47 }
 0x49a   :  { %2897 = vmatmul.mubr.msk.bf16.gmra.mrb[40].mxu0 %vm329_vm1, %v776_v5  ;;  %v1103_v52 = vpop.permute.xlu0 %1102  ;;  %v754_v5 = vld [vmem:[#allocation8 + $0xa8] sm:$0xff] }
 0x49b   :  { %2900 = vmatprep.mubr.msk.bf16.mxu0 %vm329_vm1, %v778_v45 }
 0x49c   :  { %2909 = vmatpush3.bf16.msra.mxu1 %v1099_v47 }
 0x49d   :  { %2910 = vmatprep.subr.bf16.mxu1 %v1101_v48 }
 0x49e   :  { %v1105_v53 = vpop.permute.xlu0 %1104 }
 0x4a0   :  { %2911 = vmatpush3.bf16.msra.mxu1 %v1101_v48  ;;  %v757_v48 = vld [vmem:[#allocation8 + $0xc0] sm:$0xff] }
 0x4a1   :  { %2912 = vmatprep.subr.bf16.mxu1 %v1103_v52 }
 0x4a2   :  { %2901 = vmatmul.mubr.msk.bf16.gmra.mrb[44].mxu0 %vm329_vm1, %v780_v46  ;;  %v1109_v57 = vpop.permute.xlu0 %1108 }
 0x4a4   :  { %2913 = vmatpush3.bf16.msra.mxu1 %v1103_v52 }
 0x4a5   :  { %2914 = vmatprep.subr.bf16.mxu1 %v1105_v53 }
 0x4a8   :  { %2915 = vmatpush3.bf16.msra.mxu1 %v1105_v53  ;;  %v758_v53 = vld [vmem:[#allocation8 + $0xc8] sm:$0xff] }
 0x4a9   :  { %2916 = vmatprep.subr.bf16.mxu1 %v1107_v54 }
 0x4ac   :  { %2917 = vmatpush3.bf16.msra.mxu1 %v1107_v54 }
 0x4ad   :  { %2918 = vmatprep.subr.bf16.mxu1 %v1109_v57 }
 0x4b0   :  { %2919 = vmatpush3.bf16.msra.mxu1 %v1109_v57 }
 0x4d1   :  { %v4088_v58 = vpop.f32.mrb[16].mxu0 }
 0x4d2   :  { %4913 = vst [vmem:[#allocation15_spill] sm:$0xff] %v4088_v58  ;;  %v4090_v61 = vpop.f32.mrb[17].mxu0 }
 0x4d3   :  { %4914 = vst [vmem:[#allocation16_spill] sm:$0xff] %v4090_v61  ;;  %v4092_v62 = vpop.f32.mrb[18].mxu0 }
 0x4d4   :  { %4915 = vst [vmem:[#allocation17_spill] sm:$0xff] %v4092_v62  ;;  %v4094_v1 = vpop.f32.mrb[19].mxu0 }
 0x4d5   :  { %4916 = vst [vmem:[#allocation18_spill] sm:$0xff] %v4094_v1 }
 0x506   :  { %v4096_v3 = vpop.f32.mrb[20].mxu0 }
 0x507   :  { %4917 = vst [vmem:[#allocation19_spill] sm:$0xff] %v4096_v3  ;;  %v4098_v4 = vpop.f32.mrb[21].mxu0 }
 0x508   :  { %4918 = vst [vmem:[#allocation20_spill] sm:$0xff] %v4098_v4  ;;  %v4100_v51 = vpop.f32.mrb[22].mxu0 }
 0x509   :  { %4919 = vst [vmem:[#allocation21_spill] sm:$0xff] %v4100_v51  ;;  %v4102_v2 = vpop.f32.mrb[23].mxu0 }
 0x50a   :  { %4920 = vst [vmem:[#allocation22_spill] sm:$0xff] %v4102_v2 }
 0x54a   :  { %v4104_v41 = vpop.f32.mrb[24].mxu0 }
 0x54b   :  { %4921 = vst [vmem:[#allocation23_spill] sm:$0xff] %v4104_v41  ;;  %v4106_v6 = vpop.f32.mrb[25].mxu0 }
 0x54c   :  { %4922 = vst [vmem:[#allocation24_spill] sm:$0xff] %v4106_v6  ;;  %v4108_v38 = vpop.f32.mrb[26].mxu0 }
 0x54d   :  { %4923 = vst [vmem:[#allocation25_spill] sm:$0xff] %v4108_v38  ;;  %v4110_v42 = vpop.f32.mrb[27].mxu0 }
 0x54e   :  { %4924 = vst [vmem:[#allocation26_spill] sm:$0xff] %v4110_v42 }
 0x555   :  { %v4112_v37 = vpop.f32.mrb[28].mxu0 }
 0x556   :  { %4925 = vst [vmem:[#allocation27_spill] sm:$0xff] %v4112_v37  ;;  %v4114_v7 = vpop.f32.mrb[29].mxu0  ;;  %v1226_v37 = vld [vmem:[#allocation8 + $0x150] sm:$0xff] }
 0x557   :  { %4926 = vst [vmem:[#allocation28_spill] sm:$0xff] %v4114_v7  ;;  %v4116_v56 = vpop.f32.mrb[30].mxu0 }
 0x558   :  { %4927 = vst [vmem:[#allocation29_spill] sm:$0xff] %v4116_v56  ;;  %v4118_v60 = vpop.f32.mrb[31].mxu0 }
 0x559   :  { %4928 = vst [vmem:[#allocation30_spill] sm:$0xff] %v4118_v60 }
 0x55d   :  { %v2890_v14 = vpop.f32.mrb[32].mxu0 }
 0x55e   :  { %v4120_v16 = vadd.f32 %v2890_v14, %v751_v59  ;;  %v879_v23 = vpop.f32.mrb[33].mxu0  ;;  %v763_v59 = vld [vmem:[#allocation8 + $0xf0] sm:$0xff] }
 0x55f   :  { %v4122_v24 = vadd.f32 %v879_v23, %v749_v10  ;;  %v2891_v25 = vpop.f32.mrb[34].mxu0  ;;  %v764_v10 = vld [vmem:[#allocation8 + $0xf8] sm:$0xff]  ;;  %v761_v23 = vld [vmem:[#allocation8 + $0xe0] sm:$0xff] }
 0x560   :  { %946 = vmax.xlane.f32.xlu0 %v4120_v16  ;;  %v882_v27 = vpop.f32.mrb[35].mxu0  ;;  %v4126_v28 = vadd.f32 %v2891_v25, %v752_v26  ;;  %v762_v26 = vld [vmem:[#allocation8 + $0xe8] sm:$0xff] }
 0x561   :  { %942 = vmax.xlane.f32.xlu1 %v4122_v24  ;;  %v4133_v15 = vadd.f32 %v882_v27, %v750_v13 }
 0x565   :  { %948 = vmax.xlane.f32.xlu1 %v4126_v28  ;;  %v2894_v31 = vpop.f32.mrb[36].mxu0 }
 0x566   :  { %v895_v32 = vpop.f32.mrb[37].mxu0  ;;  %v4136_v21 = vadd.f32 %v2894_v31, %v755_v17 }
 0x567   :  { %v2895_v33 = vpop.f32.mrb[38].mxu0  ;;  %v896_v45 = vadd.f32 %v895_v32, %v753_v0 }
 0x568   :  { %v898_v34 = vpop.f32.mrb[39].mxu0  ;;  %v4138_v22 = vadd.f32 %v2895_v33, %v756_v18 }
 0x569   :  { %v4142_v46 = vadd.f32 %v898_v34, %v754_v5 }
 0x56d   :  { %v2898_v9 = vpop.f32.mrb[40].mxu0 }
 0x56e   :  { %v911_v8 = vpop.f32.mrb[41].mxu0  ;;  %v4145_v47 = vadd.f32 %v2898_v9, %v759_v63 }
 0x56f   :  { %v2899_v11 = vpop.f32.mrb[42].mxu0  ;;  %v4151_v54 = vadd.f32 %v911_v8, %v757_v48 }
 0x570   :  { %v914_v55 = vpop.f32.mrb[43].mxu0  ;;  %v4147_v52 = vadd.f32 %v2899_v11, %v760_v12 }
 0x571   :  { %v4153_v57 = vadd.f32 %v914_v55, %v758_v53 }
 0x575   :  { %v2902_v35 = vpop.f32.mrb[44].mxu0 }
 0x576   :  { %1250 = vrot.lane.b32.xlu0 %v3800_v19, %s3671_s26  ;;  %1248 = vrot.lane.b32.xlu1 %v3802_v20, %s3671_s26  ;;  %v927_v36 = vpop.f32.mrb[45].mxu0  ;;  %v4157_v14 = vadd.f32 %v2902_v35, %v763_v59 }
 0x577   :  { %v2903_v43 = vpop.f32.mrb[46].mxu0  ;;  %v4163_v27 = vadd.f32 %v927_v36, %v761_v23 }
 0x578   :  { %v930_v44 = vpop.f32.mrb[47].mxu0  ;;  %v4159_v25 = vadd.f32 %v2903_v43, %v764_v10 }
 0x579   :  { %v4165_v31 = vadd.f32 %v930_v44, %v762_v26 }
 0x595   :  { %944 = vmax.xlane.f32.xlu0 %v4133_v15 }
 0x599   :  { %954 = vmax.xlane.f32.xlu0 %v4136_v21 }
 0x59a   :  { %956 = vmax.xlane.f32.xlu1 %v4138_v22 }
 0x59d   :  { %950 = vmax.xlane.f32.xlu0 %v896_v45 }
 0x59e   :  { %952 = vmax.xlane.f32.xlu1 %v4142_v46 }
 0x5a1   :  { %962 = vmax.xlane.f32.xlu0 %v4145_v47 }
 0x5a2   :  { %964 = vmax.xlane.f32.xlu1 %v4147_v52 }
 0x5a5   :  { %958 = vmax.xlane.f32.xlu0 %v4151_v54 }
 0x5a6   :  { %960 = vmax.xlane.f32.xlu1 %v4153_v57 }
 0x5a9   :  { %970 = vmax.xlane.f32.xlu0 %v4157_v14 }
 0x5aa   :  { %972 = vmax.xlane.f32.xlu1 %v4159_v25 }
 0x5ad   :  { %966 = vmax.xlane.f32.xlu0 %v4163_v27 }
 0x5ae   :  { %968 = vmax.xlane.f32.xlu1 %v4165_v31 }
 0x5c3   :  { %1252 = vrot.lane.b32.xlu0 %v3812_v30, %s3671_s26 }
 0x5ed   :  { %v947_v32 = vpop.xlane.xlu0 %946 }
 0x5ee   :  { %v976_v33 = vsub.f32 %v4120_v16, %v947_v32  ;;  %v943_v34 = vpop.xlane.xlu1 %942 }
 0x5ef   :  { %v974_v9 = vsub.f32 %v4122_v24, %v943_v34 }
 0x5f0   :  { %v994_v8 = vmul.f32 1.442695, %v976_v33 }
 0x5f1   :  { %v990_v11 = vmul.f32 1.442695, %v974_v9 }
 0x5f2   :  { %3349 = vpow2.f32 %v994_v8  ;;  %v949_v55 = vpop.xlane.xlu1 %948 }
 0x5f3   :  { %v977_v35 = vsub.f32 %v4126_v28, %v949_v55  ;;  %3351 = vpow2.f32 %v990_v11  ;;  %v4189_v28 = vpop.permute.xlu0 %1250 }
 0x5f5   :  { %v996_v36 = vmul.f32 1.442695, %v977_v35 }
 0x5f6   :  { %v4174_v43 = vpop.permute.xlu1 %1248 }
 0x5f7   :  { %3116 = vmatprep.subr.msk.bf16.mxu1 %vm329_vm1, %v4174_v43  ;;  %3353 = vpow2.f32 %v996_v36 }
 0x5fc   :  { %v4178_v44 = vpop.eup %3349 }
 0x5fd   :  { %1026 = vadd.xlane.f32.xlu1 %v4178_v44  ;;  %v4181_v16 = vpop.eup %3351 }
 0x601   :  { %1022 = vadd.xlane.f32.xlu1 %v4181_v16  ;;  %v4184_v24 = vpop.eup %3353 }
 0x605   :  { %1028 = vadd.xlane.f32.xlu1 %v4184_v24 }
 0x616   :  { %1254 = vrot.lane.b32.xlu1 %v3810_v29, %s3671_s26 }
 0x622   :  { %v945_v13 = vpop.xlane.xlu0 %944 }
 0x623   :  { %v975_v17 = vsub.f32 %v4133_v15, %v945_v13 }
 0x625   :  { %v992_v18 = vmul.f32 1.442695, %v975_v17 }
 0x626   :  { %v955_v0 = vpop.xlane.xlu0 %954 }
 0x627   :  { %3355 = vpow2.f32 %v992_v18  ;;  %v957_v5 = vpop.xlane.xlu1 %956 }
 0x628   :  { %v981_v12 = vsub.f32 %v4138_v22, %v957_v5 }
 0x62a   :  { %v951_v63 = vpop.xlane.xlu0 %950  ;;  %v1004_v23 = vmul.f32 1.442695, %v981_v12  ;;  %v980_v12 = vsub.f32 %v4136_v21, %v955_v0 }
 0x62b   :  { %v978_v48 = vsub.f32 %v896_v45, %v951_v63  ;;  %v953_v53 = vpop.xlane.xlu1 %952 }
 0x62d   :  { %v998_v59 = vmul.f32 1.442695, %v978_v48 }
 0x62e   :  { %v963_v10 = vpop.xlane.xlu0 %962 }
 0x62f   :  { %3357 = vpow2.f32 %v998_v59  ;;  %v984_v26 = vsub.f32 %v4145_v47, %v963_v10  ;;  %v965_v32 = vpop.xlane.xlu1 %964  ;;  %v1002_v59 = vmul.f32 1.442695, %v980_v12  ;;  %v979_v10 = vsub.f32 %v4142_v46, %v953_v53 }
 0x630   :  { %3359 = vpow2.f32 %v1004_v23  ;;  %v985_v22 = vsub.f32 %v4147_v52, %v965_v32 }
 0x631   :  { %v4194_v33 = vpop.eup %3355  ;;  %v1010_v34 = vmul.f32 1.442695, %v984_v26  ;;  %v1000_v23 = vmul.f32 1.442695, %v979_v10 }
 0x632   :  { %1024 = vadd.xlane.f32.xlu0 %v4194_v33  ;;  %v959_v15 = vpop.xlane.xlu0 %958  ;;  %v1012_v47 = vmul.f32 1.442695, %v985_v22 }
 0x633   :  { %v982_v9 = vsub.f32 %v4151_v54, %v959_v15  ;;  %v961_v8 = vpop.xlane.xlu1 %960  ;;  %3361 = vpow2.f32 %v1010_v34 }
 0x634   :  { %v983_v35 = vsub.f32 %v4153_v57, %v961_v8 }
 0x635   :  { %v1006_v45 = vmul.f32 1.442695, %v982_v9 }
 0x636   :  { %v1008_v54 = vmul.f32 1.442695, %v983_v35  ;;  %v971_v48 = vpop.xlane.xlu0 %970 }
 0x637   :  { %v973_v11 = vpop.xlane.xlu1 %972  ;;  %3363 = vpow2.f32 %v1006_v45  ;;  %v988_v26 = vsub.f32 %v4157_v14, %v971_v48 }
 0x638   :  { %3365 = vpow2.f32 %v1012_v47  ;;  %v989_v9 = vsub.f32 %v4159_v25, %v973_v11 }
 0x639   :  { %v4199_v55 = vpop.eup %3357  ;;  %3367 = vpow2.f32 %v1008_v54  ;;  %v1018_v15 = vmul.f32 1.442695, %v988_v26 }
 0x63a   :  { %1030 = vadd.xlane.f32.xlu1 %v4199_v55  ;;  %v4203_v13 = vpop.eup %3359  ;;  %v967_v32 = vpop.xlane.xlu0 %966  ;;  %v1020_v46 = vmul.f32 1.442695, %v989_v9 }
 0x63b   :  { %v969_v36 = vpop.xlane.xlu1 %968  ;;  %v986_v34 = vsub.f32 %v4163_v27, %v967_v32 }
 0x63c   :  { %v987_v17 = vsub.f32 %v4165_v31, %v969_v36 }
 0x63d   :  { %v4207_v52 = vpop.eup %3361  ;;  %v1014_v21 = vmul.f32 1.442695, %v986_v34  ;;  %v1289_v34 = vsel %vm329_vm1, %v4174_v43, 0 }
 0x63e   :  { %1036 = vadd.xlane.f32.xlu1 %v4203_v13  ;;  %v1016_v18 = vmul.f32 1.442695, %v987_v17  ;;  %v1253_v11 = vpop.permute.xlu0 %1252 }
 0x640   :  { %3369 = vpow2.f32 %v1016_v18 }
 0x641   :  { %v4210_v5 = vpop.eup %3363  ;;  %3371 = vpow2.f32 %v1002_v59 }
 0x642   :  { %1042 = vadd.xlane.f32.xlu1 %v4207_v52  ;;  %v4215_v57 = vpop.eup %3365  ;;  %3373 = vpow2.f32 %v1000_v23 }
 0x643   :  { %v4218_v63 = vpop.eup %3367  ;;  %3375 = vpow2.f32 %v1018_v15 }
 0x644   :  { %3377 = vpow2.f32 %v1014_v21 }
 0x645   :  { %3379 = vpow2.f32 %v1020_v46 }
 0x646   :  { %1038 = vadd.xlane.f32.xlu1 %v4210_v5 }
 0x648   :  { %1256 = vrot.lane.b32.xlu0 %v3820_v40, %s3671_s26 }
 0x64a   :  { %1044 = vadd.xlane.f32.xlu1 %v4215_v57  ;;  %v4221_v31 = vpop.eup %3369 }
 0x64b   :  { %v4231_v0 = vpop.eup %3371 }
 0x64c   :  { %v4235_v14 = vpop.eup %3373 }
 0x64d   :  { %v4239_v27 = vpop.eup %3375 }
 0x64e   :  { %1040 = vadd.xlane.f32.xlu1 %v4218_v63  ;;  %v4243_v25 = vpop.eup %3377 }
 0x64f   :  { %v4247_v53 = vpop.eup %3379 }
 0x652   :  { %1048 = vadd.xlane.f32.xlu1 %v4221_v31 }
 0x663   :  { %1258 = vrot.lane.b32.xlu1 %v3818_v39, %s3671_s26 }
 0x667   :  { %1034 = vadd.xlane.f32.xlu0 %v4231_v0  ;;  %1232 = vrot.lane.b32.xlu1 %v3802_v20, %s3672_s27 }
 0x66b   :  { %1032 = vadd.xlane.f32.xlu0 %v4235_v14  ;;  %1236 = vrot.lane.b32.xlu1 %v3812_v30, %s3672_s27 }
 0x66f   :  { %1240 = vrot.lane.b32.xlu1 %v3820_v40, %s3672_s27  ;;  %1050 = vadd.xlane.f32.xlu0 %v4239_v27 }
 0x673   :  { %1244 = vrot.lane.b32.xlu1 %v3828_v50, %s3672_s27  ;;  %1046 = vadd.xlane.f32.xlu0 %v4243_v25 }
 0x677   :  { %1563 = vrot.lane.b32.xlu1 %v3800_v19, %s3673_s28  ;;  %1052 = vadd.xlane.f32.xlu0 %v4247_v53 }
 0x67b   :  { %1567 = vrot.lane.b32.xlu1 %v3810_v29, %s3673_s28 }
 0x67f   :  { %1573 = vrot.lane.b32.xlu1 %v3828_v50, %s3673_s28 }
 0x68a   :  { %v1027_v8 = vpop.xlane.xlu1 %1026 }
 0x68d   :  { %1260 = vrot.lane.b32.xlu0 %v3828_v50, %s3671_s26 }
 0x68e   :  { %v1023_v22 = vpop.xlane.xlu1 %1022 }
 0x691   :  { %1262 = vrot.lane.b32.xlu0 %v3826_v49, %s3671_s26 }
 0x692   :  { %v1029_v45 = vpop.xlane.xlu1 %1028 }
 0x693   :  { %3381 = vrcp.f32 %v1029_v45 }
 0x694   :  { %3383 = vrcp.f32 %v1023_v22 }
 0x695   :  { %1234 = vrot.lane.b32.xlu0 %v3800_v19, %s3672_s27  ;;  %3385 = vrcp.f32 %v1027_v8 }
 0x696   :  { %v1255_v35 = vpop.permute.xlu1 %1254 }
 0x697   :  { %v1298_v43 = vsel %vm329_vm1, %v1255_v35, 0 }
 0x699   :  { %1238 = vrot.lane.b32.xlu0 %v3810_v29, %s3672_s27 }
 0x69d   :  { %1242 = vrot.lane.b32.xlu0 %v3818_v39, %s3672_s27  ;;  %v3382_v36 = vpop.eup %3381 }
 0x69e   :  { %v3384_v17 = vpop.eup %3383  ;;  %v1073_v48 = vmul.f32 %v3382_v36, %v4184_v24 }
 0x69f   :  { %v3386_v18 = vpop.eup %3385  ;;  %v1070_v59 = vmul.f32 %v3384_v17, %v4181_v16  ;;  %v1292_v16 = vsel %vm329_vm1, %v4189_v28, 0 }
 0x6a0   :  { %v1072_v23 = vmul.f32 %v3386_v18, %v4178_v44 }
 0x6a1   :  { %1246 = vrot.lane.b32.xlu0 %v3826_v49, %s3672_s27 }
 0x6a2   :  { %v1087_v15 = vpack.c.bf16 %v1073_v48, %v1072_v23 }
 0x6a5   :  { %1561 = vrot.lane.b32.xlu0 %v3802_v20, %s3673_s28 }
 0x6a9   :  { %1565 = vrot.lane.b32.xlu0 %v3812_v30, %s3673_s28 }
 0x6ad   :  { %1569 = vrot.lane.b32.xlu0 %v3820_v40, %s3673_s28 }
 0x6b1   :  { %1571 = vrot.lane.b32.xlu0 %v3818_v39, %s3673_s28 }
 0x6b5   :  { %1575 = vrot.lane.b32.xlu0 %v3826_v49, %s3673_s28 }
 0x6bf   :  { %v1025_v47 = vpop.xlane.xlu0 %1024 }
 0x6c0   :  { %3387 = vrcp.f32 %v1025_v47 }
 0x6c3   :  { %v1257_v46 = vpop.permute.xlu0 %1256 }
 0x6c7   :  { %v1031_v54 = vpop.xlane.xlu1 %1030 }
 0x6c8   :  { %3389 = vrcp.f32 %v1031_v54 }
 0x6ca   :  { %v3388_v12 = vpop.eup %3387 }
 0x6cb   :  { %v1071_v10 = vmul.f32 %v3388_v12, %v4194_v33  ;;  %v1037_v26 = vpop.xlane.xlu1 %1036  ;;  %v1295_v33 = vsel %vm329_vm1, %v1253_v11, 0 }
 0x6cc   :  { %3391 = vrcp.f32 %v1037_v26 }
 0x6cd   :  { %v1086_v32 = vpack.c.bf16 %v1071_v10, %v1070_v59 }
 0x6cf   :  { %2920 = vmatprep.mubr.bf16.mxu1 %v1086_v32  ;;  %v1043_v9 = vpop.xlane.xlu1 %1042 }
 0x6d0   :  { %2921 = vmatmul.mubr.bf16.vlgmr.msra.gmra.mrb[16].mxu1 %v1087_v15 }
 0x6d1   :  { %2937 = vmatpush3.bf16.xpose.msra.mxu1 %v1289_v34 }
 0x6d2   :  { %3117 = vmatprep.subr.msk.bf16.mxu1 %vm329_vm1, %v4189_v28  ;;  %v1301_v28 = vsel %vm329_vm1, %v1257_v46, 0  ;;  %v3390_v36 = vpop.eup %3389 }
 0x6d3   :  { %v1039_v24 = vpop.xlane.xlu1 %1038  ;;  %v1074_v26 = vmul.f32 %v3390_v36, %v4199_v55 }
 0x6d6   :  { %v3392_v17 = vpop.eup %3391 }
 0x6d7   :  { %v1045_v44 = vpop.xlane.xlu1 %1044  ;;  %v1077_v34 = vmul.f32 %v3392_v17, %v4203_v13 }
 0x6d9   :  { %2939 = vmatpush3.bf16.xpose.msra.mxu1 %v1292_v16 }
 0x6da   :  { %3118 = vmatprep.subr.msk.bf16.mxu1 %vm329_vm1, %v1253_v11 }
 0x6db   :  { %v1041_v21 = vpop.xlane.xlu1 %1040 }
 0x6df   :  { %v1049_v8 = vpop.xlane.xlu1 %1048 }
 0x6e1   :  { %2941 = vmatpush3.bf16.xpose.msra.mxu1 %v1295_v33 }
 0x6e2   :  { %3119 = vmatprep.subr.msk.bf16.mxu1 %vm329_vm1, %v1255_v35 }
 0x6e3   :  { %v1259_v22 = vpop.permute.xlu1 %1258 }
 0x6e4   :  { %v1304_v11 = vsel %vm329_vm1, %v1259_v22, 0 }
 0x6e9   :  { %2943 = vmatpush3.bf16.xpose.msra.mxu1 %v1298_v43 }
 0x6ea   :  { %3120 = vmatprep.subr.msk.bf16.mxu1 %vm329_vm1, %v1257_v46 }
 0x6f1   :  { %2945 = vmatpush3.bf16.xpose.msra.mxu1 %v1301_v28 }
 0x6f2   :  { %3121 = vmatprep.subr.msk.bf16.mxu1 %vm329_vm1, %v1259_v22 }
 0x6f4   :  { %v1035_v45 = vpop.xlane.xlu0 %1034 }
 0x6f5   :  { %3393 = vrcp.f32 %v1035_v45 }
 0x6f6   :  { %3395 = vrcp.f32 %v1041_v21 }
 0x6f7   :  { %3397 = vrcp.f32 %v1039_v24 }
 0x6f8   :  { %v1033_v47 = vpop.xlane.xlu0 %1032 }
 0x6f9   :  { %2947 = vmatpush3.bf16.xpose.msra.mxu1 %v1304_v11  ;;  %3399 = vrcp.f32 %v1033_v47 }
 0x6fa   :  { %3401 = vrcp.f32 %v1045_v44 }
 0x6fb   :  { %3403 = vrcp.f32 %v1043_v9 }
 0x6fc   :  { %v1051_v35 = vpop.xlane.xlu0 %1050  ;;  %3405 = vrcp.f32 %v1049_v8 }
 0x6ff   :  { %v3394_v18 = vpop.eup %3393 }
 0x700   :  { %v1047_v12 = vpop.xlane.xlu0 %1046  ;;  %v3396_v48 = vpop.eup %3395  ;;  %v1076_v10 = vmul.f32 %v3394_v18, %v4231_v0 }
 0x701   :  { %3407 = vrcp.f32 %v1047_v12  ;;  %v3398_v54 = vpop.eup %3397  ;;  %v1079_v15 = vmul.f32 %v3396_v48, %v4218_v63  ;;  %v1233_v63 = vpop.permute.xlu1 %1232 }
 0x702   :  { %v1078_v16 = vmul.f32 %v3398_v54, %v4210_v5  ;;  %v1089_v24 = vpack.c.bf16 %v1077_v34, %v1076_v10 }
 0x703   :  { %v3400_v59 = vpop.eup %3399 }
 0x704   :  { %v1053_v23 = vpop.xlane.xlu0 %1052  ;;  %v1075_v32 = vmul.f32 %v3400_v59, %v4235_v14  ;;  %v3402_v44 = vpop.eup %3401  ;;  %v1090_v21 = vpack.c.bf16 %v1079_v15, %v1078_v16 }
 0x705   :  { %3409 = vrcp.f32 %v1053_v23  ;;  %v3404_v0 = vpop.eup %3403  ;;  %v1081_v43 = vmul.f32 %v3402_v44, %v4215_v57  ;;  %v1237_v11 = vpop.permute.xlu1 %1236 }
 0x706   :  { %v1088_v9 = vpack.c.bf16 %v1075_v32, %v1074_v26  ;;  %3411 = vrcp.f32 %v1051_v35  ;;  %v3406_v14 = vpop.eup %3405  ;;  %v1080_v8 = vmul.f32 %v3404_v0, %v4207_v52 }
 0x707   :  { %v1083_v28 = vmul.f32 %v3406_v14, %v4221_v31  ;;  %v1223_v14 = vld [vmem:[#allocation8 + $0x138] sm:$0xff] }
 0x708   :  { %2924 = vmatprep.mubr.bf16.mxu1 %v1088_v9  ;;  %v1261_v33 = vpop.permute.xlu0 %1260  ;;  %v1091_v22 = vpack.c.bf16 %v1081_v43, %v1080_v8  ;;  %v1222_v8 = vld [vmem:[#allocation8 + $0x130] sm:$0xff] }
 0x709   :  { %2925 = vmatmul.mubr.bf16.gmra.mrb[20].mxu1 %v1089_v24  ;;  %3122 = vmatprep.subr.msk.bf16.mxu1 %vm329_vm1, %v1261_v33  ;;  %v1307_v55 = vsel %vm329_vm1, %v1261_v33, 0  ;;  %v1241_v12 = vpop.permute.xlu1 %1240  ;;  %v1221_v24 = vld [vmem:[#allocation8 + $0x128] sm:$0xff] }
 0x70a   :  { %2928 = vmatprep.mubr.bf16.mxu1 %v1090_v21  ;;  %2949 = vmatpush3.bf16.xpose.msra.mxu1 %v1307_v55 }
 0x70b   :  { %v3408_v13 = vpop.eup %3407 }
 0x70c   :  { %v1263_v5 = vpop.permute.xlu0 %1262  ;;  %v1082_v46 = vmul.f32 %v3408_v13, %v4243_v25 }
 0x70d   :  { %3123 = vmatprep.subr.msk.bf16.mxu1 %vm329_vm1, %v1263_v5  ;;  %v1310_v36 = vsel %vm329_vm1, %v1263_v5, 0  ;;  %v1245_v31 = vpop.permute.xlu1 %1244 }
 0x70e   :  { %v1092_v35 = vpack.c.bf16 %v1083_v28, %v1082_v46 }
 0x70f   :  { %v3410_v45 = vpop.eup %3409 }
 0x710   :  { %v1235_v47 = vpop.permute.xlu0 %1234  ;;  %v3412_v17 = vpop.eup %3411  ;;  %v1085_v57 = vmul.f32 %v3410_v45, %v4247_v53 }
 0x711   :  { %2929 = vmatmul.mubr.bf16.gmra.mrb[24].mxu1 %v1091_v22  ;;  %v1084_v18 = vmul.f32 %v3412_v17, %v4239_v27  ;;  %v1564_v10 = vpop.permute.xlu1 %1563  ;;  %v1217_v17 = vld [vmem:[#allocation8 + $0x108] sm:$0xff]  ;;  %v1220_v22 = vld [vmem:[#allocation8 + $0x120] sm:$0xff] }
 0x712   :  { %2932 = vmatprep.mubr.bf16.mxu1 %v1092_v35  ;;  %2951 = vmatpush3.bf16.xpose.msra.mxu1 %v1310_v36 }
 0x713   :  { %v1093_v52 = vpack.c.bf16 %v1085_v57, %v1084_v18  ;;  %v1218_v57 = vld [vmem:[#allocation8 + $0x110] sm:$0xff] }
 0x714   :  { %v1239_v25 = vpop.permute.xlu0 %1238 }
 0x715   :  { %v1568_v27 = vpop.permute.xlu1 %1567 }
 0x718   :  { %v1243_v48 = vpop.permute.xlu0 %1242 }
 0x719   :  { %2933 = vmatmul.mubr.bf16.gmra.mrb[28].mxu1 %v1093_v52  ;;  %v1574_v32 = vpop.permute.xlu1 %1573 }
 0x71a   :  { %2952 = vmatprep.mubr.msk.bf16.mxu1 %vm329_vm1, %v1233_v63 }
 0x71c   :  { %v1247_v54 = vpop.permute.xlu0 %1246 }
 0x720   :  { %v1562_v59 = vpop.permute.xlu0 %1561 }
 0x721   :  { %2953 = vmatmul.mubr.msk.bf16.vlgmr.msra.gmra.mrb[32].mxu1 %vm329_vm1, %v1235_v47  ;;  %2968 = vmatprep.subr.bf16.mxu0 %v1562_v59 }
 0x722   :  { %2956 = vmatprep.mubr.msk.bf16.mxu1 %vm329_vm1, %v1237_v11  ;;  %2969 = vmatpush3.bf16.msra.mxu0 %v1562_v59 }
 0x723   :  { %2970 = vmatprep.subr.bf16.mxu0 %v1564_v10 }
 0x724   :  { %v1566_v53 = vpop.permute.xlu0 %1565 }
 0x726   :  { %2971 = vmatpush3.bf16.msra.mxu0 %v1564_v10 }
 0x727   :  { %2972 = vmatprep.subr.bf16.mxu0 %v1566_v53 }
 0x728   :  { %v1570_v23 = vpop.permute.xlu0 %1569 }
 0x729   :  { %2957 = vmatmul.mubr.msk.bf16.gmra.mrb[36].mxu1 %vm329_vm1, %v1239_v25  ;;  %v1216_v25 = vld [vmem:[#allocation8 + $0x100] sm:$0xff] }
 0x72a   :  { %2960 = vmatprep.mubr.msk.bf16.mxu1 %vm329_vm1, %v1241_v12  ;;  %2973 = vmatpush3.bf16.msra.mxu0 %v1566_v53 }
 0x72b   :  { %2974 = vmatprep.subr.bf16.mxu0 %v1568_v27 }
 0x72c   :  { %v1572_v26 = vpop.permute.xlu0 %1571 }
 0x72e   :  { %2975 = vmatpush3.bf16.msra.mxu0 %v1568_v27 }
 0x72f   :  { %2976 = vmatprep.subr.bf16.mxu0 %v1570_v23 }
 0x730   :  { %v1576_v15 = vpop.permute.xlu0 %1575 }
 0x731   :  { %2961 = vmatmul.mubr.msk.bf16.gmra.mrb[40].mxu1 %vm329_vm1, %v1243_v48 }
 0x732   :  { %2964 = vmatprep.mubr.msk.bf16.mxu1 %vm329_vm1, %v1245_v31  ;;  %2977 = vmatpush3.bf16.msra.mxu0 %v1570_v23 }
 0x733   :  { %2978 = vmatprep.subr.bf16.mxu0 %v1572_v26 }
 0x736   :  { %2979 = vmatpush3.bf16.msra.mxu0 %v1572_v26 }
 0x737   :  { %2980 = vmatprep.subr.bf16.mxu0 %v1574_v32 }
 0x739   :  { %2965 = vmatmul.mubr.msk.bf16.gmra.mrb[44].mxu1 %vm329_vm1, %v1247_v54  ;;  %v1219_v54 = vld [vmem:[#allocation8 + $0x118] sm:$0xff] }
 0x73a   :  { %2981 = vmatpush3.bf16.msra.mxu0 %v1574_v32 }
 0x73b   :  { %2982 = vmatprep.subr.bf16.mxu0 %v1576_v15 }
 0x73e   :  { %2983 = vmatpush3.bf16.msra.mxu0 %v1576_v15 }
 0x7a3   :  { %v4308_v34 = vpop.f32.mrb[16].mxu1 }
 0x7a4   :  { %v4310_v9 = vpop.f32.mrb[17].mxu1 }
 0x7a5   :  { %v4312_v16 = vpop.f32.mrb[18].mxu1 }
 0x7a6   :  { %v4316_v44 = vpop.f32.mrb[19].mxu1 }
 0x7dc   :  { %v4320_v21 = vpop.f32.mrb[20].mxu1 }
 0x7dd   :  { %v4322_v0 = vpop.f32.mrb[21].mxu1 }
 0x7de   :  { %v4324_v55 = vpop.f32.mrb[22].mxu1 }
 0x7df   :  { %v4328_v63 = vpop.f32.mrb[23].mxu1 }
 0x7e4   :  { %v4332_v43 = vpop.f32.mrb[24].mxu1 }
 0x7e5   :  { %v4334_v5 = vpop.f32.mrb[25].mxu1 }
 0x7e6   :  { %v4336_v46 = vpop.f32.mrb[26].mxu1 }
 0x7e7   :  { %v4340_v28 = vpop.f32.mrb[27].mxu1 }
 0x7ec   :  { %v4344_v45 = vpop.f32.mrb[28].mxu1 }
 0x7ed   :  { %v4346_v11 = vpop.f32.mrb[29].mxu1 }
 0x7ee   :  { %v4348_v47 = vpop.f32.mrb[30].mxu1 }
 0x7ef   :  { %v4352_v36 = vpop.f32.mrb[31].mxu1 }
 0x7f4   :  { %v2954_v18 = vpop.f32.mrb[32].mxu1 }
 0x7f5   :  { %v4356_v12 = vadd.f32 %v2954_v18, %v1218_v57  ;;  %v1346_v52 = vpop.f32.mrb[33].mxu1 }
 0x7f6   :  { %v4358_v48 = vadd.f32 %v1346_v52, %v1216_v25  ;;  %v2955_v31 = vpop.f32.mrb[34].mxu1 }
 0x7f7   :  { %1413 = vmax.xlane.f32.xlu0 %v4356_v12  ;;  %v1349_v59 = vpop.f32.mrb[35].mxu1  ;;  %v4362_v10 = vadd.f32 %v2955_v31, %v1219_v54 }
 0x7f8   :  { %1409 = vmax.xlane.f32.xlu1 %v4358_v48  ;;  %v4369_v35 = vadd.f32 %v1349_v59, %v1217_v17  ;;  %v1227_v17 = vld [vmem:[#allocation8 + $0x158] sm:$0xff] }
 0x7fc   :  { %1415 = vmax.xlane.f32.xlu1 %v4362_v10  ;;  %v2958_v53 = vpop.f32.mrb[36].mxu1 }
 0x7fd   :  { %v1362_v27 = vpop.f32.mrb[37].mxu1  ;;  %v4372_v33 = vadd.f32 %v2958_v53, %v1222_v8  ;;  %v1224_v8 = vld [vmem:[#allocation8 + $0x140] sm:$0xff] }
 0x7fe   :  { %v2959_v23 = vpop.f32.mrb[38].mxu1  ;;  %v1363_v7 = vadd.f32 %v1362_v27, %v1220_v22  ;;  %v1231_v27 = vld [vmem:[#allocation8 + $0x178] sm:$0xff] }
 0x7ff   :  { %v1365_v26 = vpop.f32.mrb[39].mxu1  ;;  %v4374_v13 = vadd.f32 %v2959_v23, %v1223_v14  ;;  %v1225_v14 = vld [vmem:[#allocation8 + $0x148] sm:$0xff] }
 0x800   :  { %v4378_v60 = vadd.f32 %v1365_v26, %v1221_v24  ;;  %v1230_v24 = vld [vmem:[#allocation8 + $0x170] sm:$0xff]  ;;  %v1228_v26 = vld [vmem:[#allocation8 + $0x160] sm:$0xff] }
 0x804   :  { %v2962_v32 = vpop.f32.mrb[40].mxu1 }
 0x805   :  { %v1378_v15 = vpop.f32.mrb[41].mxu1  ;;  %v4381_v59 = vadd.f32 %v2962_v32, %v1226_v37 }
 0x806   :  { %v2963_v57 = vpop.f32.mrb[42].mxu1  ;;  %v4387_v23 = vadd.f32 %v1378_v15, %v1224_v8 }
 0x807   :  { %v1381_v25 = vpop.f32.mrb[43].mxu1  ;;  %v4383_v53 = vadd.f32 %v2963_v57, %v1227_v17  ;;  %v1229_v57 = vld [vmem:[#allocation8 + $0x168] sm:$0xff] }
 0x808   :  { %v4389_v22 = vadd.f32 %v1381_v25, %v1225_v14 }
 0x80c   :  { %v2966_v18 = vpop.f32.mrb[44].mxu1 }
 0x80d   :  { %1717 = vrot.lane.b32.xlu0 %v3800_v19, %s3674_s29  ;;  %1715 = vrot.lane.b32.xlu1 %v3802_v20, %s3674_s29  ;;  %v1394_v52 = vpop.f32.mrb[45].mxu1  ;;  %v4393_v37 = vadd.f32 %v2966_v18, %v1230_v24 }
 0x80e   :  { %v2967_v31 = vpop.f32.mrb[46].mxu1  ;;  %v4399_v15 = vadd.f32 %v1394_v52, %v1228_v26 }
 0x80f   :  { %v1397_v54 = vpop.f32.mrb[47].mxu1  ;;  %v4395_v32 = vadd.f32 %v2967_v31, %v1231_v27 }
 0x810   :  { %v4401_v25 = vadd.f32 %v1397_v54, %v1229_v57 }
 0x82c   :  { %1411 = vmax.xlane.f32.xlu0 %v4369_v35 }
 0x830   :  { %1421 = vmax.xlane.f32.xlu0 %v4372_v33 }
 0x831   :  { %1423 = vmax.xlane.f32.xlu1 %v4374_v13 }
 0x834   :  { %1417 = vmax.xlane.f32.xlu0 %v1363_v7 }
 0x835   :  { %1419 = vmax.xlane.f32.xlu1 %v4378_v60 }
 0x838   :  { %1429 = vmax.xlane.f32.xlu0 %v4381_v59 }
 0x839   :  { %1431 = vmax.xlane.f32.xlu1 %v4383_v53 }
 0x83c   :  { %1425 = vmax.xlane.f32.xlu0 %v4387_v23 }
 0x83d   :  { %1427 = vmax.xlane.f32.xlu1 %v4389_v22 }
 0x840   :  { %1437 = vmax.xlane.f32.xlu0 %v4393_v37 }
 0x841   :  { %1439 = vmax.xlane.f32.xlu1 %v4395_v32 }
 0x844   :  { %1433 = vmax.xlane.f32.xlu0 %v4399_v15 }
 0x845   :  { %1435 = vmax.xlane.f32.xlu1 %v4401_v25 }
 0x85a   :  { %1719 = vrot.lane.b32.xlu0 %v3812_v30, %s3674_s29 }
 0x884   :  { %v1414_v18 = vpop.xlane.xlu0 %1413 }
 0x885   :  { %v1443_v31 = vsub.f32 %v4356_v12, %v1414_v18  ;;  %v1410_v17 = vpop.xlane.xlu1 %1409 }
 0x886   :  { %v1441_v8 = vsub.f32 %v4358_v48, %v1410_v17 }
 0x887   :  { %v1461_v14 = vmul.f32 1.442695, %v1443_v31 }
 0x888   :  { %v1457_v24 = vmul.f32 1.442695, %v1441_v8 }
 0x889   :  { %3413 = vpow2.f32 %v1461_v14  ;;  %v1416_v52 = vpop.xlane.xlu1 %1415 }
 0x88a   :  { %v1444_v54 = vsub.f32 %v4362_v10, %v1416_v52  ;;  %3415 = vpow2.f32 %v1457_v24  ;;  %v4425_v10 = vpop.permute.xlu0 %1717 }
 0x88c   :  { %v1463_v27 = vmul.f32 1.442695, %v1444_v54 }
 0x88d   :  { %v4410_v26 = vpop.permute.xlu1 %1715 }
 0x88e   :  { %3124 = vmatprep.subr.msk.bf16.mxu0 %vm329_vm1, %v4410_v26  ;;  %3417 = vpow2.f32 %v1463_v27 }
 0x893   :  { %v4414_v57 = vpop.eup %3413 }
 0x894   :  { %1493 = vadd.xlane.f32.xlu1 %v4414_v57  ;;  %v4417_v12 = vpop.eup %3415 }
 0x898   :  { %1489 = vadd.xlane.f32.xlu1 %v4417_v12  ;;  %v4420_v48 = vpop.eup %3417 }
 0x89c   :  { %1495 = vadd.xlane.f32.xlu1 %v4420_v48 }
 0x8ad   :  { %1721 = vrot.lane.b32.xlu1 %v3810_v29, %s3674_s29 }
 0x8b9   :  { %v1412_v18 = vpop.xlane.xlu0 %1411 }
 0x8ba   :  { %v1442_v31 = vsub.f32 %v4369_v35, %v1412_v18 }
 0x8bc   :  { %v1459_v17 = vmul.f32 1.442695, %v1442_v31 }
 0x8bd   :  { %v1422_v8 = vpop.xlane.xlu0 %1421 }
 0x8be   :  { %3419 = vpow2.f32 %v1459_v17  ;;  %v1424_v14 = vpop.xlane.xlu1 %1423 }
 0x8bf   :  { %v1448_v52 = vsub.f32 %v4374_v13, %v1424_v14 }
 0x8c1   :  { %v1418_v24 = vpop.xlane.xlu0 %1417  ;;  %v1471_v38 = vmul.f32 1.442695, %v1448_v52 }
 0x8c2   :  { %v1445_v54 = vsub.f32 %v1363_v7, %v1418_v24  ;;  %v1420_v27 = vpop.xlane.xlu1 %1419 }
 0x8c4   :  { %v1465_v56 = vmul.f32 1.442695, %v1445_v54 }
 0x8c5   :  { %v1430_v41 = vpop.xlane.xlu0 %1429 }
 0x8c6   :  { %3421 = vpow2.f32 %v1465_v56  ;;  %v1451_v6 = vsub.f32 %v4381_v59, %v1430_v41  ;;  %v1432_v42 = vpop.xlane.xlu1 %1431 }
 0x8c7   :  { %3423 = vpow2.f32 %v1471_v38  ;;  %v1452_v7 = vsub.f32 %v4383_v53, %v1432_v42 }
 0x8c8   :  { %v4430_v3 = vpop.eup %3419  ;;  %v1477_v18 = vmul.f32 1.442695, %v1451_v6 }
 0x8c9   :  { %1491 = vadd.xlane.f32.xlu0 %v4430_v3  ;;  %v1426_v35 = vpop.xlane.xlu0 %1425  ;;  %v1479_v41 = vmul.f32 1.442695, %v1452_v7 }
 0x8ca   :  { %v1449_v31 = vsub.f32 %v4387_v23, %v1426_v35  ;;  %v1428_v17 = vpop.xlane.xlu1 %1427  ;;  %3425 = vpow2.f32 %v1477_v18  ;;  %v1447_v35 = vsub.f32 %v4372_v33, %v1422_v8 }
 0x8cb   :  { %v1450_v56 = vsub.f32 %v4389_v22, %v1428_v17  ;;  %v1446_v17 = vsub.f32 %v4378_v60, %v1420_v27 }
 0x8cc   :  { %v1473_v13 = vmul.f32 1.442695, %v1449_v31  ;;  %v1469_v31 = vmul.f32 1.442695, %v1447_v35 }
 0x8cd   :  { %v1475_v6 = vmul.f32 1.442695, %v1450_v56  ;;  %v1438_v18 = vpop.xlane.xlu0 %1437  ;;  %v1467_v7 = vmul.f32 1.442695, %v1446_v17 }
 0x8ce   :  { %v1440_v14 = vpop.xlane.xlu1 %1439  ;;  %3427 = vpow2.f32 %v1473_v13  ;;  %v1455_v13 = vsub.f32 %v4393_v37, %v1438_v18 }
 0x8cf   :  { %3429 = vpow2.f32 %v1479_v41 }
 0x8d0   :  { %v4435_v24 = vpop.eup %3421  ;;  %3431 = vpow2.f32 %v1475_v6  ;;  %v1485_v56 = vmul.f32 1.442695, %v1455_v13  ;;  %v1456_v6 = vsub.f32 %v4395_v32, %v1440_v14 }
 0x8d1   :  { %1497 = vadd.xlane.f32.xlu1 %v4435_v24  ;;  %v4439_v52 = vpop.eup %3423  ;;  %v1434_v41 = vpop.xlane.xlu0 %1433 }
 0x8d2   :  { %v1436_v59 = vpop.xlane.xlu1 %1435  ;;  %v1487_v60 = vmul.f32 1.442695, %v1456_v6 }
 0x8d3   :  { %v1454_v38 = vsub.f32 %v4401_v25, %v1436_v59  ;;  %v1453_v59 = vsub.f32 %v4399_v15, %v1434_v41 }
 0x8d4   :  { %v4443_v42 = vpop.eup %3425 }
 0x8d5   :  { %1503 = vadd.xlane.f32.xlu1 %v4439_v52  ;;  %v1483_v53 = vmul.f32 1.442695, %v1454_v38  ;;  %v1481_v33 = vmul.f32 1.442695, %v1453_v59  ;;  %v1720_v35 = vpop.permute.xlu0 %1719 }
 0x8d7   :  { %3433 = vpow2.f32 %v1483_v53 }
 0x8d8   :  { %v4446_v23 = vpop.eup %3427  ;;  %3435 = vpow2.f32 %v1469_v31 }
 0x8d9   :  { %1509 = vadd.xlane.f32.xlu1 %v4443_v42  ;;  %v4451_v22 = vpop.eup %3429  ;;  %3437 = vpow2.f32 %v1467_v7 }
 0x8da   :  { %v4454_v54 = vpop.eup %3431  ;;  %3439 = vpow2.f32 %v1485_v56 }
 0x8db   :  { %3441 = vpow2.f32 %v1481_v33 }
 0x8dc   :  { %3443 = vpow2.f32 %v1487_v60 }
 0x8dd   :  { %1505 = vadd.xlane.f32.xlu1 %v4446_v23 }
 0x8df   :  { %1723 = vrot.lane.b32.xlu0 %v3820_v40, %s3674_s29 }
 0x8e1   :  { %1511 = vadd.xlane.f32.xlu1 %v4451_v22  ;;  %v4457_v25 = vpop.eup %3433 }
 0x8e2   :  { %v4467_v8 = vpop.eup %3435 }
 0x8e3   :  { %v4471_v37 = vpop.eup %3437 }
 0x8e4   :  { %v4475_v15 = vpop.eup %3439 }
 0x8e5   :  { %1507 = vadd.xlane.f32.xlu1 %v4454_v54  ;;  %v4479_v32 = vpop.eup %3441 }
 0x8e6   :  { %v4483_v27 = vpop.eup %3443 }
 0x8e9   :  { %1515 = vadd.xlane.f32.xlu1 %v4457_v25 }
 0x8fa   :  { %1725 = vrot.lane.b32.xlu1 %v3818_v39, %s3674_s29 }
 0x8fe   :  { %1501 = vadd.xlane.f32.xlu0 %v4467_v8  ;;  %1699 = vrot.lane.b32.xlu1 %v3802_v20, %s3675_s30 }
 0x902   :  { %1499 = vadd.xlane.f32.xlu0 %v4471_v37  ;;  %1703 = vrot.lane.b32.xlu1 %v3812_v30, %s3675_s30 }
 0x906   :  { %1707 = vrot.lane.b32.xlu1 %v3820_v40, %s3675_s30  ;;  %1517 = vadd.xlane.f32.xlu0 %v4475_v15 }
 0x90a   :  { %1711 = vrot.lane.b32.xlu1 %v3828_v50, %s3675_s30  ;;  %1513 = vadd.xlane.f32.xlu0 %v4479_v32 }
 0x90e   :  { %2030 = vrot.lane.b32.xlu1 %v3800_v19, %s3676_s7  ;;  %1519 = vadd.xlane.f32.xlu0 %v4483_v27 }
 0x921   :  { %v1494_v14 = vpop.xlane.xlu1 %1493 }
 0x924   :  { %1727 = vrot.lane.b32.xlu0 %v3828_v50, %s3674_s29 }
 0x925   :  { %v1490_v38 = vpop.xlane.xlu1 %1489 }
 0x928   :  { %1729 = vrot.lane.b32.xlu0 %v3826_v49, %s3674_s29 }
 0x929   :  { %v1496_v53 = vpop.xlane.xlu1 %1495 }
 0x92a   :  { %3445 = vrcp.f32 %v1496_v53 }
 0x92b   :  { %3447 = vrcp.f32 %v1490_v38 }
 0x92c   :  { %1701 = vrot.lane.b32.xlu0 %v3800_v19, %s3675_s30  ;;  %3449 = vrcp.f32 %v1494_v14  ;;  %v1756_v14 = vsel %vm329_vm1, %v4410_v26, 0 }
 0x92d   :  { %v1722_v31 = vpop.permute.xlu1 %1721 }
 0x92e   :  { %v1765_v26 = vsel %vm329_vm1, %v1722_v31, 0 }
 0x930   :  { %1705 = vrot.lane.b32.xlu0 %v3810_v29, %s3675_s30 }
 0x934   :  { %1709 = vrot.lane.b32.xlu0 %v3818_v39, %s3675_s30  ;;  %v3446_v19 = vpop.eup %3445 }
 0x935   :  { %v3448_v7 = vpop.eup %3447  ;;  %v1540_v56 = vmul.f32 %v3446_v19, %v4420_v48 }
 0x936   :  { %v3450_v13 = vpop.eup %3449  ;;  %v1537_v59 = vmul.f32 %v3448_v7, %v4417_v12  ;;  %v1759_v12 = vsel %vm329_vm1, %v4425_v10, 0 }
 0x937   :  { %v1539_v6 = vmul.f32 %v3450_v13, %v4414_v57  ;;  %v1762_v57 = vsel %vm329_vm1, %v1720_v35, 0 }
 0x938   :  { %1713 = vrot.lane.b32.xlu0 %v3826_v49, %s3675_s30 }
 0x939   :  { %v1554_v38 = vpack.c.bf16 %v1540_v56, %v1539_v6 }
 0x93c   :  { %2028 = vrot.lane.b32.xlu0 %v3802_v20, %s3676_s7 }
 0x956   :  { %v1492_v18 = vpop.xlane.xlu0 %1491 }
 0x957   :  { %3451 = vrcp.f32 %v1492_v18 }
 0x95a   :  { %v1724_v19 = vpop.permute.xlu0 %1723 }
 0x95e   :  { %v1498_v17 = vpop.xlane.xlu1 %1497 }
 0x95f   :  { %3453 = vrcp.f32 %v1498_v17 }
 0x961   :  { %v3452_v41 = vpop.eup %3451 }
 0x962   :  { %v1538_v20 = vmul.f32 %v3452_v41, %v4430_v3  ;;  %v1504_v33 = vpop.xlane.xlu1 %1503 }
 0x963   :  { %3455 = vrcp.f32 %v1504_v33 }
 0x964   :  { %v1553_v60 = vpack.c.bf16 %v1538_v20, %v1537_v59 }
 0x966   :  { %2984 = vmatprep.mubr.bf16.mxu0 %v1553_v60  ;;  %v1510_v53 = vpop.xlane.xlu1 %1509 }
 0x967   :  { %2985 = vmatmul.mubr.bf16.vlgmr.msra.gmra.mrb[48].mxu0 %v1554_v38 }
 0x968   :  { %3001 = vmatpush3.bf16.xpose.msra.mxu0 %v1756_v14 }
 0x969   :  { %3125 = vmatprep.subr.msk.bf16.mxu0 %vm329_vm1, %v4425_v10  ;;  %v1768_v10 = vsel %vm329_vm1, %v1724_v19, 0  ;;  %v3454_v59 = vpop.eup %3453 }
 0x96a   :  { %v1506_v48 = vpop.xlane.xlu1 %1505 }
 0x96d   :  { %v3456_v20 = vpop.eup %3455 }
 0x96e   :  { %v1512_v3 = vpop.xlane.xlu1 %1511 }
 0x970   :  { %3003 = vmatpush3.bf16.xpose.msra.mxu0 %v1759_v12 }
 0x971   :  { %3126 = vmatprep.subr.msk.bf16.mxu0 %vm329_vm1, %v1720_v35 }
 0x972   :  { %v1508_v18 = vpop.xlane.xlu1 %1507 }
 0x976   :  { %v1516_v7 = vpop.xlane.xlu1 %1515 }
 0x978   :  { %3005 = vmatpush3.bf16.xpose.msra.mxu0 %v1762_v57 }
 0x979   :  { %3127 = vmatprep.subr.msk.bf16.mxu0 %vm329_vm1, %v1722_v31 }
 0x97a   :  { %v1726_v13 = vpop.permute.xlu1 %1725 }
 0x97b   :  { %v1771_v35 = vsel %vm329_vm1, %v1726_v13, 0 }
 0x980   :  { %3007 = vmatpush3.bf16.xpose.msra.mxu0 %v1765_v26 }
 0x981   :  { %3128 = vmatprep.subr.msk.bf16.mxu0 %vm329_vm1, %v1724_v19 }
 0x988   :  { %3009 = vmatpush3.bf16.xpose.msra.mxu0 %v1768_v10 }
 0x989   :  { %3129 = vmatprep.subr.msk.bf16.mxu0 %vm329_vm1, %v1726_v13 }
 0x98b   :  { %v1502_v41 = vpop.xlane.xlu0 %1501 }
 0x98c   :  { %3457 = vrcp.f32 %v1502_v41 }
 0x98d   :  { %3459 = vrcp.f32 %v1508_v18 }
 0x98e   :  { %3461 = vrcp.f32 %v1506_v48  ;;  %v1541_v48 = vmul.f32 %v3454_v59, %v4435_v24 }
 0x98f   :  { %v1500_v31 = vpop.xlane.xlu0 %1499 }
 0x990   :  { %3011 = vmatpush3.bf16.xpose.msra.mxu0 %v1771_v35  ;;  %3463 = vrcp.f32 %v1500_v31 }
 0x991   :  { %3465 = vrcp.f32 %v1512_v3  ;;  %v1544_v3 = vmul.f32 %v3456_v20, %v4439_v52 }
 0x992   :  { %3467 = vrcp.f32 %v1510_v53 }
 0x993   :  { %v1518_v56 = vpop.xlane.xlu0 %1517  ;;  %3469 = vrcp.f32 %v1516_v7 }
 0x996   :  { %v3458_v6 = vpop.eup %3457 }
 0x997   :  { %v1514_v60 = vpop.xlane.xlu0 %1513  ;;  %v3460_v38 = vpop.eup %3459  ;;  %v1543_v14 = vmul.f32 %v3458_v6, %v4467_v8 }
 0x998   :  { %3471 = vrcp.f32 %v1514_v60  ;;  %v3462_v17 = vpop.eup %3461  ;;  %v1546_v18 = vmul.f32 %v3460_v38, %v4454_v54  ;;  %v1700_v54 = vpop.permute.xlu1 %1699 }
 0x999   :  { %v1545_v26 = vmul.f32 %v3462_v17, %v4446_v23  ;;  %v1556_v19 = vpack.c.bf16 %v1544_v3, %v1543_v14 }
 0x99a   :  { %v3464_v33 = vpop.eup %3463 }
 0x99b   :  { %v1520_v12 = vpop.xlane.xlu0 %1519  ;;  %v1542_v57 = vmul.f32 %v3464_v33, %v4471_v37  ;;  %v3466_v7 = vpop.eup %3465  ;;  %v1557_v13 = vpack.c.bf16 %v1546_v18, %v1545_v26 }
 0x99c   :  { %3473 = vrcp.f32 %v1520_v12  ;;  %v3468_v8 = vpop.eup %3467  ;;  %v1548_v37 = vmul.f32 %v3466_v7, %v4451_v22  ;;  %v1704_v38 = vpop.permute.xlu1 %1703 }
 0x99d   :  { %v1555_v53 = vpack.c.bf16 %v1542_v57, %v1541_v48  ;;  %3475 = vrcp.f32 %v1518_v56  ;;  %v3470_v24 = vpop.eup %3469  ;;  %v1547_v31 = vmul.f32 %v3468_v8, %v4443_v42 }
 0x99e   :  { %v1550_v56 = vmul.f32 %v3470_v24, %v4457_v25 }
 0x99f   :  { %2988 = vmatprep.mubr.bf16.mxu0 %v1555_v53  ;;  %v1728_v10 = vpop.permute.xlu0 %1727  ;;  %v1558_v59 = vpack.c.bf16 %v1548_v37, %v1547_v31 }
 0x9a0   :  { %v1774_v41 = vsel %vm329_vm1, %v1728_v10, 0  ;;  %2989 = vmatmul.mubr.bf16.gmra.mrb[52].mxu0 %v1556_v19  ;;  %3130 = vmatprep.subr.msk.bf16.mxu0 %vm329_vm1, %v1728_v10  ;;  %v1708_v12 = vpop.permute.xlu1 %1707 }
 0x9a1   :  { %2992 = vmatprep.mubr.bf16.mxu0 %v1557_v13  ;;  %3013 = vmatpush3.bf16.xpose.msra.mxu0 %v1774_v41 }
 0x9a2   :  { %v3472_v52 = vpop.eup %3471 }
 0x9a3   :  { %v1730_v23 = vpop.permute.xlu0 %1729  ;;  %v1549_v35 = vmul.f32 %v3472_v52, %v4479_v32 }
 0x9a4   :  { %3131 = vmatprep.subr.msk.bf16.mxu0 %vm329_vm1, %v1730_v23  ;;  %v1777_v17 = vsel %vm329_vm1, %v1730_v23, 0  ;;  %v1712_v57 = vpop.permute.xlu1 %1711 }
 0x9a5   :  { %v1559_v60 = vpack.c.bf16 %v1550_v56, %v1549_v35  ;;  %v1687_v56 = vld [vmem:[#allocation8 + $0x1a0] sm:$0xff] }
 0x9a6   :  { %v3474_v20 = vpop.eup %3473 }
 0x9a7   :  { %v1702_v6 = vpop.permute.xlu0 %1701  ;;  %v3476_v33 = vpop.eup %3475  ;;  %v1552_v22 = vmul.f32 %v3474_v20, %v4483_v27 }
 0x9a8   :  { %2993 = vmatmul.mubr.bf16.gmra.mrb[56].mxu0 %v1558_v59  ;;  %v1551_v14 = vmul.f32 %v3476_v33, %v4475_v15  ;;  %v2031_v3 = vpop.permute.xlu1 %2030  ;;  %v1685_v33 = vld [vmem:[#allocation8 + $0x190] sm:$0xff] }
 0x9a9   :  { %2996 = vmatprep.mubr.bf16.mxu0 %v1559_v60  ;;  %3015 = vmatpush3.bf16.xpose.msra.mxu0 %v1777_v17  ;;  %v1689_v17 = vld [vmem:[#allocation8 + $0x1b0] sm:$0xff] }
 0x9aa   :  { %v1560_v42 = vpack.c.bf16 %v1552_v22, %v1551_v14  ;;  %v1683_v22 = vld [vmem:[#allocation8 + $0x180] sm:$0xff] }
 0x9ab   :  { %v1706_v32 = vpop.permute.xlu0 %1705 }
 0x9af   :  { %v1710_v48 = vpop.permute.xlu0 %1709 }
 0x9b0   :  { %2997 = vmatmul.mubr.bf16.gmra.mrb[60].mxu0 %v1560_v42  ;;  %v1684_v42 = vld [vmem:[#allocation8 + $0x188] sm:$0xff] }
 0x9b1   :  { %3016 = vmatprep.mubr.msk.bf16.mxu0 %vm329_vm1, %v1700_v54 }
 0x9b3   :  { %v1714_v25 = vpop.permute.xlu0 %1713 }
 0x9b7   :  { %v2029_v18 = vpop.permute.xlu0 %2028 }
 0x9b8   :  { %3017 = vmatmul.mubr.msk.bf16.vlgmr.msra.gmra.mrb[64].mxu0 %vm329_vm1, %v1702_v6  ;;  %3032 = vmatprep.subr.bf16.mxu0 %v2029_v18 }
 0x9b9   :  { %3084 = vmatprep.subr.bf16.mxu1 %v2029_v18  ;;  %3020 = vmatprep.mubr.msk.bf16.mxu0 %vm329_vm1, %v1704_v38 }
 0x9ba   :  { %3033 = vmatpush3.bf16.msra.mxu0 %v2029_v18  ;;  %3092 = vmatpush3.bf16.msra.mxu1 %v2029_v18 }
 0x9bb   :  { %3034 = vmatprep.subr.bf16.mxu0 %v2031_v3  ;;  %3085 = vmatprep.subr.bf16.mxu1 %v2031_v3 }
 0x9be   :  { %3035 = vmatpush3.bf16.msra.mxu0 %v2031_v3  ;;  %3093 = vmatpush3.bf16.msra.mxu1 %v2031_v3 }
 0x9c0   :  { %3021 = vmatmul.mubr.msk.bf16.gmra.mrb[68].mxu0 %vm329_vm1, %v1706_v32 }
 0x9c1   :  { %3024 = vmatprep.mubr.msk.bf16.mxu0 %vm329_vm1, %v1708_v12 }
 0x9c8   :  { %3025 = vmatmul.mubr.msk.bf16.gmra.mrb[72].mxu0 %vm329_vm1, %v1710_v48 }
 0x9c9   :  { %3028 = vmatprep.mubr.msk.bf16.mxu0 %vm329_vm1, %v1712_v57  ;;  %v1686_v57 = vld [vmem:[#allocation8 + $0x198] sm:$0xff] }
 0x9d0   :  { %3029 = vmatmul.mubr.msk.bf16.gmra.mrb[76].mxu0 %vm329_vm1, %v1714_v25 }
 0xa3a   :  { %v4540_v15 = vpop.f32.mrb[48].mxu0 }
 0xa3b   :  { %v4542_v27 = vpop.f32.mrb[49].mxu0 }
 0xa3c   :  { %v4544_v53 = vpop.f32.mrb[50].mxu0 }
 0xa3d   :  { %v4548_v19 = vpop.f32.mrb[51].mxu0 }
 0xa73   :  { %v4552_v10 = vpop.f32.mrb[52].mxu0 }
 0xa74   :  { %v4554_v13 = vpop.f32.mrb[53].mxu0 }
 0xa75   :  { %v4556_v8 = vpop.f32.mrb[54].mxu0 }
 0xa76   :  { %v4560_v24 = vpop.f32.mrb[55].mxu0 }
 0xa7b   :  { %v4564_v54 = vpop.f32.mrb[56].mxu0 }
 0xa7c   :  { %v4566_v37 = vpop.f32.mrb[57].mxu0 }
 0xa7d   :  { %v4568_v23 = vpop.f32.mrb[58].mxu0 }
 0xa7e   :  { %v4572_v31 = vpop.f32.mrb[59].mxu0 }
 0xa83   :  { %v4576_v59 = vpop.f32.mrb[60].mxu0 }
 0xa84   :  { %v4578_v20 = vpop.f32.mrb[61].mxu0 }
 0xa85   :  { %v4580_v6 = vpop.f32.mrb[62].mxu0 }
 0xa86   :  { %v4584_v38 = vpop.f32.mrb[63].mxu0 }
 0xa8b   :  { %v3018_v32 = vpop.f32.mrb[64].mxu0 }
 0xa8c   :  { %v4588_v14 = vadd.f32 %v3018_v32, %v1685_v33  ;;  %v1813_v12 = vpop.f32.mrb[65].mxu0  ;;  %v1690_v32 = vld [vmem:[#allocation8 + $0x1b8] sm:$0xff] }
 0xa8d   :  { %v4590_v48 = vadd.f32 %v1813_v12, %v1683_v22  ;;  %v3019_v25 = vpop.f32.mrb[66].mxu0 }
 0xa8e   :  { %1880 = vmax.xlane.f32.xlu0 %v4588_v14  ;;  %v1816_v18 = vpop.f32.mrb[67].mxu0  ;;  %v4596_v60 = vadd.f32 %v3019_v25, %v1686_v57  ;;  %v1693_v57 = vld [vmem:[#allocation8 + $0x1d0] sm:$0xff] }
 0xa8f   :  { %v4593_v3 = vadd.f32 %v1816_v18, %v1684_v42  ;;  %1876 = vmax.xlane.f32.xlu1 %v4590_v48  ;;  %v1688_v18 = vld [vmem:[#allocation8 + $0x1a8] sm:$0xff] }
 0xa92   :  { %1878 = vmax.xlane.f32.xlu0 %v4593_v3 }
 0xa93   :  { %1882 = vmax.xlane.f32.xlu1 %v4596_v60  ;;  %v3022_v33 = vpop.f32.mrb[68].mxu0 }
 0xa94   :  { %v4600_v22 = vadd.f32 %v3022_v33, %v1689_v17  ;;  %v1829_v12 = vpop.f32.mrb[69].mxu0  ;;  %v1694_v33 = vld [vmem:[#allocation8 + $0x1d8] sm:$0xff] }
 0xa95   :  { %v3023_v35 = vpop.f32.mrb[70].mxu0  ;;  %v4605_v25 = vadd.f32 %v1829_v12, %v1687_v56  ;;  %v1692_v12 = vld [vmem:[#allocation8 + $0x1c8] sm:$0xff] }
 0xa96   :  { %v4602_v41 = vadd.f32 %v3023_v35, %v1690_v32  ;;  %1888 = vmax.xlane.f32.xlu0 %v4600_v22  ;;  %v1832_v42 = vpop.f32.mrb[71].mxu0  ;;  %v1691_v32 = vld [vmem:[#allocation8 + $0x1c0] sm:$0xff] }
 0xa97   :  { %v4608_v26 = vadd.f32 %v1832_v42, %v1688_v18  ;;  %v1697_v42 = vld [vmem:[#allocation8 + $0x1f0] sm:$0xff] }
 0xa98   :  { %1890 = vmax.xlane.f32.xlu1 %v4602_v41 }
 0xa9a   :  { %1884 = vmax.xlane.f32.xlu0 %v4605_v25 }
 0xa9b   :  { %v3026_v17 = vpop.f32.mrb[72].mxu0 }
 0xa9c   :  { %v4611_v52 = vadd.f32 %v3026_v17, %v1693_v57  ;;  %1886 = vmax.xlane.f32.xlu1 %v4608_v26  ;;  %v1845_v35 = vpop.f32.mrb[73].mxu0 }
 0xa9d   :  { %v3027_v7 = vpop.f32.mrb[74].mxu0  ;;  %v4617_v2 = vadd.f32 %v1845_v35, %v1691_v32  ;;  %v1698_v32 = vld [vmem:[#allocation8 + $0x1f8] sm:$0xff] }
 0xa9e   :  { %v4614_v51 = vadd.f32 %v3027_v7, %v1694_v33  ;;  %1896 = vmax.xlane.f32.xlu0 %v4611_v52  ;;  %v1848_v56 = vpop.f32.mrb[75].mxu0  ;;  %v1695_v33 = vld [vmem:[#allocation8 + $0x1e0] sm:$0xff] }
 0xa9f   :  { %v4620_v18 = vadd.f32 %v1848_v56, %v1692_v12  ;;  %v1696_v12 = vld [vmem:[#allocation8 + $0x1e8] sm:$0xff] }
 0xaa0   :  { %1898 = vmax.xlane.f32.xlu1 %v4614_v51 }
 0xaa2   :  { %1892 = vmax.xlane.f32.xlu0 %v4617_v2 }
 0xaa3   :  { %v3030_v57 = vpop.f32.mrb[76].mxu0 }
 0xaa4   :  { %v4623_v17 = vadd.f32 %v3030_v57, %v1697_v42  ;;  %1894 = vmax.xlane.f32.xlu1 %v4620_v18  ;;  %v1861_v7 = vpop.f32.mrb[77].mxu0 }
 0xaa5   :  { %v3031_v4 = vpop.f32.mrb[78].mxu0  ;;  %v4627_v35 = vadd.f32 %v1861_v7, %v1695_v33 }
 0xaa6   :  { %1904 = vmax.xlane.f32.xlu0 %v4623_v17  ;;  %v1864_v61 = vpop.f32.mrb[79].mxu0  ;;  %v4638_v56 = vadd.f32 %v3031_v4, %v1698_v32 }
 0xaa7   :  { %v4641_v42 = vadd.f32 %v1864_v61, %v1696_v12 }
 0xaaa   :  { %1900 = vmax.xlane.f32.xlu0 %v4627_v35 }
 0xab5   :  { %2036 = vrot.lane.b32.xlu1 %v3820_v40, %s3676_s7 }
 0xac0   :  { %2032 = vrot.lane.b32.xlu0 %v3812_v30, %s3676_s7 }
 0xac4   :  { %2034 = vrot.lane.b32.xlu0 %v3810_v29, %s3676_s7 }
 0xac8   :  { %2040 = vrot.lane.b32.xlu0 %v3828_v50, %s3676_s7 }
 0xad9   :  { %1906 = vmax.xlane.f32.xlu1 %v4638_v56 }
 0xadd   :  { %1902 = vmax.xlane.f32.xlu1 %v4641_v42 }
 0xaee   :  { %2038 = vrot.lane.b32.xlu1 %v3818_v39, %s3676_s7 }
 0xb1b   :  { %v1881_v30 = vpop.xlane.xlu0 %1880 }
 0xb1c   :  { %v1910_v40 = vsub.f32 %v4588_v14, %v1881_v30  ;;  %v1877_v29 = vpop.xlane.xlu1 %1876 }
 0xb1d   :  { %v1908_v57 = vsub.f32 %v4590_v48, %v1877_v29 }
 0xb1e   :  { %v1928_v50 = vmul.f32 1.442695, %v1910_v40 }
 0xb1f   :  { %v1879_v7 = vpop.xlane.xlu0 %1878  ;;  %v1924_v4 = vmul.f32 1.442695, %v1908_v57 }
 0xb20   :  { %3477 = vpow2.f32 %v1928_v50  ;;  %v1883_v33 = vpop.xlane.xlu1 %1882  ;;  %v1909_v61 = vsub.f32 %v4593_v3, %v1879_v7 }
 0xb21   :  { %v1911_v32 = vsub.f32 %v4596_v60, %v1883_v33  ;;  %3479 = vpow2.f32 %v1924_v4 }
 0xb22   :  { %v1926_v14 = vmul.f32 1.442695, %v1909_v61 }
 0xb23   :  { %v1930_v12 = vmul.f32 1.442695, %v1911_v32  ;;  %v1889_v1 = vpop.xlane.xlu0 %1888 }
 0xb24   :  { %v1914_v39 = vsub.f32 %v4600_v22, %v1889_v1 }
 0xb25   :  { %v1891_v58 = vpop.xlane.xlu1 %1890  ;;  %3481 = vpow2.f32 %v1930_v12 }
 0xb26   :  { %v1936_v62 = vmul.f32 1.442695, %v1914_v39  ;;  %v1915_v48 = vsub.f32 %v4602_v41, %v1891_v58 }
 0xb27   :  { %v1885_v30 = vpop.xlane.xlu0 %1884 }
 0xb28   :  { %3483 = vpow2.f32 %v1936_v62  ;;  %v1912_v40 = vsub.f32 %v4605_v25, %v1885_v30  ;;  %v1938_v50 = vmul.f32 1.442695, %v1915_v48 }
 0xb29   :  { %v1887_v29 = vpop.xlane.xlu1 %1886  ;;  %3485 = vpow2.f32 %v1926_v14 }
 0xb2a   :  { %v4653_v57 = vpop.eup %3477  ;;  %v1932_v60 = vmul.f32 1.442695, %v1912_v40  ;;  %v1913_v3 = vsub.f32 %v4608_v26, %v1887_v29 }
 0xb2b   :  { %1960 = vadd.xlane.f32.xlu1 %v4653_v57  ;;  %v1897_v1 = vpop.xlane.xlu0 %1896  ;;  %v4658_v41 = vpop.eup %3479 }
 0xb2c   :  { %3487 = vpow2.f32 %v1932_v60  ;;  %v1934_v22 = vmul.f32 1.442695, %v1913_v3  ;;  %v1918_v7 = vsub.f32 %v4611_v52, %v1897_v1 }
 0xb2d   :  { %v1899_v58 = vpop.xlane.xlu1 %1898  ;;  %3489 = vpow2.f32 %v1938_v50 }
 0xb2e   :  { %3491 = vpow2.f32 %v1934_v22  ;;  %v1944_v25 = vmul.f32 1.442695, %v1918_v7  ;;  %v1919_v52 = vsub.f32 %v4614_v51, %v1899_v58 }
 0xb2f   :  { %1956 = vadd.xlane.f32.xlu1 %v4658_v41  ;;  %v1893_v62 = vpop.xlane.xlu0 %1892  ;;  %v4662_v4 = vpop.eup %3481 }
 0xb30   :  { %v1916_v26 = vsub.f32 %v4617_v2, %v1893_v62  ;;  %3493 = vpow2.f32 %v1944_v25 }
 0xb31   :  { %v1895_v33 = vpop.xlane.xlu1 %1894 }
 0xb32   :  { %v4664_v32 = vpop.eup %3483  ;;  %v1917_v61 = vsub.f32 %v4620_v18, %v1895_v33  ;;  %v1940_v39 = vmul.f32 1.442695, %v1916_v26  ;;  %v1946_v18 = vmul.f32 1.442695, %v1919_v52  ;;  %v4929_v33 = vpack.i.bf16 %v4312_v16, %v4308_v34 }
 0xb33   :  { %1962 = vadd.xlane.f32.xlu1 %v4662_v4  ;;  %1968 = vadd.xlane.f32.xlu0 %v4664_v32  ;;  %v1905_v12 = vpop.xlane.xlu0 %1904  ;;  %v4671_v2 = vpop.eup %3485 }
 0xb34   :  { %v1942_v14 = vmul.f32 1.442695, %v1917_v61  ;;  %v1922_v48 = vsub.f32 %v4623_v17, %v1905_v12  ;;  %v4930_v61 = vpack.i.bf16 %v4548_v19, %v4542_v27  ;;  %v4931_v12 = vpack.i.bf16 %v4328_v63, %v4322_v0 }
 0xb35   :  { %v2037_v7 = vpop.permute.xlu1 %2036  ;;  %v4933_v27 = vpack.i.bf16 %v4340_v28, %v4334_v5  ;;  %v4934_v5 = vpack.i.bf16 %v4316_v44, %v4310_v9  ;;  %v4935_v28 = vpack.i.bf16 %v4544_v53, %v4540_v15  ;;  %v4938_v9 = vpack.i.bf16 %v4336_v46, %v4332_v43 }
 0xb36   :  { %v4673_v30 = vpop.eup %3487  ;;  %3495 = vpow2.f32 %v1942_v14  ;;  %v1952_v40 = vmul.f32 1.442695, %v1922_v48 }
 0xb37   :  { %1958 = vadd.xlane.f32.xlu1 %v4671_v2  ;;  %1964 = vadd.xlane.f32.xlu0 %v4673_v30  ;;  %v1901_v51 = vpop.xlane.xlu0 %1900  ;;  %3497 = vpow2.f32 %v1940_v39  ;;  %v4678_v60 = vpop.eup %3489 }
 0xb38   :  { %v1920_v29 = vsub.f32 %v4627_v35, %v1901_v51  ;;  %v4680_v3 = vpop.eup %3491  ;;  %3499 = vpow2.f32 %v1952_v40 }
 0xb39   :  { %3501 = vpow2.f32 %v1946_v18 }
 0xb3a   :  { %v1948_v17 = vmul.f32 1.442695, %v1920_v29  ;;  %v4684_v1 = vpop.eup %3493 }
 0xb3b   :  { %1966 = vadd.xlane.f32.xlu1 %v4680_v3  ;;  %1970 = vadd.xlane.f32.xlu0 %v4678_v60  ;;  %v2033_v50 = vpop.permute.xlu0 %2032 }
 0xb3c   :  { %3036 = vmatprep.subr.bf16.mxu0 %v2033_v50  ;;  %3086 = vmatprep.subr.bf16.mxu1 %v2033_v50  ;;  %3503 = vpow2.f32 %v1948_v17 }
 0xb3d   :  { %3037 = vmatpush3.bf16.msra.mxu0 %v2033_v50  ;;  %3094 = vmatpush3.bf16.msra.mxu1 %v2033_v50 }
 0xb3f   :  { %1976 = vadd.xlane.f32.xlu0 %v4684_v1  ;;  %v2035_v35 = vpop.permute.xlu0 %2034 }
 0xb40   :  { %v4687_v22 = vpop.eup %3495  ;;  %3038 = vmatprep.subr.bf16.mxu0 %v2035_v35  ;;  %3087 = vmatprep.subr.bf16.mxu1 %v2035_v35 }
 0xb41   :  { %1974 = vadd.xlane.f32.xlu1 %v4687_v22  ;;  %3039 = vmatpush3.bf16.msra.mxu0 %v2035_v35  ;;  %v4690_v58 = vpop.eup %3497 }
 0xb42   :  { %3095 = vmatpush3.bf16.msra.mxu1 %v2035_v35  ;;  %3040 = vmatprep.subr.bf16.mxu0 %v2037_v7  ;;  %v4693_v62 = vpop.eup %3499 }
 0xb43   :  { %3088 = vmatprep.subr.bf16.mxu1 %v2037_v7  ;;  %1972 = vadd.xlane.f32.xlu0 %v4690_v58  ;;  %v4696_v25 = vpop.eup %3501  ;;  %v2041_v0 = vpop.permute.xlu0 %2040 }
 0xb45   :  { %1984 = vadd.xlane.f32.xlu1 %v4693_v62  ;;  %3041 = vmatpush3.bf16.msra.mxu0 %v2037_v7 }
 0xb46   :  { %3096 = vmatpush3.bf16.msra.mxu1 %v2037_v7  ;;  %v4699_v26 = vpop.eup %3503 }
 0xb47   :  { %1978 = vadd.xlane.f32.xlu0 %v4696_v25 }
 0xb49   :  { %1980 = vadd.xlane.f32.xlu1 %v4699_v26 }
 0xb5a   :  { %2042 = vrot.lane.b32.xlu1 %v3826_v49, %s3676_s7  ;;  %v4932_v49 = vpack.i.bf16 %v4560_v24, %v4554_v13  ;;  %v4936_v24 = vpack.i.bf16 %v4324_v55, %v4320_v21 }
 0xb5e   :  { %3159 = vrot.lane.b32.xlu1 %v4929_v33, %s3666_s10 }
 0xb62   :  { %3164 = vrot.lane.b32.xlu1 %v4930_v61, %s3677_s8 }
 0xb66   :  { %v1907_v52 = vpop.xlane.xlu1 %1906  ;;  %3174 = vrot.lane.b32.xlu1 %v4931_v12, %s3666_s10 }
 0xb67   :  { %v1923_v34 = vsub.f32 %v4638_v56, %v1907_v52  ;;  %v4937_v56 = vpack.i.bf16 %v4556_v8, %v4552_v10 }
 0xb69   :  { %v1954_v19 = vmul.f32 1.442695, %v1923_v34 }
 0xb6a   :  { %v1903_v39 = vpop.xlane.xlu1 %1902  ;;  %3184 = vrot.lane.b32.xlu1 %v4932_v49, %s3677_s8 }
 0xb6b   :  { %v1921_v16 = vsub.f32 %v4641_v42, %v1903_v39 }
 0xb6d   :  { %v1950_v14 = vmul.f32 1.442695, %v1921_v16 }
 0xb6e   :  { %v2039_v48 = vpop.permute.xlu1 %2038  ;;  %3194 = vrot.lane.b32.xlu1 %v4933_v27, %s3666_s10 }
 0xb6f   :  { %3505 = vpow2.f32 %v1950_v14  ;;  %3042 = vmatprep.subr.bf16.mxu0 %v2039_v48  ;;  %3089 = vmatprep.subr.bf16.mxu1 %v2039_v48 }
 0xb70   :  { %3043 = vmatpush3.bf16.msra.mxu0 %v2039_v48  ;;  %3097 = vmatpush3.bf16.msra.mxu1 %v2039_v48  ;;  %3507 = vpow2.f32 %v1954_v19 }
 0xb71   :  { %3044 = vmatprep.subr.bf16.mxu0 %v2041_v0  ;;  %3090 = vmatprep.subr.bf16.mxu1 %v2041_v0 }
 0xb74   :  { %3045 = vmatpush3.bf16.msra.mxu0 %v2041_v0  ;;  %3098 = vmatpush3.bf16.msra.mxu1 %v2041_v0 }
 0xb79   :  { %v4726_v63 = vpop.eup %3505 }
 0xb7a   :  { %1982 = vadd.xlane.f32.xlu0 %v4726_v63  ;;  %v4729_v13 = vpop.eup %3507 }
 0xb7e   :  { %1986 = vadd.xlane.f32.xlu0 %v4729_v13 }
 0xb94   :  { %3154 = vrot.lane.b32.xlu0 %v4934_v5, %s3666_s10 }
 0xb98   :  { %3169 = vrot.lane.b32.xlu0 %v4935_v28, %s3677_s8 }
 0xb9c   :  { %3179 = vrot.lane.b32.xlu0 %v4936_v24, %s3666_s10 }
 0xba0   :  { %3189 = vrot.lane.b32.xlu0 %v4937_v56, %s3677_s8 }
 0xba4   :  { %3199 = vrot.lane.b32.xlu0 %v4938_v9, %s3666_s10 }
 0xbb8   :  { %v1961_v44 = vpop.xlane.xlu1 %1960 }
 0xbbc   :  { %v1957_v42 = vpop.xlane.xlu1 %1956 }
 0xbbd   :  { %3509 = vrcp.f32 %v1957_v42 }
 0xbc0   :  { %v1963_v40 = vpop.xlane.xlu1 %1962  ;;  %v1969_v15 = vpop.xlane.xlu0 %1968 }
 0xbc4   :  { %v1959_v53 = vpop.xlane.xlu1 %1958  ;;  %v1965_v51 = vpop.xlane.xlu0 %1964 }
 0xbc5   :  { %3511 = vrcp.f32 %v1959_v53 }
 0xbc6   :  { %3513 = vrcp.f32 %v1965_v51 }
 0xbc7   :  { %v3510_v8 = vpop.eup %3509 }
 0xbc8   :  { %v1967_v21 = vpop.xlane.xlu1 %1966  ;;  %v1971_v55 = vpop.xlane.xlu0 %1970  ;;  %v2004_v29 = vmul.f32 %v3510_v8, %v4658_v41  ;;  %v3283_v8 = vld [vmem:[#allocation7] sm:$0xff]  }
 0xbc9   :  { %3515 = vrcp.f32 %v1967_v21 }
 0xbca   :  { %3517 = vrcp.f32 %v1963_v40 }
 0xbcb   :  { %3519 = vrcp.f32 %v1971_v55 }
 0xbcc   :  { %v1977_v10 = vpop.xlane.xlu0 %1976  ;;  %3521 = vrcp.f32 %v1961_v44 }
 0xbcd   :  { %3523 = vrcp.f32 %v1969_v15 }
 0xbce   :  { %v1975_v43 = vpop.xlane.xlu1 %1974 }
 0xbcf   :  { %v3512_v46 = vpop.eup %3511  ;;  %3525 = vrcp.f32 %v1975_v43  ;;  %v3284_v43 = vld [vmem:[#allocation7 + $0x8] sm:$0xff]  }
 0xbd0   :  { %v1973_v18 = vpop.xlane.xlu0 %1972  ;;  %v2005_v17 = vmul.f32 %v3512_v46, %v4671_v2  ;;  %v3514_v50 = vpop.eup %3513 }
 0xbd1   :  { %3527 = vrcp.f32 %v1973_v18  ;;  %v2008_v52 = vmul.f32 %v3514_v50, %v4673_v30 }
 0xbd2   :  { %v1985_v35 = vpop.xlane.xlu1 %1984  ;;  %v2020_v7 = vpack.c.bf16 %v2005_v17, %v2004_v29 }
 0xbd3   :  { %v3516_v33 = vpop.eup %3515 }
 0xbd4   :  { %3048 = vmatprep.mubr.bf16.mxu0 %v2020_v7  ;;  %v1979_v61 = vpop.xlane.xlu0 %1978  ;;  %v2009_v12 = vmul.f32 %v3516_v33, %v4680_v3  ;;  %v3518_v39 = vpop.eup %3517 }
 0xbd5   :  { %3529 = vrcp.f32 %v1979_v61  ;;  %v3520_v49 = vpop.eup %3519  ;;  %v2007_v48 = vmul.f32 %v3518_v39, %v4662_v4  ;;  %v4940_v39 = vpack.i.bf16 %v4572_v31, %v4566_v37  ;;  %v4943_v37 = vpack.i.bf16 %v4580_v6, %v4576_v59 }
 0xbd6   :  { %3531 = vrcp.f32 %v1977_v10  ;;  %v1981_v34 = vpop.xlane.xlu1 %1980  ;;  %v2022_v16 = vpack.c.bf16 %v2009_v12, %v2008_v52  ;;  %v3522_v41 = vpop.eup %3521  ;;  %v2011_v27 = vmul.f32 %v3520_v49, %v4678_v60  ;;  %v4939_v52 = vpack.i.bf16 %v4568_v23, %v4564_v54 }
 0xbd7   :  { %v3524_v14 = vpop.eup %3523  ;;  %v2006_v30 = vmul.f32 %v3522_v41, %v4653_v57  ;;  %3533 = vrcp.f32 %v1981_v34  ;;  %v4942_v54 = vpack.i.bf16 %v4352_v36, %v4346_v11  ;;  %v4944_v23 = vpack.i.bf16 %v4584_v38, %v4578_v20 }
 0xbd8   :  { %3052 = vmatprep.mubr.bf16.mxu1 %v2022_v16  ;;  %v2010_v3 = vmul.f32 %v3524_v14, %v4664_v32  ;;  %v4941_v14 = vpack.i.bf16 %v4348_v47, %v4344_v45 }
 0xbd9   :  { %v3526_v2 = vpop.eup %3525  ;;  %v2021_v24 = vpack.c.bf16 %v2007_v48, %v2006_v30 }
 0xbda   :  { %v2043_v19 = vpop.permute.xlu1 %2042  ;;  %v2013_v28 = vmul.f32 %v3526_v2, %v4687_v22  ;;  %v2023_v56 = vpack.c.bf16 %v2011_v27, %v2010_v3 }
 0xbdb   :  { %v3528_v0 = vpop.eup %3527  ;;  %3046 = vmatprep.subr.bf16.mxu0 %v2043_v19  ;;  %3091 = vmatprep.subr.bf16.mxu1 %v2043_v19 }
 0xbdc   :  { %3047 = vmatpush3.bf16.msra.mxu0 %v2043_v19  ;;  %3099 = vmatpush3.bf16.msra.mxu1 %v2043_v19  ;;  %v2012_v5 = vmul.f32 %v3528_v0, %v4690_v58 }
 0xbdd   :  { %3064 = vmatprep.subr.bf16.mxu1 %v3283_v8 }
 0xbde   :  { %v2024_v9 = vpack.c.bf16 %v2013_v28, %v2012_v5  ;;  %v3160_v36 = vpop.permute.xlu1 %3159 }
 0xbdf   :  { %v3530_v4 = vpop.eup %3529  ;;  %3049 = vmatmul.mubr.bf16.vlgmr.msra.gmra.mrb[80].mxu0 %v2021_v24  ;;  %3053 = vmatmul.mubr.bf16.vlgmr.msra.gmra.mrb[48].mxu1 %v2023_v56  ;;  %v3162_v5 = vunpack.i.h.bf16 %v3160_v36  ;;  %v3161_v28 = vunpack.i.l.bf16 %v3160_v36 }
 0xbe0   :  { %v3532_v60 = vpop.eup %3531  ;;  %3056 = vmatprep.mubr.bf16.mxu1 %v2024_v9  ;;  %v2015_v57 = vmul.f32 %v3530_v4, %v4696_v25  ;;  %3065 = vmatpush3.bf16.msra.mxu1 %v3283_v8 }
 0xbe1   :  { %v2014_v32 = vmul.f32 %v3532_v60, %v4684_v1  ;;  %v3534_v22 = vpop.eup %3533  ;;  %3066 = vmatprep.subr.bf16.mxu1 %v3284_v43  ;;  %v4945_v60 = vld [vmem:[#allocation17_spill] sm:$0xff] }
 0xbe2   :  { %v2016_v15 = vmul.f32 %v3534_v22, %v4699_v26  ;;  %v3165_v0 = vpop.permute.xlu1 %3164  ;;  %v4947_v22 = vld [vmem:[#allocation18_spill] sm:$0xff] }
 0xbe3   :  { %v2025_v44 = vpack.c.bf16 %v2015_v57, %v2014_v32  ;;  %v2344_v57 = vsel %vm329_vm1, %v4945_v60, %v3162_v5  ;;  %v4946_v32 = vld [vmem:[#allocation15_spill] sm:$0xff] }
 0xbe4   :  { %3067 = vmatpush3.bf16.msra.mxu1 %v3284_v43 }
 0xbe6   :  { %v3175_v59 = vpop.permute.xlu1 %3174 }
 0xbe7   :  { %3057 = vmatmul.mubr.bf16.gmra.mrb[52].mxu1 %v2025_v44  ;;  %v2343_v44 = vsel %vm329_vm1, %v4946_v32, %v3161_v28 }
 0xbea   :  { %v3185_v3 = vpop.permute.xlu1 %3184 }
 0xbee   :  { %v4794_v56 = vpop.permute.xlu1 %3194 }
 0xbef   :  { %v3196_v28 = vunpack.i.l.bf16 %v4794_v56 }
 0xc07   :  { %v1983_v42 = vpop.xlane.xlu0 %1982 }
 0xc08   :  { %3535 = vrcp.f32 %v1983_v42  ;;  %v3167_v42 = vunpack.i.h.bf16 %v3165_v0 }
 0xc09   :  { %3537 = vrcp.f32 %v1985_v35 }
 0xc0b   :  { %v1987_v58 = vpop.xlane.xlu0 %1986 }
 0xc0c   :  { %3539 = vrcp.f32 %v1987_v58  ;;  %v3166_v58 = vunpack.i.l.bf16 %v3165_v0 }
 0xc0f   :  { %v3155_v11 = vpop.permute.xlu0 %3154 }
 0xc10   :  { %v3157_v20 = vunpack.i.h.bf16 %v3155_v11  ;;  %v3156_v38 = vunpack.i.l.bf16 %v3155_v11 }
 0xc12   :  { %v3536_v40 = vpop.eup %3535 }
 0xc13   :  { %v2017_v53 = vmul.f32 %v3536_v40, %v4726_v63  ;;  %v3538_v51 = vpop.eup %3537  ;;  %v3170_v19 = vpop.permute.xlu0 %3169  ;;  %v2342_v40 = vsel %vm329_vm1, %v4947_v22, %v3157_v20 }
 0xc14   :  { %v2018_v1 = vmul.f32 %v3538_v51, %v4693_v62  ;;  %v3172_v9 = vunpack.i.h.bf16 %v3170_v19  ;;  %v3171_v4 = vunpack.i.l.bf16 %v3170_v19 }
 0xc15   :  { %v2026_v21 = vpack.c.bf16 %v2017_v53, %v2016_v15  ;;  %v4948_v15 = vld [vmem:[#allocation16_spill] sm:$0xff] }
 0xc16   :  { %v3540_v55 = vpop.eup %3539  ;;  %v2341_v53 = vsel %vm329_vm1, %v4948_v15, %v3156_v38  ;;  %v2361_v8 = vsel %vm2357_vm2, %v2344_v57, %v3172_v9  ;;  %v2360_v43 = vsel %vm2357_vm2, %v2343_v44, %v3171_v4  ;;  %v4953_v15 = vld [vmem:[#allocation26_spill] sm:$0xff] }
 0xc17   :  { %3060 = vmatprep.mubr.bf16.mxu1 %v2026_v21  ;;  %v2019_v25 = vmul.f32 %v3540_v55, %v4729_v13  ;;  %v3180_v30 = vpop.permute.xlu0 %3179  ;;  %v3177_v21 = vunpack.i.h.bf16 %v3175_v59  ;;  %v3176_v55 = vunpack.i.l.bf16 %v3175_v59 }
 0xc19   :  { %v2027_v10 = vpack.c.bf16 %v2019_v25, %v2018_v1 }
 0xc1b   :  { %3061 = vmatmul.mubr.bf16.gmra.mrb[56].mxu1 %v2027_v10  ;;  %v3190_v6 = vpop.permute.xlu0 %3189 }
 0xc1f   :  { %v4792_v24 = vpop.permute.xlu0 %3199 }
 0xc20   :  { %v3202_v60 = vunpack.i.h.bf16 %v4792_v24  ;;  %v3201_v57 = vunpack.i.l.bf16 %v4792_v24 }
 0xcb2   :  { %v3050_v46 = vpop.f32.mrb[80].mxu0  ;;  %v3054_v26 = vpop.f32.mrb[48].mxu1 }
 0xcb3   :  { %v2086_v18 = vpop.f32.mrb[81].mxu0  ;;  %v2102_v63 = vpop.f32.mrb[49].mxu1 }
 0xcb4   :  { %v3051_v29 = vpop.f32.mrb[82].mxu0  ;;  %v3055_v17 = vpop.f32.mrb[50].mxu1 }
 0xcb5   :  { %v3203_v50 = vpack.i.bf16 %v3051_v29, %v3050_v46  ;;  %v3223_v35 = vpack.i.bf16 %v3055_v17, %v3054_v26  ;;  %v2089_v7 = vpop.f32.mrb[83].mxu0  ;;  %v2105_v62 = vpop.f32.mrb[51].mxu1  ;;  %v2358_v29 = vsel %vm2357_vm2, %v2341_v53, %v3166_v58  ;;  %v2359_v17 = vsel %vm2357_vm2, %v2342_v40, %v3167_v42  ;;  %v4954_v53 = vld [vmem:[#allocation24_spill] sm:$0xff] }
 0xcb6   :  { %v3208_v33 = vpack.i.bf16 %v2089_v7, %v2086_v18  ;;  %v3228_v13 = vpack.i.bf16 %v2105_v62, %v2102_v63 }
 0xcb7   :  { %3204 = vrot.lane.b32.xlu0 %v3203_v50, %s3678_s11  ;;  %v3186_v50 = vunpack.i.l.bf16 %v3185_v3 }
 0xcb8   :  { %3209 = vrot.lane.b32.xlu1 %v3208_v33, %s3678_s11 }
 0xcba   :  { %v3058_v61 = vpop.f32.mrb[52].mxu1 }
 0xcbb   :  { %3219 = vrot.lane.b32.xlu0 %v4939_v52, %s3677_s8  ;;  %v2118_v12 = vpop.f32.mrb[53].mxu1 }
 0xcbc   :  { %3214 = vrot.lane.b32.xlu1 %v4940_v39, %s3677_s8  ;;  %v3059_v49 = vpop.f32.mrb[54].mxu1  ;;  %v3192_v39 = vunpack.i.h.bf16 %v3190_v6 }
 0xcbd   :  { %v3243_v34 = vpack.i.bf16 %v3059_v49, %v3058_v61  ;;  %v2121_v16 = vpop.f32.mrb[55].mxu1  ;;  %v3181_v61 = vunpack.i.l.bf16 %v3180_v30  ;;  %v3191_v49 = vunpack.i.l.bf16 %v3190_v6  ;;  %v3197_v6 = vunpack.i.h.bf16 %v4794_v56 }
 0xcbe   :  { %v3248_v41 = vpack.i.bf16 %v2121_v16, %v2118_v12 }
 0xcbf   :  { %3224 = vrot.lane.b32.xlu0 %v3223_v35, %s3678_s11  ;;  %v2350_v56 = vsel %vm329_vm1, %v4953_v15, %v3197_v6 }
 0xcc0   :  { %3229 = vrot.lane.b32.xlu1 %v3228_v13, %s3678_s11  ;;  %v3182_v13 = vunpack.i.h.bf16 %v3180_v30 }
 0xcc3   :  { %3239 = vrot.lane.b32.xlu0 %v4941_v14, %s3666_s10  ;;  %v4950_v14 = vld [vmem:[#allocation22_spill] sm:$0xff] }
 0xcc4   :  { %3234 = vrot.lane.b32.xlu1 %v4942_v54, %s3666_s10  ;;  %v2346_v54 = vsel %vm329_vm1, %v4950_v14, %v3177_v21 }
 0xcc7   :  { %3244 = vrot.lane.b32.xlu0 %v3243_v34, %s3678_s11  ;;  %v4949_v34 = vld [vmem:[#allocation20_spill] sm:$0xff] }
 0xcc8   :  { %3249 = vrot.lane.b32.xlu1 %v3248_v41, %s3678_s11  ;;  %v2345_v16 = vsel %vm329_vm1, %v4949_v34, %v3176_v55  ;;  %v3187_v41 = vunpack.i.h.bf16 %v3185_v3  ;;  %v4955_v55 = vld [vmem:[#allocation25_spill] sm:$0xff] }
 0xcc9   :  { %v2352_v24 = vsel %vm329_vm1, %v4955_v55, %v3202_v60 }
 0xcca   :  { %v2363_v59 = vsel %vm2357_vm2, %v2346_v54, %v3187_v41 }
 0xccb   :  { %3259 = vrot.lane.b32.xlu0 %v4943_v37, %s3677_s8  ;;  %v2362_v37 = vsel %vm2357_vm2, %v2345_v16, %v3186_v50 }
 0xccc   :  { %3254 = vrot.lane.b32.xlu1 %v4944_v23, %s3677_s8 }
 0xcee   :  { %v3062_v31 = vpop.f32.mrb[56].mxu1 }
 0xcef   :  { %v2134_v45 = vpop.f32.mrb[57].mxu1 }
 0xcf0   :  { %v3063_v47 = vpop.f32.mrb[58].mxu1 }
 0xcf1   :  { %v3268_v2 = vpack.i.bf16 %v3063_v47, %v3062_v31  ;;  %v2137_v48 = vpop.f32.mrb[59].mxu1  ;;  %v4951_v31 = vld [vmem:[#allocation21_spill] sm:$0xff]  ;;  %v4952_v47 = vld [vmem:[#allocation19_spill] sm:$0xff] }
 0xcf2   :  { %v3263_v27 = vpack.i.bf16 %v2137_v48, %v2134_v45  ;;  %v2348_v45 = vsel %vm329_vm1, %v4951_v31, %v3182_v13  ;;  %v4958_v31 = vld [vmem:[#allocation27_spill] sm:$0xff] }
 0xcf3   :  { %3269 = vrot.lane.b32.xlu0 %v3268_v2, %s3678_s11  ;;  %v2347_v2 = vsel %vm329_vm1, %v4952_v47, %v3181_v61  ;;  %v2365_v19 = vsel %vm2357_vm2, %v2348_v45, %v3192_v39 }
 0xcf4   :  { %3264 = vrot.lane.b32.xlu1 %v3263_v27, %s3678_s11  ;;  %v2364_v36 = vsel %vm2357_vm2, %v2347_v2, %v3191_v49  ;;  %v4959_v2 = vld [vmem:[#allocation30_spill] sm:$0xff] }
 0xd29   :  { %v3205_v51 = vpop.permute.xlu0 %3204 }
 0xd2a   :  { %v3207_v1 = vunpack.i.h.bf16 %v3205_v51  ;;  %v3206_v25 = vunpack.i.l.bf16 %v3205_v51  ;;  %v3210_v10 = vpop.permute.xlu1 %3209  ;;  %v2349_v51 = vsel %vm329_vm1, %v4954_v53, %v3196_v28 }
 0xd2b   :  { %v3212_v46 = vunpack.i.h.bf16 %v3210_v10  ;;  %v3211_v26 = vunpack.i.l.bf16 %v3210_v10 }
 0xd2c   :  { %v2377_v18 = vsel %vm2374_vm3, %v2360_v43, %v3206_v25  ;;  %v2378_v63 = vsel %vm2374_vm3, %v2361_v8, %v3207_v1  ;;  %v4956_v1 = vld [vmem:[#allocation23_spill] sm:$0xff] }
 0xd2d   :  { %v2392_v35 = vpack.c.bf16 %v2378_v63, %v2377_v18  ;;  %v2375_v7 = vsel %vm2374_vm3, %v2358_v29, %v3211_v26  ;;  %v2376_v62 = vsel %vm2374_vm3, %v2359_v17, %v3212_v46  ;;  %v3220_v33 = vpop.permute.xlu0 %3219  ;;  %v2351_v25 = vsel %vm329_vm1, %v4956_v1, %v3201_v57 }
 0xd2e   :  { %v2391_v52 = vpack.c.bf16 %v2376_v62, %v2375_v7  ;;  %v3215_v12 = vpop.permute.xlu1 %3214  ;;  %v3222_v42 = vunpack.i.h.bf16 %v3220_v33  ;;  %v3221_v58 = vunpack.i.l.bf16 %v3220_v33 }
 0xd2f   :  { %v3217_v22 = vunpack.i.h.bf16 %v3215_v12  ;;  %v3216_v40 = vunpack.i.l.bf16 %v3215_v12 }
 0xd30   :  { %3068 = vmatprep.mubr.msk.bf16.mxu1 %vm159_vm0, %v2391_v52  ;;  %v2368_v46 = vsel %vm2357_vm2, %v2351_v25, %v3221_v58  ;;  %v2369_v26 = vsel %vm2357_vm2, %v2352_v24, %v3222_v42 }
 0xd31   :  { %v3225_v23 = vpop.permute.xlu0 %3224  ;;  %3069 = vmatmul.mubr.msk.bf16.vlgmr.msra.gmra.mrb[60].mxu1 %vm159_vm0, %v2392_v35  ;;  %v2367_v29 = vsel %vm2357_vm2, %v2350_v56, %v3217_v22  ;;  %v2366_v17 = vsel %vm2357_vm2, %v2349_v51, %v3216_v40 }
 0xd32   :  { %v3227_v48 = vunpack.i.h.bf16 %v3225_v23  ;;  %v3226_v27 = vunpack.i.l.bf16 %v3225_v23  ;;  %v3230_v11 = vpop.permute.xlu1 %3229 }
 0xd33   :  { %v3232_v0 = vunpack.i.h.bf16 %v3230_v11  ;;  %v3231_v30 = vunpack.i.l.bf16 %v3230_v11 }
 0xd34   :  { %v2381_v3 = vsel %vm2374_vm3, %v2364_v36, %v3226_v27  ;;  %v2382_v5 = vsel %vm2374_vm3, %v2365_v19, %v3227_v48  ;;  %v4960_v27 = vld [vmem:[#allocation28_spill] sm:$0xff] }
 0xd35   :  { %v2394_v20 = vpack.c.bf16 %v2382_v5, %v2381_v3  ;;  %v2380_v38 = vsel %vm2374_vm3, %v2363_v59, %v3232_v0  ;;  %v2379_v9 = vsel %vm2374_vm3, %v2362_v37, %v3231_v30  ;;  %v3240_v4 = vpop.permute.xlu0 %3239  ;;  %v4957_v37 = vld [vmem:[#allocation29_spill] sm:$0xff] }
 0xd36   :  { %v2393_v32 = vpack.c.bf16 %v2380_v38, %v2379_v9  ;;  %v3235_v44 = vpop.permute.xlu1 %3234  ;;  %v3242_v52 = vunpack.i.h.bf16 %v3240_v4  ;;  %v3241_v12 = vunpack.i.l.bf16 %v3240_v4 }
 0xd37   :  { %v3237_v49 = vunpack.i.h.bf16 %v3235_v44  ;;  %v3236_v34 = vunpack.i.l.bf16 %v3235_v44 }
 0xd38   :  { %3072 = vmatprep.mubr.msk.bf16.mxu1 %vm159_vm0, %v2393_v32  ;;  %v2356_v23 = vsel %vm329_vm1, %v4957_v37, %v3242_v52  ;;  %v2355_v45 = vsel %vm329_vm1, %v4958_v31, %v3241_v12  ;;  %v2629_v32 = vld [vmem:[%s4910_s4] ss:$0 sm:$0xff]  ;;  %s3679_s4 = smov [#allocation10]  }
 0xd39   :  { %v3245_v21 = vpop.permute.xlu0 %3244  ;;  %3073 = vmatmul.mubr.msk.bf16.gmra.mrb[64].mxu1 %vm159_vm0, %v2394_v20  ;;  %v2354_v48 = vsel %vm329_vm1, %v4959_v2, %v3237_v49  ;;  %v2353_v11 = vsel %vm329_vm1, %v4960_v27, %v3236_v34  ;;  %s2564_s12 = sshll.u32 %s3679_s4, 4  ;;  %s2565_s12 = int_to_ptr.vmem [resolvable:$true] %s2564_s12 }
 0xd3a   :  { %v3247_v10 = vunpack.i.h.bf16 %v3245_v21  ;;  %v3246_v8 = vunpack.i.l.bf16 %v3245_v21  ;;  %v3250_v43 = vpop.permute.xlu1 %3249  ;;  %s3629_s13 = scalar_lea.vmem %s2565_s12, 2048  ;;  %p3634_p5 = scmp.lt.s32.totalorder %s2565_s12, %s2565_s12 }
 0xd3b   :  { %v3252_v18 = vunpack.i.h.bf16 %v3250_v43  ;;  %v3251_v63 = vunpack.i.l.bf16 %v3250_v43  ;;  %p3630_p4 = scmp.ne.s32.totalorder %s2565_s12, %s3629_s13  ;;  %p3635_p6 = scmp.lt.s32.totalorder %s3629_s13, %s3629_s13 }
 0xd3c   :  { %v2385_v50 = vsel %vm2374_vm3, %v2368_v46, %v3246_v8  ;;  %v2386_v35 = vsel %vm2374_vm3, %v2369_v26, %v3247_v10 }
 0xd3d   :  { %v2396_v7 = vpack.c.bf16 %v2386_v35, %v2385_v50  ;;  %v2384_v62 = vsel %vm2374_vm3, %v2367_v29, %v3252_v18  ;;  %v2383_v33 = vsel %vm2374_vm3, %v2366_v17, %v3251_v63  ;;  %v3260_v61 = vpop.permute.xlu0 %3259  ;;  %p3636_p7 = por %p3635_p6, %p3634_p5 }
 0xd3e   :  { %v2395_v13 = vpack.c.bf16 %v2384_v62, %v2383_v33  ;;  %v3255_v39 = vpop.permute.xlu1 %3254  ;;  %v3262_v16 = vunpack.i.h.bf16 %v3260_v61  ;;  %v3261_v41 = vunpack.i.l.bf16 %v3260_v61 }
 0xd3f   :  { %v3257_v14 = vunpack.i.h.bf16 %v3255_v39  ;;  %v3256_v54 = vunpack.i.l.bf16 %v3255_v39  ;;  %p3637_p8 = pnand %p3636_p7, %p3630_p4 }
 0xd40   :  { %3076 = vmatprep.mubr.msk.bf16.mxu1 %vm159_vm0, %v2395_v13  ;;  %v2372_v30 = vsel %vm2357_vm2, %v2355_v45, %v3261_v41  ;;  %v2373_v59 = vsel %vm2357_vm2, %v2356_v23, %v3262_v16 }
 0xd41   :  { %3077 = vmatmul.mubr.msk.bf16.gmra.mrb[68].mxu1 %vm159_vm0, %v2396_v7  ;;  %v2371_v5 = vsel %vm2357_vm2, %v2354_v48, %v3257_v14  ;;  %v2370_v28 = vsel %vm2357_vm2, %v2353_v11, %v3256_v54 }
 0xd65   :  { %v3270_v47 = vpop.permute.xlu0 %3269 }
 0xd66   :  { %v3272_v36 = vunpack.i.h.bf16 %v3270_v47  ;;  %v3271_v19 = vunpack.i.l.bf16 %v3270_v47  ;;  %v3265_v0 = vpop.permute.xlu1 %3264 }
 0xd67   :  { %v3267_v6 = vunpack.i.h.bf16 %v3265_v0  ;;  %v3266_v3 = vunpack.i.l.bf16 %v3265_v0 }
 0xd68   :  { %v2389_v20 = vsel %vm2374_vm3, %v2372_v30, %v3271_v19  ;;  %v2390_v38 = vsel %vm2374_vm3, %v2373_v59, %v3272_v36 }
 0xd69   :  { %v2398_v9 = vpack.c.bf16 %v2390_v38, %v2389_v20  ;;  %v2388_v4 = vsel %vm2374_vm3, %v2371_v5, %v3267_v6  ;;  %v2387_v60 = vsel %vm2374_vm3, %v2370_v28, %v3266_v3 }
 0xd6a   :  { %v2397_v57 = vpack.c.bf16 %v2388_v4, %v2387_v60 }
 0xd6c   :  { %3080 = vmatprep.mubr.msk.bf16.mxu1 %vm159_vm0, %v2397_v57 }
 0xd6d   :  { %3081 = vmatmul.mubr.msk.bf16.gmra.mrb[72].mxu1 %vm159_vm0, %v2398_v9 }
 0xe04   :  { %v3070_v44 = vpop.f32.mrb[60].mxu1 }
 0xe05   :  { %v2489_v42 = vadd.f32 %v3070_v44, %v2629_v32  ;;  %v2480_v58 = vpop.f32.mrb[61].mxu1 }
 0xe06   :  { %v2481_v22 = vadd.f32 %v2629_v32, %v2480_v58  ;;  %v3071_v40 = vpop.f32.mrb[62].mxu1 }
 0xe07   :  { %2545 = vst.msk [vmem:[#allocation10 + $0x10] sm:$0xff] %vm159_vm0, %v2489_v42  ;;  %v2492_v15 = vadd.f32 %v3071_v40, %v2629_v32  ;;  %v2483_v56 = vpop.f32.mrb[63].mxu1 }
 0xe08   :  { %2543 = vst.msk [vmem:[#allocation10] sm:$0xff] %vm159_vm0, %v2481_v22  ;;  %v2484_v53 = vadd.f32 %v2629_v32, %v2483_v56 }
 0xe09   :  { %2546 = vst.msk [vmem:[#allocation10 + $0x18] sm:$0xff] %vm159_vm0, %v2492_v15 }
 0xe0a   :  { %2544 = vst.msk [vmem:[#allocation10 + $0x8] sm:$0xff] %vm159_vm0, %v2484_v53 }
 0xe0c   :  { %v3074_v51 = vpop.f32.mrb[64].mxu1 }
 0xe0d   :  { %v2505_v21 = vadd.f32 %v3074_v51, %v2629_v32  ;;  %v2496_v55 = vpop.f32.mrb[65].mxu1 }
 0xe0e   :  { %v2497_v24 = vadd.f32 %v2629_v32, %v2496_v55  ;;  %v3075_v1 = vpop.f32.mrb[66].mxu1 }
 0xe0f   :  { %2549 = vst.msk [vmem:[#allocation10 + $0x30] sm:$0xff] %vm159_vm0, %v2505_v21  ;;  %v2508_v25 = vadd.f32 %v3075_v1, %v2629_v32  ;;  %v2499_v10 = vpop.f32.mrb[67].mxu1 }
 0xe10   :  { %2547 = vst.msk [vmem:[#allocation10 + $0x20] sm:$0xff] %vm159_vm0, %v2497_v24  ;;  %v2500_v8 = vadd.f32 %v2629_v32, %v2499_v10 }
 0xe11   :  { %2550 = vst.msk [vmem:[#allocation10 + $0x38] sm:$0xff] %vm159_vm0, %v2508_v25 }
 0xe12   :  { %2548 = vst.msk [vmem:[#allocation10 + $0x28] sm:$0xff] %vm159_vm0, %v2500_v8 }
 0xe14   :  { %v3078_v43 = vpop.f32.mrb[68].mxu1 }
 0xe15   :  { %v2521_v46 = vadd.f32 %v3078_v43, %v2629_v32  ;;  %v2512_v26 = vpop.f32.mrb[69].mxu1 }
 0xe16   :  { %v2513_v18 = vadd.f32 %v2629_v32, %v2512_v26  ;;  %v3079_v63 = vpop.f32.mrb[70].mxu1 }
 0xe17   :  { %2553 = vst.msk [vmem:[#allocation10 + $0x50] sm:$0xff] %vm159_vm0, %v2521_v46  ;;  %v2524_v29 = vadd.f32 %v3079_v63, %v2629_v32  ;;  %v2515_v17 = vpop.f32.mrb[71].mxu1 }
 0xe18   :  { %2551 = vst.msk [vmem:[#allocation10 + $0x40] sm:$0xff] %vm159_vm0, %v2513_v18  ;;  %v2516_v50 = vadd.f32 %v2629_v32, %v2515_v17 }
 0xe19   :  { %2554 = vst.msk [vmem:[#allocation10 + $0x58] sm:$0xff] %vm159_vm0, %v2524_v29 }
 0xe1a   :  { %2552 = vst.msk [vmem:[#allocation10 + $0x48] sm:$0xff] %vm159_vm0, %v2516_v50 }
 0xe40   :  { %v3082_v35 = vpop.f32.mrb[72].mxu1 }
 0xe41   :  { %v2537_v7 = vadd.f32 %v3082_v35, %v2629_v32  ;;  %v2528_v62 = vpop.f32.mrb[73].mxu1 }
 0xe42   :  { %v2529_v33 = vadd.f32 %v2629_v32, %v2528_v62  ;;  %v3083_v13 = vpop.f32.mrb[74].mxu1 }
 0xe43   :  { %2557 = vst.msk [vmem:[#allocation10 + $0x70] sm:$0xff] %vm159_vm0, %v2537_v7  ;;  %v2540_v61 = vadd.f32 %v3083_v13, %v2629_v32  ;;  %v2531_v52 = vpop.f32.mrb[75].mxu1 }
 0xe44   :  { %2555 = vst.msk [vmem:[#allocation10 + $0x60] sm:$0xff] %vm159_vm0, %v2529_v33  ;;  %v2532_v12 = vadd.f32 %v2629_v32, %v2531_v52 }
 0xe45   :  { %2558 = vst.msk [vmem:[#allocation10 + $0x78] sm:$0xff] %vm159_vm0, %v2540_v61 }
 0xe46   :  { %2556 = vst.msk [vmem:[#allocation10 + $0x68] sm:$0xff] %vm159_vm0, %v2532_v12 }
 0xe47   :  { %3640 = shalt.err (!%p3637_p8)
}
 0xe48   :  { %s3641_s16 = scalar_lea.hbm %s4912_s6, 2048 }
 0xe49   :  { %p3642_p9 = scmp.ne.s32.totalorder %s4912_s6, %s3641_s16  ;;  %p3645_p10 = scmp.lt.u32.totalorder %s3641_s16, %s4912_s6 }
 0xe4b   :  { %p3647_p11 = pnand %p3645_p10, %p3642_p9 }
 0xe4d   :  { %3650 = shalt.err (!%p3647_p11)
}
 0xe4e   :  { %2570 = dma.vmem_to_hbm [thread:$0]  %s2565_s12, 2048, %s4912_s6, [#allocation4], %s3665_s3, %s3665_s3, %s3666_s10  }
 0xe4f   :  { %3657 = dma.done.wait [#allocation4], 2048  }
 0xe50   :  { %3658 = vsyncadd [#allocation4], 4294965248 }
 0xe51   :  { %2574 = vsyncpa [#allocation3], 1 }
 0xe52   :  { %2575 = vsyncpa [#allocation6], 1 }
 0xe53   :  { %2576 = vsyncpa [#allocation9], 1 }
 0xe54   :  { %2577 = vsyncpa [#allocation4], 1 }

</bundles_post_ra>
